<compile_context>
chip_gen: v5e
topology: v5e:2x2
jax: 0.10.0
libtpu: 0.0.40
codegen_flags: <defaults>
</compile_context>

<pallas_src>
import functools

import jax
import jax.numpy as jnp
import numpy as np
from jax import lax
from jax.experimental import pallas as pl
from jax.experimental.pallas import tpu as pltpu

EPS = 1e-5       # nn.BatchNorm2d default eps
GUARD = 8        # zero guard rows at both ends of the flat conv2 scratch


def _round_up(v, m):
    return (v + m - 1) // m * m


def _pick_tile_h(H, W, target_rows=2048):
    """Largest divisor of H whose row-tile (TH*W flat rows) stays small."""
    best = 1
    for th in range(1, H + 1):
        if H % th == 0 and th * W <= target_rows:
            best = th
    return best


def _vmem_limit_bytes(TH, W, Cin, F1, F2, F3):
    """Rough per-tile VMEM need (lane-padded, 2x buffered) -> scoped limit."""
    TP = TH * W
    lane = lambda c: _round_up(max(c, 1), 128)
    bf, f4 = 2, 4
    p1 = 2 * (TP * lane(Cin) * bf + TP * lane(F1) * bf)
    p2 = (2 * (TP * lane(F1) * bf + 2 * W * lane(F1) * bf + TP * lane(F2) * bf)
          + ((TH + 2) * W + 2 * GUARD) * lane(F1) * bf
          + 9 * _round_up(F1, 16) * lane(F2) * bf)
    p3 = 2 * (TP * lane(F2) * bf + TP * lane(Cin) * bf + TP * lane(F3) * f4)
    need = max(p1, p2, p3) + (4 << 20)
    return int(min(max(need, 16 << 20), 64 << 20))


# ---------------------------------------------------------------------------
# Pass 1: conv1 (1x1) + BN2 partial sums
# ---------------------------------------------------------------------------
def _pass1_kernel(x_ref, w1_ref, h1_ref, p1_ref, p2_ref, *, TH, W, Cin, F1):
    TP = TH * W
    x = x_ref[...].reshape(TP, Cin)                                  # bf16
    h = jnp.dot(x, w1_ref[...], preferred_element_type=jnp.float32)  # (TP,F1) f32
    hb = h.astype(jnp.bfloat16)                                      # single cast
    h1_ref[...] = hb.reshape(1, TH, W, F1)
    hf = hb.astype(jnp.float32)                                      # stats match stored values
    p1_ref[...] = jnp.sum(hf, axis=0, keepdims=True).reshape(1, 1, 1, F1)
    p2_ref[...] = jnp.sum(hf * hf, axis=0, keepdims=True).reshape(1, 1, 1, F1)


# ---------------------------------------------------------------------------
# Pass 2: BN2-apply + ReLU + 3x3 conv2 + BN3 partial sums
# ---------------------------------------------------------------------------
def _pass2_kernel(hc_ref, hu_ref, hd_ref, s2_ref, b2_ref, w2_ref,
                  h2_ref, q1_ref, q2_ref, pad_ref,
                  *, TH, W, F1, F2, T):
    TP = TH * W
    t = pl.program_id(1)

    s2 = s2_ref[...]
    b2 = b2_ref[...]

    def bn_relu(v):                       # v: (rows, F1) bf16 -> bf16 (one cast)
        return jnp.maximum(v * s2 + b2, 0.0).astype(jnp.bfloat16)

    # Zero guard bands (only ever read at positions that are column-masked).
    zg = jnp.zeros((GUARD, F1), jnp.bfloat16)
    pad_ref[pl.ds(0, GUARD), :] = zg
    pad_ref[pl.ds(GUARD + (TH + 2) * W, GUARD), :] = zg

    # Halo rows: real neighbouring image rows, zeroed at image top/bottom.
    not_top = (t > 0).astype(jnp.bfloat16)
    not_bot = (t < T - 1).astype(jnp.bfloat16)
    pad_ref[pl.ds(GUARD, W), :] = bn_relu(hu_ref[...].reshape(W, F1)) * not_top
    pad_ref[pl.ds(GUARD + W, TP), :] = bn_relu(hc_ref[...].reshape(TP, F1))
    pad_ref[pl.ds(GUARD + (TH + 1) * W, W), :] = (
        bn_relu(hd_ref[...].reshape(W, F1)) * not_bot)

    # Column masks (left/right image border) from an in-kernel iota.
    col = lax.broadcasted_iota(jnp.int32, (TP, 1), 0) % W
    mask_l = (col > 0).astype(jnp.bfloat16)
    mask_r = (col < (W - 1)).astype(jnp.bfloat16)

    # 9 shifted MXU dots; 3 independent accumulators; masks applied to the
    # narrow bf16 inputs *before* the dot; no ky masks needed.
    accs = []
    for ky in range(3):
        part = None
        for kx in range(3):
            start = GUARD + ky * W + (kx - 1)           # static offset
            rows = pad_ref[pl.ds(start, TP), :]
            if kx == 0:
                rows = rows * mask_l
            elif kx == 2:
                rows = rows * mask_r
            p = jnp.dot(rows, w2_ref[ky * 3 + kx],
                        preferred_element_type=jnp.float32)
            part = p if part is None else part + p
        accs.append(part)
    acc = accs[0] + (accs[1] + accs[2])

    accb = acc.astype(jnp.bfloat16)
    h2_ref[...] = accb.reshape(1, TH, W, F2)
    accf = accb.astype(jnp.float32)
    q1_ref[...] = jnp.sum(accf, axis=0, keepdims=True).reshape(1, 1, 1, F2)
    q2_ref[...] = jnp.sum(accf * accf, axis=0, keepdims=True).reshape(1, 1, 1, F2)


# ---------------------------------------------------------------------------
# Pass 3: BN3-apply + ReLU + conv3 (1x1) + conv_shortcut (1x1) + add
# ---------------------------------------------------------------------------
def _pass3_kernel(h2_ref, x_ref, s3_ref, b3_ref, w3_ref, wsc_ref, out_ref,
                  *, TH, W, Cin, F2, F3):
    TP = TH * W
    h = h2_ref[...].reshape(TP, F2)
    a = jnp.maximum(h * s3_ref[...] + b3_ref[...], 0.0).astype(jnp.bfloat16)
    y = jnp.dot(a, w3_ref[...], preferred_element_type=jnp.float32)
    x = x_ref[...].reshape(TP, Cin)
    y = y + jnp.dot(x, wsc_ref[...], preferred_element_type=jnp.float32)
    out_ref[...] = y.reshape(1, TH, W, F3)


# ---------------------------------------------------------------------------
# Wrapper
# ---------------------------------------------------------------------------
def input_bottleneck_block(x_nchw, params):
    w1 = params["w1"]                 # (Cin, F1)
    wsc = params["w_shortcut"]        # (Cin, F3)
    g2, b2 = params["gamma2"], params["beta2"]
    w2 = params["w2"]                 # (3, 3, F1, F2)  HWIO
    g3, b3 = params["gamma3"], params["beta3"]
    w3 = params["w3"]                 # (F2, F3)

    N, Cin, H, W = x_nchw.shape
    F1, F2, F3 = w1.shape[1], w2.shape[3], w3.shape[1]
    P = N * H * W

    TH = _pick_tile_h(H, W)
    T = H // TH
    TP = TH * W

    # TODO(synk): keep the whole block NHWC end-to-end to drop these transposes.
    x_nhwc = jnp.transpose(x_nchw, (0, 2, 3, 1)).astype(jnp.bfloat16)
    w1_b = w1.astype(jnp.bfloat16)
    wsc_b = wsc.astype(jnp.bfloat16)
    w2_b = w2.reshape(9, F1, F2).astype(jnp.bfloat16)   # (ky,kx)-major taps
    w3_b = w3.astype(jnp.bfloat16)

    cp = pltpu.CompilerParams(
        dimension_semantics=("parallel", "parallel"),
        vmem_limit_bytes=_vmem_limit_bytes(TH, W, Cin, F1, F2, F3),
    )

    # ---- pass 1 -------------------------------------------------------------
    h1, p1, p2 = pl.pallas_call(
        functools.partial(_pass1_kernel, TH=TH, W=W, Cin=Cin, F1=F1),
        grid=(N, T),
        in_specs=[
            pl.BlockSpec((1, TH, W, Cin), lambda n, t: (n, t, 0, 0)),
            pl.BlockSpec((Cin, F1), lambda n, t: (0, 0)),
        ],
        out_specs=(
            pl.BlockSpec((1, TH, W, F1), lambda n, t: (n, t, 0, 0)),
            pl.BlockSpec((1, 1, 1, F1), lambda n, t: (n, t, 0, 0)),
            pl.BlockSpec((1, 1, 1, F1), lambda n, t: (n, t, 0, 0)),
        ),
        out_shape=(
            jax.ShapeDtypeStruct((N, H, W, F1), jnp.bfloat16),
            jax.ShapeDtypeStruct((N, T, 1, F1), jnp.float32),
            jax.ShapeDtypeStruct((N, T, 1, F1), jnp.float32),
        ),
        compiler_params=cp,
    )(x_nhwc, w1_b)

    # ---- BN2 finalisation (tiny host-side math on (F1,) vectors) ------------
    s1 = jnp.sum(p1, axis=(0, 1, 2))
    sq = jnp.sum(p2, axis=(0, 1, 2))
    mean2 = s1 / P
    var2 = jnp.maximum(sq / P - mean2 * mean2, 0.0)      # clamp: no negative var
    scale2 = (g2.reshape(1, F1) * lax.rsqrt(var2 + EPS)).astype(jnp.float32)
    shift2 = (b2.reshape(1, F1) - mean2 * scale2).astype(jnp.float32)

    # ---- pass 2 -------------------------------------------------------------
    h2, q1, q2 = pl.pallas_call(
        functools.partial(_pass2_kernel, TH=TH, W=W, F1=F1, F2=F2, T=T),
        grid=(N, T),
        in_specs=[
            pl.BlockSpec((1, TH, W, F1), lambda n, t: (n, t, 0, 0)),
            pl.BlockSpec((1, 1, W, F1),
                         lambda n, t: (n, jnp.maximum(t * TH - 1, 0), 0, 0)),
            pl.BlockSpec((1, 1, W, F1),
                         lambda n, t: (n, jnp.minimum(t * TH + TH, H - 1), 0, 0)),
            pl.BlockSpec((1, F1), lambda n, t: (0, 0)),
            pl.BlockSpec((1, F1), lambda n, t: (0, 0)),
            pl.BlockSpec((9, F1, F2), lambda n, t: (0, 0, 0)),
        ],
        out_specs=(
            pl.BlockSpec((1, TH, W, F2), lambda n, t: (n, t, 0, 0)),
            pl.BlockSpec((1, 1, 1, F2), lambda n, t: (n, t, 0, 0)),
            pl.BlockSpec((1, 1, 1, F2), lambda n, t: (n, t, 0, 0)),
        ),
        out_shape=(
            jax.ShapeDtypeStruct((N, H, W, F2), jnp.bfloat16),
            jax.ShapeDtypeStruct((N, T, 1, F2), jnp.float32),
            jax.ShapeDtypeStruct((N, T, 1, F2), jnp.float32),
        ),
        scratch_shapes=[
            pltpu.VMEM(((TH + 2) * W + 2 * GUARD, F1), jnp.bfloat16)],
        compiler_params=cp,
    )(h1, h1, h1, scale2, shift2, w2_b)

    # ---- BN3 finalisation ----------------------------------------------------
    s1 = jnp.sum(q1, axis=(0, 1, 2))
    sq = jnp.sum(q2, axis=(0, 1, 2))
    mean3 = s1 / P
    var3 = jnp.maximum(sq / P - mean3 * mean3, 0.0)
    scale3 = (g3.reshape(1, F2) * lax.rsqrt(var3 + EPS)).astype(jnp.float32)
    shift3 = (b3.reshape(1, F2) - mean3 * scale3).astype(jnp.float32)

    # ---- pass 3 -------------------------------------------------------------
    out_nhwc = pl.pallas_call(
        functools.partial(_pass3_kernel, TH=TH, W=W, Cin=Cin, F2=F2, F3=F3),
        grid=(N, T),
        in_specs=[
            pl.BlockSpec((1, TH, W, F2), lambda n, t: (n, t, 0, 0)),
            pl.BlockSpec((1, TH, W, Cin), lambda n, t: (n, t, 0, 0)),
            pl.BlockSpec((1, F2), lambda n, t: (0, 0)),
            pl.BlockSpec((1, F2), lambda n, t: (0, 0)),
            pl.BlockSpec((F2, F3), lambda n, t: (0, 0)),
            pl.BlockSpec((Cin, F3), lambda n, t: (0, 0)),
        ],
        out_specs=pl.BlockSpec((1, TH, W, F3), lambda n, t: (n, t, 0, 0)),
        out_shape=jax.ShapeDtypeStruct((N, H, W, F3), jnp.float32),
        compiler_params=cp,
    )(h2, x_nhwc, scale3, shift3, w3_b, wsc_b)

    return jnp.transpose(out_nhwc, (0, 3, 1, 2))


# ---------------------------------------------------------------------------
# Deterministic parameter init (shapes from InputBottleneckBlock.__init__)
# ---------------------------------------------------------------------------
def init_params(key, in_planes, out_planes):
    F1 = out_planes // 4
    F2 = out_planes // 4
    F3 = out_planes
    k = jax.random.split(key, 4)
    s = 0.1
    return dict(
        w_shortcut=s * jax.random.normal(k[0], (in_planes, F3), jnp.float32),
        w1=s * jax.random.normal(k[1], (in_planes, F1), jnp.float32),
        gamma2=jnp.ones((1, F1), jnp.float32),
        beta2=jnp.zeros((1, F1), jnp.float32),
        w2=s * jax.random.normal(k[2], (3, 3, F1, F2), jnp.float32),   # HWIO
        gamma3=jnp.ones((1, F2), jnp.float32),
        beta3=jnp.zeros((1, F2), jnp.float32),
        w3=s * jax.random.normal(k[3], (F2, F3), jnp.float32),
    )


# ---------------------------------------------------------------------------
# Pure-JAX reference (f32, training-mode BN) for a sanity check
# ---------------------------------------------------------------------------
def reference(x_nchw, p):
    x = jnp.transpose(x_nchw, (0, 2, 3, 1))
    dn = ("NHWC", "HWIO", "NHWC")

    def conv1x1(v, w):
        return lax.conv_general_dilated(v, w[None, None], (1, 1), "SAME",
                                        dimension_numbers=dn)

    def bn(v, g, b):
        m = jnp.mean(v, axis=(0, 1, 2), keepdims=True)
        var = jnp.mean((v - m) ** 2, axis=(0, 1, 2), keepdims=True)
        return ((v - m) * lax.rsqrt(var + EPS) * g.reshape(1, 1, 1, -1)
                + b.reshape(1, 1, 1, -1))

    sc = conv1x1(x, p["w_shortcut"])
    h = jax.nn.relu(bn(conv1x1(x, p["w1"]), p["gamma2"], p["beta2"]))
    h = lax.conv_general_dilated(h, p["w2"], (1, 1), "SAME", dimension_numbers=dn)
    h = jax.nn.relu(bn(h, p["gamma3"], p["beta3"]))
    h = conv1x1(h, p["w3"]) + sc
    return jnp.transpose(h, (0, 3, 1, 2))


if __name__ == "__main__":
    key = jax.random.PRNGKey(0)
    kx, kp = jax.random.split(key)

    N, Cin, H, W = 2, 4, 16, 16
    out_planes = 16

    x = jax.random.normal(kx, (N, Cin, H, W), jnp.float32)
    params = init_params(kp, Cin, out_planes)

    fwd = jax.jit(input_bottleneck_block)
    out = jax.block_until_ready(fwd(x, params))

    ref = jax.block_until_ready(reference(x, params))
    assert out.shape == (N, out_planes, H, W), out.shape
    assert np.allclose(np.asarray(out), np.asarray(ref), atol=5e-2, rtol=5e-2)

    print("KERNEL_OK")
</pallas_src>

<mosaic_0001>
module attributes {stable_mosaic.version = 11 : i64} {
  func.func @_pass1_kernel(%arg0: i32, %arg1: i32, %arg2: memref<1x16x16x4xbf16, #tpu.memory_space<vmem>>, %arg3: memref<4x4xbf16, #tpu.memory_space<vmem>>, %arg4: memref<1x16x16x4xbf16, #tpu.memory_space<vmem>>, %arg5: memref<1x1x1x4xf32, #tpu.memory_space<vmem>>, %arg6: memref<1x1x1x4xf32, #tpu.memory_space<vmem>>) attributes {dimension_semantics = [#tpu.dimension_semantics<parallel>, #tpu.dimension_semantics<parallel>], iteration_bounds = array<i64: 2, 1>, scalar_prefetch = 0 : i64, scratch_operands = 0 : i64, tpu.core_type = #tpu.core_type<tc>, window_params = [{transform_indices = @transform_0, window_bounds = array<i64: 1, 16, 16, 4>}, {pipeline_mode = #tpu.pipeline_mode<synchronous>, transform_indices = @transform_1, window_bounds = array<i64: 4, 4>}, {transform_indices = @transform_2, window_bounds = array<i64: 1, 16, 16, 4>}, {transform_indices = @transform_3, window_bounds = array<i64: 1, 1, 1, 4>}, {transform_indices = @transform_4, window_bounds = array<i64: 1, 1, 1, 4>}]} {
    %c0 = arith.constant 0 : index
    %c0_0 = arith.constant 0 : index
    %c0_1 = arith.constant 0 : index
    %c0_2 = arith.constant 0 : index
    %0 = vector.load %arg2[%c0, %c0_0, %c0_1, %c0_2] : memref<1x16x16x4xbf16, #tpu.memory_space<vmem>>, vector<1x16x16x4xbf16>
    %1 = vector.shape_cast %0 : vector<1x16x16x4xbf16> to vector<256x4xbf16>
    %c0_3 = arith.constant 0 : index
    %c0_4 = arith.constant 0 : index
    %2 = vector.load %arg3[%c0_3, %c0_4] : memref<4x4xbf16, #tpu.memory_space<vmem>>, vector<4x4xbf16>
    %cst = arith.constant dense<0.000000e+00> : vector<256x4xf32>
    %3 = tpu.matmul %1, %2, %cst {dimension_numbers = #tpu.dot_dimension_numbers<[1], [0], [0], [1], [0, 0, 1, 1], [], []>} : vector<256x4xbf16>, vector<4x4xbf16>, vector<256x4xf32> -> vector<256x4xf32>
    %4 = arith.truncf %3 : vector<256x4xf32> to vector<256x4xbf16>
    %5 = vector.shape_cast %4 : vector<256x4xbf16> to vector<1x16x16x4xbf16>
    %c0_5 = arith.constant 0 : index
    %c0_6 = arith.constant 0 : index
    %c0_7 = arith.constant 0 : index
    %c0_8 = arith.constant 0 : index
    %6 = vector.load %arg4[%c0_5, %c0_6, %c0_7, %c0_8] : memref<1x16x16x4xbf16, #tpu.memory_space<vmem>>, vector<1x16x16x4xbf16>
    tpu.vector_store %arg4[%c0_5, %c0_6, %c0_7, %c0_8], %5 {strides = array<i32>} : memref<1x16x16x4xbf16, #tpu.memory_space<vmem>>, vector<1x16x16x4xbf16>,
    %7 = arith.extf %4 : vector<256x4xbf16> to vector<256x4xf32>
    %cst_9 = arith.constant dense<0.000000e+00> : vector<4xf32>
    %8 = vector.multi_reduction <add>, %7, %cst_9 [0] : vector<256x4xf32> to vector<4xf32>
    %9 = vector.shape_cast %8 : vector<4xf32> to vector<1x4xf32>
    %10 = vector.shape_cast %9 : vector<1x4xf32> to vector<1x1x1x4xf32>
    %c0_10 = arith.constant 0 : index
    %c0_11 = arith.constant 0 : index
    %c0_12 = arith.constant 0 : index
    %c0_13 = arith.constant 0 : index
    %11 = vector.load %arg5[%c0_10, %c0_11, %c0_12, %c0_13] : memref<1x1x1x4xf32, #tpu.memory_space<vmem>>, vector<1x1x1x4xf32>
    tpu.vector_store %arg5[%c0_10, %c0_11, %c0_12, %c0_13], %10 {strides = array<i32>} : memref<1x1x1x4xf32, #tpu.memory_space<vmem>>, vector<1x1x1x4xf32>,
    %12 = arith.mulf %7, %7 : vector<256x4xf32>
    %cst_14 = arith.constant dense<0.000000e+00> : vector<4xf32>
    %13 = vector.multi_reduction <add>, %12, %cst_14 [0] : vector<256x4xf32> to vector<4xf32>
    %14 = vector.shape_cast %13 : vector<4xf32> to vector<1x4xf32>
    %15 = vector.shape_cast %14 : vector<1x4xf32> to vector<1x1x1x4xf32>
    %c0_15 = arith.constant 0 : index
    %c0_16 = arith.constant 0 : index
    %c0_17 = arith.constant 0 : index
    %c0_18 = arith.constant 0 : index
    %16 = vector.load %arg6[%c0_15, %c0_16, %c0_17, %c0_18] : memref<1x1x1x4xf32, #tpu.memory_space<vmem>>, vector<1x1x1x4xf32>
    tpu.vector_store %arg6[%c0_15, %c0_16, %c0_17, %c0_18], %15 {strides = array<i32>} : memref<1x1x1x4xf32, #tpu.memory_space<vmem>>, vector<1x1x1x4xf32>,
    return
  }
  func.func @transform_0(%arg0: i32, %arg1: i32) -> (i32, i32, i32, i32) {
    %c0_i32 = arith.constant 0 : i32
    %c0_i32_0 = arith.constant 0 : i32
    %c0_i32_1 = arith.constant 0 : i32
    return %arg0, %arg1, %c0_i32, %c0_i32_0 : i32, i32, i32, i32
  }
  func.func @transform_1(%arg0: i32, %arg1: i32) -> (i32, i32) {
    %c0_i32 = arith.constant 0 : i32
    %c0_i32_0 = arith.constant 0 : i32
    %c0_i32_1 = arith.constant 0 : i32
    return %c0_i32, %c0_i32_0 : i32, i32
  }
  func.func @transform_2(%arg0: i32, %arg1: i32) -> (i32, i32, i32, i32) {
    %c0_i32 = arith.constant 0 : i32
    %c0_i32_0 = arith.constant 0 : i32
    %c0_i32_1 = arith.constant 0 : i32
    return %arg0, %arg1, %c0_i32, %c0_i32_0 : i32, i32, i32, i32
  }
  func.func @transform_3(%arg0: i32, %arg1: i32) -> (i32, i32, i32, i32) {
    %c0_i32 = arith.constant 0 : i32
    %c0_i32_0 = arith.constant 0 : i32
    %c0_i32_1 = arith.constant 0 : i32
    return %arg0, %arg1, %c0_i32, %c0_i32_0 : i32, i32, i32, i32
  }
  func.func @transform_4(%arg0: i32, %arg1: i32) -> (i32, i32, i32, i32) {
    %c0_i32 = arith.constant 0 : i32
    %c0_i32_0 = arith.constant 0 : i32
    %c0_i32_1 = arith.constant 0 : i32
    return %arg0, %arg1, %c0_i32, %c0_i32_0 : i32, i32, i32, i32
  }
}

module attributes {stable_mosaic.version = 11 : i64} {
  func.func @_pass3_kernel(%arg0: i32, %arg1: i32, %arg2: memref<1x16x16x4xbf16, #tpu.memory_space<vmem>>, %arg3: memref<1x16x16x4xbf16, #tpu.memory_space<vmem>>, %arg4: memref<1x4xf32, #tpu.memory_space<vmem>>, %arg5: memref<1x4xf32, #tpu.memory_space<vmem>>, %arg6: memref<4x16xbf16, #tpu.memory_space<vmem>>, %arg7: memref<4x16xbf16, #tpu.memory_space<vmem>>, %arg8: memref<1x16x16x16xf32, #tpu.memory_space<vmem>>) attributes {dimension_semantics = [#tpu.dimension_semantics<parallel>, #tpu.dimension_semantics<parallel>], iteration_bounds = array<i64: 2, 1>, scalar_prefetch = 0 : i64, scratch_operands = 0 : i64, tpu.core_type = #tpu.core_type<tc>, window_params = [{transform_indices = @transform_0, window_bounds = array<i64: 1, 16, 16, 4>}, {transform_indices = @transform_1, window_bounds = array<i64: 1, 16, 16, 4>}, {pipeline_mode = #tpu.pipeline_mode<synchronous>, transform_indices = @transform_2, window_bounds = array<i64: 1, 4>}, {pipeline_mode = #tpu.pipeline_mode<synchronous>, transform_indices = @transform_3, window_bounds = array<i64: 1, 4>}, {pipeline_mode = #tpu.pipeline_mode<synchronous>, transform_indices = @transform_4, window_bounds = array<i64: 4, 16>}, {pipeline_mode = #tpu.pipeline_mode<synchronous>, transform_indices = @transform_5, window_bounds = array<i64: 4, 16>}, {transform_indices = @transform_6, window_bounds = array<i64: 1, 16, 16, 16>}]} {
    %c0 = arith.constant 0 : index
    %c0_0 = arith.constant 0 : index
    %c0_1 = arith.constant 0 : index
    %c0_2 = arith.constant 0 : index
    %0 = vector.load %arg2[%c0, %c0_0, %c0_1, %c0_2] : memref<1x16x16x4xbf16, #tpu.memory_space<vmem>>, vector<1x16x16x4xbf16>
    %1 = vector.shape_cast %0 : vector<1x16x16x4xbf16> to vector<256x4xbf16>
    %c0_3 = arith.constant 0 : index
    %c0_4 = arith.constant 0 : index
    %2 = vector.load %arg4[%c0_3, %c0_4] : memref<1x4xf32, #tpu.memory_space<vmem>>, vector<1x4xf32>
    %3 = arith.extf %1 : vector<256x4xbf16> to vector<256x4xf32>
    %4 = vector.broadcast %2 : vector<1x4xf32> to vector<256x4xf32>
    %5 = arith.mulf %3, %4 : vector<256x4xf32>
    %c0_5 = arith.constant 0 : index
    %c0_6 = arith.constant 0 : index
    %6 = vector.load %arg5[%c0_5, %c0_6] : memref<1x4xf32, #tpu.memory_space<vmem>>, vector<1x4xf32>
    %7 = vector.broadcast %6 : vector<1x4xf32> to vector<256x4xf32>
    %8 = arith.addf %5, %7 : vector<256x4xf32>
    %cst = arith.constant 0.000000e+00 : f32
    %9 = vector.broadcast %cst : f32 to vector<256x4xf32>
    %10 = arith.maximumf %8, %9 : vector<256x4xf32>
    %11 = arith.truncf %10 : vector<256x4xf32> to vector<256x4xbf16>
    %c0_7 = arith.constant 0 : index
    %c0_8 = arith.constant 0 : index
    %12 = vector.load %arg6[%c0_7, %c0_8] : memref<4x16xbf16, #tpu.memory_space<vmem>>, vector<4x16xbf16>
    %cst_9 = arith.constant dense<0.000000e+00> : vector<256x16xf32>
    %13 = tpu.matmul %11, %12, %cst_9 {dimension_numbers = #tpu.dot_dimension_numbers<[1], [0], [0], [1], [0, 0, 1, 1], [], []>} : vector<256x4xbf16>, vector<4x16xbf16>, vector<256x16xf32> -> vector<256x16xf32>
    %c0_10 = arith.constant 0 : index
    %c0_11 = arith.constant 0 : index
    %c0_12 = arith.constant 0 : index
    %c0_13 = arith.constant 0 : index
    %14 = vector.load %arg3[%c0_10, %c0_11, %c0_12, %c0_13] : memref<1x16x16x4xbf16, #tpu.memory_space<vmem>>, vector<1x16x16x4xbf16>
    %15 = vector.shape_cast %14 : vector<1x16x16x4xbf16> to vector<256x4xbf16>
    %c0_14 = arith.constant 0 : index
    %c0_15 = arith.constant 0 : index
    %16 = vector.load %arg7[%c0_14, %c0_15] : memref<4x16xbf16, #tpu.memory_space<vmem>>, vector<4x16xbf16>
    %cst_16 = arith.constant dense<0.000000e+00> : vector<256x16xf32>
    %17 = tpu.matmul %15, %16, %cst_16 {dimension_numbers = #tpu.dot_dimension_numbers<[1], [0], [0], [1], [0, 0, 1, 1], [], []>} : vector<256x4xbf16>, vector<4x16xbf16>, vector<256x16xf32> -> vector<256x16xf32>
    %18 = arith.addf %13, %17 : vector<256x16xf32>
    %19 = vector.shape_cast %18 : vector<256x16xf32> to vector<1x16x16x16xf32>
    %c0_17 = arith.constant 0 : index
    %c0_18 = arith.constant 0 : index
    %c0_19 = arith.constant 0 : index
    %c0_20 = arith.constant 0 : index
    %20 = vector.load %arg8[%c0_17, %c0_18, %c0_19, %c0_20] : memref<1x16x16x16xf32, #tpu.memory_space<vmem>>, vector<1x16x16x16xf32>
    tpu.vector_store %arg8[%c0_17, %c0_18, %c0_19, %c0_20], %19 {strides = array<i32>} : memref<1x16x16x16xf32, #tpu.memory_space<vmem>>, vector<1x16x16x16xf32>,
    return
  }
  func.func @transform_0(%arg0: i32, %arg1: i32) -> (i32, i32, i32, i32) {
    %c0_i32 = arith.constant 0 : i32
    %c0_i32_0 = arith.constant 0 : i32
    %c0_i32_1 = arith.constant 0 : i32
    return %arg0, %arg1, %c0_i32, %c0_i32_0 : i32, i32, i32, i32
  }
  func.func @transform_1(%arg0: i32, %arg1: i32) -> (i32, i32, i32, i32) {
    %c0_i32 = arith.constant 0 : i32
    %c0_i32_0 = arith.constant 0 : i32
    %c0_i32_1 = arith.constant 0 : i32
    return %arg0, %arg1, %c0_i32, %c0_i32_0 : i32, i32, i32, i32
  }
  func.func @transform_2(%arg0: i32, %arg1: i32) -> (i32, i32) {
    %c0_i32 = arith.constant 0 : i32
    %c0_i32_0 = arith.constant 0 : i32
    %c0_i32_1 = arith.constant 0 : i32
    return %c0_i32, %c0_i32_0 : i32, i32
  }
  func.func @transform_3(%arg0: i32, %arg1: i32) -> (i32, i32) {
    %c0_i32 = arith.constant 0 : i32
    %c0_i32_0 = arith.constant 0 : i32
    %c0_i32_1 = arith.constant 0 : i32
    return %c0_i32, %c0_i32_0 : i32, i32
  }
  func.func @transform_4(%arg0: i32, %arg1: i32) -> (i32, i32) {
    %c0_i32 = arith.constant 0 : i32
    %c0_i32_0 = arith.constant 0 : i32
    %c0_i32_1 = arith.constant 0 : i32
    return %c0_i32, %c0_i32_0 : i32, i32
  }
  func.func @transform_5(%arg0: i32, %arg1: i32) -> (i32, i32) {
    %c0_i32 = arith.constant 0 : i32
    %c0_i32_0 = arith.constant 0 : i32
    %c0_i32_1 = arith.constant 0 : i32
    return %c0_i32, %c0_i32_0 : i32, i32
  }
  func.func @transform_6(%arg0: i32, %arg1: i32) -> (i32, i32, i32, i32) {
    %c0_i32 = arith.constant 0 : i32
    %c0_i32_0 = arith.constant 0 : i32
    %c0_i32_1 = arith.constant 0 : i32
    return %arg0, %arg1, %c0_i32, %c0_i32_0 : i32, i32, i32, i32
  }
}

module attributes {stable_mosaic.version = 11 : i64} {
  func.func @_pass2_kernel(%arg0: i32, %arg1: i32, %arg2: memref<1x16x16x4xbf16, #tpu.memory_space<vmem>>, %arg3: memref<1x1x16x4xbf16, #tpu.memory_space<vmem>>, %arg4: memref<1x1x16x4xbf16, #tpu.memory_space<vmem>>, %arg5: memref<1x4xf32, #tpu.memory_space<vmem>>, %arg6: memref<1x4xf32, #tpu.memory_space<vmem>>, %arg7: memref<9x4x4xbf16, #tpu.memory_space<vmem>>, %arg8: memref<1x16x16x4xbf16, #tpu.memory_space<vmem>>, %arg9: memref<1x1x1x4xf32, #tpu.memory_space<vmem>>, %arg10: memref<1x1x1x4xf32, #tpu.memory_space<vmem>>, %arg11: memref<304x4xbf16, #tpu.memory_space<vmem>>) attributes {dimension_semantics = [#tpu.dimension_semantics<parallel>, #tpu.dimension_semantics<parallel>], iteration_bounds = array<i64: 2, 1>, scalar_prefetch = 0 : i64, scratch_operands = 1 : i64, tpu.core_type = #tpu.core_type<tc>, window_params = [{transform_indices = @transform_0, window_bounds = array<i64: 1, 16, 16, 4>}, {transform_indices = @transform_1, window_bounds = array<i64: 1, 1, 16, 4>}, {transform_indices = @transform_2, window_bounds = array<i64: 1, 1, 16, 4>}, {pipeline_mode = #tpu.pipeline_mode<synchronous>, transform_indices = @transform_3, window_bounds = array<i64: 1, 4>}, {pipeline_mode = #tpu.pipeline_mode<synchronous>, transform_indices = @transform_4, window_bounds = array<i64: 1, 4>}, {pipeline_mode = #tpu.pipeline_mode<synchronous>, transform_indices = @transform_5, window_bounds = array<i64: 9, 4, 4>}, {transform_indices = @transform_6, window_bounds = array<i64: 1, 16, 16, 4>}, {transform_indices = @transform_7, window_bounds = array<i64: 1, 1, 1, 4>}, {transform_indices = @transform_8, window_bounds = array<i64: 1, 1, 1, 4>}]} {
    %c0 = arith.constant 0 : index
    %c0_0 = arith.constant 0 : index
    %0 = vector.load %arg5[%c0, %c0_0] : memref<1x4xf32, #tpu.memory_space<vmem>>, vector<1x4xf32>
    %c0_1 = arith.constant 0 : index
    %c0_2 = arith.constant 0 : index
    %1 = vector.load %arg6[%c0_1, %c0_2] : memref<1x4xf32, #tpu.memory_space<vmem>>, vector<1x4xf32>
    %cst = arith.constant 0.000000e+00 : bf16
    %2 = vector.broadcast %cst : bf16 to vector<8x4xbf16>
    %c0_3 = arith.constant 0 : index
    %c0_4 = arith.constant 0 : index
    %3 = vector.load %arg11[%c0_3, %c0_4] : memref<304x4xbf16, #tpu.memory_space<vmem>>, vector<8x4xbf16>
    tpu.vector_store %arg11[%c0_3, %c0_4], %2 {strides = array<i32>} : memref<304x4xbf16, #tpu.memory_space<vmem>>, vector<8x4xbf16>,
    %c296 = arith.constant 296 : index
    %c0_5 = arith.constant 0 : index
    %4 = vector.load %arg11[%c296, %c0_5] : memref<304x4xbf16, #tpu.memory_space<vmem>>, vector<8x4xbf16>
    tpu.vector_store %arg11[%c296, %c0_5], %2 {strides = array<i32>} : memref<304x4xbf16, #tpu.memory_space<vmem>>, vector<8x4xbf16>,
    %c0_i32 = arith.constant 0 : i32
    %5 = arith.cmpi sgt, %arg1, %c0_i32 : i32
    %6 = arith.extui %5 : i1 to i32
    %7 = arith.sitofp %6 : i32 to f32
    %8 = arith.truncf %7 : f32 to bf16
    %c0_i32_6 = arith.constant 0 : i32
    %9 = arith.cmpi slt, %arg1, %c0_i32_6 : i32
    %10 = arith.extui %9 : i1 to i32
    %11 = arith.sitofp %10 : i32 to f32
    %12 = arith.truncf %11 : f32 to bf16
    %c0_7 = arith.constant 0 : index
    %c0_8 = arith.constant 0 : index
    %c0_9 = arith.constant 0 : index
    %c0_10 = arith.constant 0 : index
    %13 = vector.load %arg3[%c0_7, %c0_8, %c0_9, %c0_10] : memref<1x1x16x4xbf16, #tpu.memory_space<vmem>>, vector<1x1x16x4xbf16>
    %14 = vector.shape_cast %13 : vector<1x1x16x4xbf16> to vector<16x4xbf16>
    %15 = arith.extf %14 : vector<16x4xbf16> to vector<16x4xf32>
    %16 = vector.broadcast %0 : vector<1x4xf32> to vector<16x4xf32>
    %17 = arith.mulf %15, %16 : vector<16x4xf32>
    %18 = vector.broadcast %1 : vector<1x4xf32> to vector<16x4xf32>
    %19 = arith.addf %17, %18 : vector<16x4xf32>
    %cst_11 = arith.constant 0.000000e+00 : f32
    %20 = vector.broadcast %cst_11 : f32 to vector<16x4xf32>
    %21 = arith.maximumf %19, %20 : vector<16x4xf32>
    %22 = arith.truncf %21 : vector<16x4xf32> to vector<16x4xbf16>
    %23 = vector.broadcast %8 : bf16 to vector<16x4xbf16>
    %24 = arith.mulf %22, %23 : vector<16x4xbf16>
    %c8 = arith.constant 8 : index
    %c0_12 = arith.constant 0 : index
    %25 = vector.load %arg11[%c8, %c0_12] : memref<304x4xbf16, #tpu.memory_space<vmem>>, vector<16x4xbf16>
    tpu.vector_store %arg11[%c8, %c0_12], %24 {strides = array<i32>} : memref<304x4xbf16, #tpu.memory_space<vmem>>, vector<16x4xbf16>,
    %c0_13 = arith.constant 0 : index
    %c0_14 = arith.constant 0 : index
    %c0_15 = arith.constant 0 : index
    %c0_16 = arith.constant 0 : index
    %26 = vector.load %arg2[%c0_13, %c0_14, %c0_15, %c0_16] : memref<1x16x16x4xbf16, #tpu.memory_space<vmem>>, vector<1x16x16x4xbf16>
    %27 = vector.shape_cast %26 : vector<1x16x16x4xbf16> to vector<256x4xbf16>
    %28 = arith.extf %27 : vector<256x4xbf16> to vector<256x4xf32>
    %29 = vector.broadcast %0 : vector<1x4xf32> to vector<256x4xf32>
    %30 = arith.mulf %28, %29 : vector<256x4xf32>
    %31 = vector.broadcast %1 : vector<1x4xf32> to vector<256x4xf32>
    %32 = arith.addf %30, %31 : vector<256x4xf32>
    %cst_17 = arith.constant 0.000000e+00 : f32
    %33 = vector.broadcast %cst_17 : f32 to vector<256x4xf32>
    %34 = arith.maximumf %32, %33 : vector<256x4xf32>
    %35 = arith.truncf %34 : vector<256x4xf32> to vector<256x4xbf16>
    %c24 = arith.constant 24 : index
    %c0_18 = arith.constant 0 : index
    %36 = vector.load %arg11[%c24, %c0_18] : memref<304x4xbf16, #tpu.memory_space<vmem>>, vector<256x4xbf16>
    tpu.vector_store %arg11[%c24, %c0_18], %35 {strides = array<i32>} : memref<304x4xbf16, #tpu.memory_space<vmem>>, vector<256x4xbf16>,
    %c0_19 = arith.constant 0 : index
    %c0_20 = arith.constant 0 : index
    %c0_21 = arith.constant 0 : index
    %c0_22 = arith.constant 0 : index
    %37 = vector.load %arg4[%c0_19, %c0_20, %c0_21, %c0_22] : memref<1x1x16x4xbf16, #tpu.memory_space<vmem>>, vector<1x1x16x4xbf16>
    %38 = vector.shape_cast %37 : vector<1x1x16x4xbf16> to vector<16x4xbf16>
    %39 = arith.extf %38 : vector<16x4xbf16> to vector<16x4xf32>
    %40 = vector.broadcast %0 : vector<1x4xf32> to vector<16x4xf32>
    %41 = arith.mulf %39, %40 : vector<16x4xf32>
    %42 = vector.broadcast %1 : vector<1x4xf32> to vector<16x4xf32>
    %43 = arith.addf %41, %42 : vector<16x4xf32>
    %cst_23 = arith.constant 0.000000e+00 : f32
    %44 = vector.broadcast %cst_23 : f32 to vector<16x4xf32>
    %45 = arith.maximumf %43, %44 : vector<16x4xf32>
    %46 = arith.truncf %45 : vector<16x4xf32> to vector<16x4xbf16>
    %47 = vector.broadcast %12 : bf16 to vector<16x4xbf16>
    %48 = arith.mulf %46, %47 : vector<16x4xbf16>
    %c280 = arith.constant 280 : index
    %c0_24 = arith.constant 0 : index
    %49 = vector.load %arg11[%c280, %c0_24] : memref<304x4xbf16, #tpu.memory_space<vmem>>, vector<16x4xbf16>
    tpu.vector_store %arg11[%c280, %c0_24], %48 {strides = array<i32>} : memref<304x4xbf16, #tpu.memory_space<vmem>>, vector<16x4xbf16>,
    %50 = tpu.iota {dimensions = array<i32: 0>} : vector<256x1xi32>
    %c16_i32 = arith.constant 16 : i32
    %c0_i32_25 = arith.constant 0 : i32
    %51 = arith.cmpi eq, %c16_i32, %c0_i32_25 : i32
    %c1_i32 = arith.constant 1 : i32
    %52 = arith.select %51, %c1_i32, %c16_i32 : i32
    %53 = vector.broadcast %52 : i32 to vector<256x1xi32>
    %54 = arith.remsi %50, %53 : vector<256x1xi32>
    %c0_i32_26 = arith.constant 0 : i32
    %55 = vector.broadcast %c0_i32_26 : i32 to vector<256x1xi32>
    %56 = arith.cmpi ne, %54, %55 : vector<256x1xi32>
    %c0_i32_27 = arith.constant 0 : i32
    %57 = vector.broadcast %c0_i32_27 : i32 to vector<256x1xi32>
    %58 = arith.cmpi slt, %54, %57 : vector<256x1xi32>
    %c0_i32_28 = arith.constant 0 : i32
    %59 = arith.cmpi slt, %52, %c0_i32_28 : i32
    %60 = vector.broadcast %59 : i1 to vector<256x1xi1>
    %61 = vector.broadcast %60 : vector<256x1xi1> to vector<256x1xi1>
    %62 = arith.xori %58, %61 : vector<256x1xi1>
    %63 = arith.andi %62, %56 : vector<256x1xi1>
    %64 = vector.broadcast %52 : i32 to vector<256x1xi32>
    %65 = arith.addi %54, %64 : vector<256x1xi32>
    %66 = arith.select %63, %65, %54 : vector<256x1xi1>, vector<256x1xi32>
    %c0_i32_29 = arith.constant 0 : i32
    %67 = vector.broadcast %c0_i32_29 : i32 to vector<256x1xi32>
    %68 = arith.cmpi sgt, %66, %67 : vector<256x1xi32>
    %69 = arith.extui %68 : vector<256x1xi1> to vector<256x1xi32>
    %70 = arith.sitofp %69 : vector<256x1xi32> to vector<256x1xf32>
    %71 = arith.truncf %70 : vector<256x1xf32> to vector<256x1xbf16>
    %c15_i32 = arith.constant 15 : i32
    %72 = vector.broadcast %c15_i32 : i32 to vector<256x1xi32>
    %73 = arith.cmpi slt, %66, %72 : vector<256x1xi32>
    %74 = arith.extui %73 : vector<256x1xi1> to vector<256x1xi32>
    %75 = arith.sitofp %74 : vector<256x1xi32> to vector<256x1xf32>
    %76 = arith.truncf %75 : vector<256x1xf32> to vector<256x1xbf16>
    %c7 = arith.constant 7 : index
    %c0_30 = arith.constant 0 : index
    %77 = vector.load %arg11[%c7, %c0_30] : memref<304x4xbf16, #tpu.memory_space<vmem>>, vector<256x4xbf16>
    %78 = vector.broadcast %71 : vector<256x1xbf16> to vector<256x4xbf16>
    %79 = arith.mulf %77, %78 : vector<256x4xbf16>
    %c0_31 = arith.constant 0 : index
    %c0_32 = arith.constant 0 : index
    %c0_33 = arith.constant 0 : index
    %80 = vector.load %arg7[%c0_31, %c0_32, %c0_33] : memref<9x4x4xbf16, #tpu.memory_space<vmem>>, vector<1x4x4xbf16>
    %81 = vector.shape_cast %80 : vector<1x4x4xbf16> to vector<4x4xbf16>
    %cst_34 = arith.constant dense<0.000000e+00> : vector<256x4xf32>
    %82 = tpu.matmul %79, %81, %cst_34 {dimension_numbers = #tpu.dot_dimension_numbers<[1], [0], [0], [1], [0, 0, 1, 1], [], []>} : vector<256x4xbf16>, vector<4x4xbf16>, vector<256x4xf32> -> vector<256x4xf32>
    %c8_35 = arith.constant 8 : index
    %c0_36 = arith.constant 0 : index
    %83 = vector.load %arg11[%c8_35, %c0_36] : memref<304x4xbf16, #tpu.memory_space<vmem>>, vector<256x4xbf16>
    %c1 = arith.constant 1 : index
    %c0_37 = arith.constant 0 : index
    %c0_38 = arith.constant 0 : index
    %84 = vector.load %arg7[%c1, %c0_37, %c0_38] : memref<9x4x4xbf16, #tpu.memory_space<vmem>>, vector<1x4x4xbf16>
    %85 = vector.shape_cast %84 : vector<1x4x4xbf16> to vector<4x4xbf16>
    %cst_39 = arith.constant dense<0.000000e+00> : vector<256x4xf32>
    %86 = tpu.matmul %83, %85, %cst_39 {dimension_numbers = #tpu.dot_dimension_numbers<[1], [0], [0], [1], [0, 0, 1, 1], [], []>} : vector<256x4xbf16>, vector<4x4xbf16>, vector<256x4xf32> -> vector<256x4xf32>
    %87 = arith.addf %82, %86 : vector<256x4xf32>
    %c9 = arith.constant 9 : index
    %c0_40 = arith.constant 0 : index
    %88 = vector.load %arg11[%c9, %c0_40] : memref<304x4xbf16, #tpu.memory_space<vmem>>, vector<256x4xbf16>
    %89 = vector.broadcast %76 : vector<256x1xbf16> to vector<256x4xbf16>
    %90 = arith.mulf %88, %89 : vector<256x4xbf16>
    %c2 = arith.constant 2 : index
    %c0_41 = arith.constant 0 : index
    %c0_42 = arith.constant 0 : index
    %91 = vector.load %arg7[%c2, %c0_41, %c0_42] : memref<9x4x4xbf16, #tpu.memory_space<vmem>>, vector<1x4x4xbf16>
    %92 = vector.shape_cast %91 : vector<1x4x4xbf16> to vector<4x4xbf16>
    %cst_43 = arith.constant dense<0.000000e+00> : vector<256x4xf32>
    %93 = tpu.matmul %90, %92, %cst_43 {dimension_numbers = #tpu.dot_dimension_numbers<[1], [0], [0], [1], [0, 0, 1, 1], [], []>} : vector<256x4xbf16>, vector<4x4xbf16>, vector<256x4xf32> -> vector<256x4xf32>
    %94 = arith.addf %87, %93 : vector<256x4xf32>
    %c23 = arith.constant 23 : index
    %c0_44 = arith.constant 0 : index
    %95 = vector.load %arg11[%c23, %c0_44] : memref<304x4xbf16, #tpu.memory_space<vmem>>, vector<256x4xbf16>
    %96 = vector.broadcast %71 : vector<256x1xbf16> to vector<256x4xbf16>
    %97 = arith.mulf %95, %96 : vector<256x4xbf16>
    %c3 = arith.constant 3 : index
    %c0_45 = arith.constant 0 : index
    %c0_46 = arith.constant 0 : index
    %98 = vector.load %arg7[%c3, %c0_45, %c0_46] : memref<9x4x4xbf16, #tpu.memory_space<vmem>>, vector<1x4x4xbf16>
    %99 = vector.shape_cast %98 : vector<1x4x4xbf16> to vector<4x4xbf16>
    %cst_47 = arith.constant dense<0.000000e+00> : vector<256x4xf32>
    %100 = tpu.matmul %97, %99, %cst_47 {dimension_numbers = #tpu.dot_dimension_numbers<[1], [0], [0], [1], [0, 0, 1, 1], [], []>} : vector<256x4xbf16>, vector<4x4xbf16>, vector<256x4xf32> -> vector<256x4xf32>
    %c24_48 = arith.constant 24 : index
    %c0_49 = arith.constant 0 : index
    %101 = vector.load %arg11[%c24_48, %c0_49] : memref<304x4xbf16, #tpu.memory_space<vmem>>, vector<256x4xbf16>
    %c4 = arith.constant 4 : index
    %c0_50 = arith.constant 0 : index
    %c0_51 = arith.constant 0 : index
    %102 = vector.load %arg7[%c4, %c0_50, %c0_51] : memref<9x4x4xbf16, #tpu.memory_space<vmem>>, vector<1x4x4xbf16>
    %103 = vector.shape_cast %102 : vector<1x4x4xbf16> to vector<4x4xbf16>
    %cst_52 = arith.constant dense<0.000000e+00> : vector<256x4xf32>
    %104 = tpu.matmul %101, %103, %cst_52 {dimension_numbers = #tpu.dot_dimension_numbers<[1], [0], [0], [1], [0, 0, 1, 1], [], []>} : vector<256x4xbf16>, vector<4x4xbf16>, vector<256x4xf32> -> vector<256x4xf32>
    %105 = arith.addf %100, %104 : vector<256x4xf32>
    %c25 = arith.constant 25 : index
    %c0_53 = arith.constant 0 : index
    %106 = vector.load %arg11[%c25, %c0_53] : memref<304x4xbf16, #tpu.memory_space<vmem>>, vector<256x4xbf16>
    %107 = vector.broadcast %76 : vector<256x1xbf16> to vector<256x4xbf16>
    %108 = arith.mulf %106, %107 : vector<256x4xbf16>
    %c5 = arith.constant 5 : index
    %c0_54 = arith.constant 0 : index
    %c0_55 = arith.constant 0 : index
    %109 = vector.load %arg7[%c5, %c0_54, %c0_55] : memref<9x4x4xbf16, #tpu.memory_space<vmem>>, vector<1x4x4xbf16>
    %110 = vector.shape_cast %109 : vector<1x4x4xbf16> to vector<4x4xbf16>
    %cst_56 = arith.constant dense<0.000000e+00> : vector<256x4xf32>
    %111 = tpu.matmul %108, %110, %cst_56 {dimension_numbers = #tpu.dot_dimension_numbers<[1], [0], [0], [1], [0, 0, 1, 1], [], []>} : vector<256x4xbf16>, vector<4x4xbf16>, vector<256x4xf32> -> vector<256x4xf32>
    %112 = arith.addf %105, %111 : vector<256x4xf32>
    %c39 = arith.constant 39 : index
    %c0_57 = arith.constant 0 : index
    %113 = vector.load %arg11[%c39, %c0_57] : memref<304x4xbf16, #tpu.memory_space<vmem>>, vector<256x4xbf16>
    %114 = vector.broadcast %71 : vector<256x1xbf16> to vector<256x4xbf16>
    %115 = arith.mulf %113, %114 : vector<256x4xbf16>
    %c6 = arith.constant 6 : index
    %c0_58 = arith.constant 0 : index
    %c0_59 = arith.constant 0 : index
    %116 = vector.load %arg7[%c6, %c0_58, %c0_59] : memref<9x4x4xbf16, #tpu.memory_space<vmem>>, vector<1x4x4xbf16>
    %117 = vector.shape_cast %116 : vector<1x4x4xbf16> to vector<4x4xbf16>
    %cst_60 = arith.constant dense<0.000000e+00> : vector<256x4xf32>
    %118 = tpu.matmul %115, %117, %cst_60 {dimension_numbers = #tpu.dot_dimension_numbers<[1], [0], [0], [1], [0, 0, 1, 1], [], []>} : vector<256x4xbf16>, vector<4x4xbf16>, vector<256x4xf32> -> vector<256x4xf32>
    %c40 = arith.constant 40 : index
    %c0_61 = arith.constant 0 : index
    %119 = vector.load %arg11[%c40, %c0_61] : memref<304x4xbf16, #tpu.memory_space<vmem>>, vector<256x4xbf16>
    %c7_62 = arith.constant 7 : index
    %c0_63 = arith.constant 0 : index
    %c0_64 = arith.constant 0 : index
    %120 = vector.load %arg7[%c7_62, %c0_63, %c0_64] : memref<9x4x4xbf16, #tpu.memory_space<vmem>>, vector<1x4x4xbf16>
    %121 = vector.shape_cast %120 : vector<1x4x4xbf16> to vector<4x4xbf16>
    %cst_65 = arith.constant dense<0.000000e+00> : vector<256x4xf32>
    %122 = tpu.matmul %119, %121, %cst_65 {dimension_numbers = #tpu.dot_dimension_numbers<[1], [0], [0], [1], [0, 0, 1, 1], [], []>} : vector<256x4xbf16>, vector<4x4xbf16>, vector<256x4xf32> -> vector<256x4xf32>
    %123 = arith.addf %118, %122 : vector<256x4xf32>
    %c41 = arith.constant 41 : index
    %c0_66 = arith.constant 0 : index
    %124 = vector.load %arg11[%c41, %c0_66] : memref<304x4xbf16, #tpu.memory_space<vmem>>, vector<256x4xbf16>
    %125 = vector.broadcast %76 : vector<256x1xbf16> to vector<256x4xbf16>
    %126 = arith.mulf %124, %125 : vector<256x4xbf16>
    %c8_67 = arith.constant 8 : index
    %c0_68 = arith.constant 0 : index
    %c0_69 = arith.constant 0 : index
    %127 = vector.load %arg7[%c8_67, %c0_68, %c0_69] : memref<9x4x4xbf16, #tpu.memory_space<vmem>>, vector<1x4x4xbf16>
    %128 = vector.shape_cast %127 : vector<1x4x4xbf16> to vector<4x4xbf16>
    %cst_70 = arith.constant dense<0.000000e+00> : vector<256x4xf32>
    %129 = tpu.matmul %126, %128, %cst_70 {dimension_numbers = #tpu.dot_dimension_numbers<[1], [0], [0], [1], [0, 0, 1, 1], [], []>} : vector<256x4xbf16>, vector<4x4xbf16>, vector<256x4xf32> -> vector<256x4xf32>
    %130 = arith.addf %123, %129 : vector<256x4xf32>
    %131 = arith.addf %112, %130 : vector<256x4xf32>
    %132 = arith.addf %94, %131 : vector<256x4xf32>
    %133 = arith.truncf %132 : vector<256x4xf32> to vector<256x4xbf16>
    %134 = vector.shape_cast %133 : vector<256x4xbf16> to vector<1x16x16x4xbf16>
    %c0_71 = arith.constant 0 : index
    %c0_72 = arith.constant 0 : index
    %c0_73 = arith.constant 0 : index
    %c0_74 = arith.constant 0 : index
    %135 = vector.load %arg8[%c0_71, %c0_72, %c0_73, %c0_74] : memref<1x16x16x4xbf16, #tpu.memory_space<vmem>>, vector<1x16x16x4xbf16>
    tpu.vector_store %arg8[%c0_71, %c0_72, %c0_73, %c0_74], %134 {strides = array<i32>} : memref<1x16x16x4xbf16, #tpu.memory_space<vmem>>, vector<1x16x16x4xbf16>,
    %136 = arith.extf %133 : vector<256x4xbf16> to vector<256x4xf32>
    %cst_75 = arith.constant dense<0.000000e+00> : vector<4xf32>
    %137 = vector.multi_reduction <add>, %136, %cst_75 [0] : vector<256x4xf32> to vector<4xf32>
    %138 = vector.shape_cast %137 : vector<4xf32> to vector<1x4xf32>
    %139 = vector.shape_cast %138 : vector<1x4xf32> to vector<1x1x1x4xf32>
    %c0_76 = arith.constant 0 : index
    %c0_77 = arith.constant 0 : index
    %c0_78 = arith.constant 0 : index
    %c0_79 = arith.constant 0 : index
    %140 = vector.load %arg9[%c0_76, %c0_77, %c0_78, %c0_79] : memref<1x1x1x4xf32, #tpu.memory_space<vmem>>, vector<1x1x1x4xf32>
    tpu.vector_store %arg9[%c0_76, %c0_77, %c0_78, %c0_79], %139 {strides = array<i32>} : memref<1x1x1x4xf32, #tpu.memory_space<vmem>>, vector<1x1x1x4xf32>,
    %141 = arith.mulf %136, %136 : vector<256x4xf32>
    %cst_80 = arith.constant dense<0.000000e+00> : vector<4xf32>
    %142 = vector.multi_reduction <add>, %141, %cst_80 [0] : vector<256x4xf32> to vector<4xf32>
    %143 = vector.shape_cast %142 : vector<4xf32> to vector<1x4xf32>
    %144 = vector.shape_cast %143 : vector<1x4xf32> to vector<1x1x1x4xf32>
    %c0_81 = arith.constant 0 : index
    %c0_82 = arith.constant 0 : index
    %c0_83 = arith.constant 0 : index
    %c0_84 = arith.constant 0 : index
    %145 = vector.load %arg10[%c0_81, %c0_82, %c0_83, %c0_84] : memref<1x1x1x4xf32, #tpu.memory_space<vmem>>, vector<1x1x1x4xf32>
    tpu.vector_store %arg10[%c0_81, %c0_82, %c0_83, %c0_84], %144 {strides = array<i32>} : memref<1x1x1x4xf32, #tpu.memory_space<vmem>>, vector<1x1x1x4xf32>,
    return
  }
  func.func @transform_0(%arg0: i32, %arg1: i32) -> (i32, i32, i32, i32) {
    %c0_i32 = arith.constant 0 : i32
    %c0_i32_0 = arith.constant 0 : i32
    %c0_i32_1 = arith.constant 0 : i32
    return %arg0, %arg1, %c0_i32, %c0_i32_0 : i32, i32, i32, i32
  }
  func.func @transform_1(%arg0: i32, %arg1: i32) -> (i32, i32, i32, i32) {
    %c16_i32 = arith.constant 16 : i32
    %0 = arith.muli %arg1, %c16_i32 : i32
    %c1_i32 = arith.constant 1 : i32
    %1 = arith.subi %0, %c1_i32 : i32
    %c0_i32 = arith.constant 0 : i32
    %2 = arith.maxsi %1, %c0_i32 : i32
    %c0_i32_0 = arith.constant 0 : i32
    %c0_i32_1 = arith.constant 0 : i32
    %c0_i32_2 = arith.constant 0 : i32
    return %arg0, %2, %c0_i32_0, %c0_i32_1 : i32, i32, i32, i32
  }
  func.func @transform_2(%arg0: i32, %arg1: i32) -> (i32, i32, i32, i32) {
    %c16_i32 = arith.constant 16 : i32
    %0 = arith.muli %arg1, %c16_i32 : i32
    %c16_i32_0 = arith.constant 16 : i32
    %1 = arith.addi %0, %c16_i32_0 : i32
    %c15_i32 = arith.constant 15 : i32
    %2 = arith.minsi %1, %c15_i32 : i32
    %c0_i32 = arith.constant 0 : i32
    %c0_i32_1 = arith.constant 0 : i32
    %c0_i32_2 = arith.constant 0 : i32
    return %arg0, %2, %c0_i32, %c0_i32_1 : i32, i32, i32, i32
  }
  func.func @transform_3(%arg0: i32, %arg1: i32) -> (i32, i32) {
    %c0_i32 = arith.constant 0 : i32
    %c0_i32_0 = arith.constant 0 : i32
    %c0_i32_1 = arith.constant 0 : i32
    return %c0_i32, %c0_i32_0 : i32, i32
  }
  func.func @transform_4(%arg0: i32, %arg1: i32) -> (i32, i32) {
    %c0_i32 = arith.constant 0 : i32
    %c0_i32_0 = arith.constant 0 : i32
    %c0_i32_1 = arith.constant 0 : i32
    return %c0_i32, %c0_i32_0 : i32, i32
  }
  func.func @transform_5(%arg0: i32, %arg1: i32) -> (i32, i32, i32) {
    %c0_i32 = arith.constant 0 : i32
    %c0_i32_0 = arith.constant 0 : i32
    %c0_i32_1 = arith.constant 0 : i32
    %c0_i32_2 = arith.constant 0 : i32
    return %c0_i32, %c0_i32_0, %c0_i32_1 : i32, i32, i32
  }
  func.func @transform_6(%arg0: i32, %arg1: i32) -> (i32, i32, i32, i32) {
    %c0_i32 = arith.constant 0 : i32
    %c0_i32_0 = arith.constant 0 : i32
    %c0_i32_1 = arith.constant 0 : i32
    return %arg0, %arg1, %c0_i32, %c0_i32_0 : i32, i32, i32, i32
  }
  func.func @transform_7(%arg0: i32, %arg1: i32) -> (i32, i32, i32, i32) {
    %c0_i32 = arith.constant 0 : i32
    %c0_i32_0 = arith.constant 0 : i32
    %c0_i32_1 = arith.constant 0 : i32
    return %arg0, %arg1, %c0_i32, %c0_i32_0 : i32, i32, i32, i32
  }
  func.func @transform_8(%arg0: i32, %arg1: i32) -> (i32, i32, i32, i32) {
    %c0_i32 = arith.constant 0 : i32
    %c0_i32_0 = arith.constant 0 : i32
    %c0_i32_1 = arith.constant 0 : i32
    return %arg0, %arg1, %c0_i32, %c0_i32_0 : i32, i32, i32, i32
  }
}

</mosaic_0001>

<bundles_post_ra>
// kernel: input_bottleneck_block.3
= control target key start
LH: loop header
LB: loop body
LE: loop exit
PB: predicated region body
PF: predicated region fallthrough
CT: control target
= control target key end

     0   :  { %s1152_s15 = smov 0   ;;  %s1154_s16 = smov 0   ;;  %s1441_s0 = inlined_call_operand.vmem [shape: bf16[2,16,16,4], index: 0, kind: input, shape index: {}]   ;;  %s1442_s1 = inlined_call_operand.vmem [shape: bf16[4,4], index: 1, kind: input, shape index: {}]   ;;  %s1443_s2 = inlined_call_operand.vmem [shape: bf16[2,16,16,4], index: 2, kind: output, shape index: {0}]   ;;  %s1444_s3 = inlined_call_operand.vmem [shape: f32[2,1,1,4], index: 3, kind: output, shape index: {1}]   ;;  %s1445_s4 = inlined_call_operand.vmem [shape: f32[2,1,1,4], index: 4, kind: output, shape index: {2}]  }
   0x1   :  { %s1156_s17 = smov 0  }
   0x2 LB: > { %s27_s18 = sadd.s32 1, %s1121_s16  ;;  %p971_p0 = scmp.ge.s32.totalorder %s1125_s17, 1  ;;  %s1125_s17 = sphi %s1156_s17, %s15_s17   ;;  %s1121_s16 = sphi %s1154_s16, %s1447_s16   ;;  %s1117_s15 = sphi %s1152_s15, %s1446_s15  }
   0x3   : > { %p29_p1 = scmp.ge.s32.totalorder %s27_s18, 2  ;;  %p193_p2 = scmp.lt.s32.totalorder %s1125_s17, 3 }
   0x5   : > { %s1449_s18 = smov (%p29_p1, %s27_s18), 0  ;;  %p194_p3 = pnand %p971_p0, %p193_p2 }
   0x6   : > { %p242_p4 = scmp.lt.s32.totalorder (!%p194_p3), %s1117_s15, 1 }
   0x7   : > { %197 = sbr.rel (%p194_p3) target bundleno = 269 (0x10d), region = 28 }
   0xc   : > { %v308_v0 = vld [vmem:[%s1442_s1] sm:$0x3]  ;;  %vm438_vm0 = vcmask 1041408   ;;  %s1451_s15 = smov (!%p242_p4, %s1117_s15), 1  ;;  %vm389_vm1 = vcmask 31744   ;;  %vm563_vm2 = vcmask 27648  }
   0xd   : > { %v440_v1 = vsel %vm438_vm0, %v308_v0, 0  ;;  %s1058_s21 = sshll.u32 %s1451_s15, 7  ;;  %s268_s30 = scalar_lea.vmem %s1444_s3, %s1451_s15  ;;  %vm697_vm3 = vcmask 24576  }
   0xe   : > { %449 = vmatpush.bf16.msra.mxu0 %v440_v1  ;;  %1076 = vmatpush.bf16.msra.mxu1 %v440_v1  ;;  %s250_s24 = scalar_lea.vmem %s1441_s0, %s1058_s21  ;;  %s1202_s27 = scalar_lea.vmem %s1443_s2, %s1058_s21 }
   0xf   : > { %1077 = vmatpush.bf16.msra.mxu2 %v440_v1  ;;  %1078 = vmatpush.bf16.msra.mxu3 %v440_v1  ;;  %v1060_v2 = vld [vmem:[%s250_s24] sm:$0xff]  ;;  %v1061_v6 = vld [vmem:[%s250_s24 + $0x8] sm:$0xff]  ;;  %v1062_v10 = vld [vmem:[%s250_s24 + $0x10] sm:$0xff]  ;;  %s274_s7 = scalar_lea.vmem %s1445_s4, %s1451_s15 }
  0x10   : > { %v1064_v3 = vld [vmem:[%s250_s24 + $0x20] sm:$0xff]  ;;  %v1065_v7 = vld [vmem:[%s250_s24 + $0x28] sm:$0xff]  ;;  %v1066_v11 = vld [vmem:[%s250_s24 + $0x30] sm:$0xff] }
  0x11   : > { %v1068_v4 = vld [vmem:[%s250_s24 + $0x40] sm:$0xff]  ;;  %1040 = vmatmul.msk.bf16.vlgmr.msra.gmra.mxu0 %vm389_vm1, %v1060_v2  ;;  %1044 = vmatmul.msk.bf16.vlgmr.msra.gmra.mxu1 %vm389_vm1, %v1064_v3  ;;  %v1069_v8 = vld [vmem:[%s250_s24 + $0x48] sm:$0xff]  ;;  %v1070_v12 = vld [vmem:[%s250_s24 + $0x50] sm:$0xff] }
  0x12   : > { %v1072_v5 = vld [vmem:[%s250_s24 + $0x60] sm:$0xff]  ;;  %1048 = vmatmul.msk.bf16.vlgmr.msra.gmra.mxu2 %vm389_vm1, %v1068_v4  ;;  %v1073_v9 = vld [vmem:[%s250_s24 + $0x68] sm:$0xff]  ;;  %v1074_v13 = vld [vmem:[%s250_s24 + $0x70] sm:$0xff] }
  0x13   : > { %1052 = vmatmul.msk.bf16.vlgmr.msra.gmra.mxu3 %vm389_vm1, %v1072_v5  ;;  %v1063_v14 = vld [vmem:[%s250_s24 + $0x18] sm:$0xff] }
  0x14   : > { %v1067_v15 = vld [vmem:[%s250_s24 + $0x38] sm:$0xff] }
  0x15   : > { %v1071_v16 = vld [vmem:[%s250_s24 + $0x58] sm:$0xff] }
  0x16   : > { %v1075_v17 = vld [vmem:[%s250_s24 + $0x78] sm:$0xff] }
  0x21   : > { %1041 = vmatmul.msk.bf16.gmra.mxu0 %vm389_vm1, %v1061_v6  ;;  %1045 = vmatmul.msk.bf16.gmra.mxu1 %vm389_vm1, %v1065_v7 }
  0x22   : > { %1049 = vmatmul.msk.bf16.gmra.mxu2 %vm389_vm1, %v1069_v8 }
  0x23   : > { %1053 = vmatmul.msk.bf16.gmra.mxu3 %vm389_vm1, %v1073_v9 }
  0x31   : > { %1042 = vmatmul.msk.bf16.gmra.mxu0 %vm389_vm1, %v1062_v10  ;;  %1046 = vmatmul.msk.bf16.gmra.mxu1 %vm389_vm1, %v1066_v11 }
  0x32   : > { %1050 = vmatmul.msk.bf16.gmra.mxu2 %vm389_vm1, %v1070_v12 }
  0x33   : > { %1054 = vmatmul.msk.bf16.gmra.mxu3 %vm389_vm1, %v1074_v13 }
  0x41   : > { %1043 = vmatmul.msk.bf16.gmra.mxu0 %vm389_vm1, %v1063_v14  ;;  %1047 = vmatmul.msk.bf16.gmra.mxu1 %vm389_vm1, %v1067_v15 }
  0x42   : > { %1051 = vmatmul.msk.bf16.gmra.mxu2 %vm389_vm1, %v1071_v16 }
  0x43   : > { %1055 = vmatmul.msk.bf16.gmra.mxu3 %vm389_vm1, %v1075_v17 }
  0x8e   : > { %v451_v18 = vpop.f32.mrf.mxu0  ;;  %v471_v19 = vpop.f32.mrf.mxu1 }
  0x8f   : > { %v531_v20 = vpack.c.bf16 %v451_v18, %v451_v18  ;;  %v1204_v21 = vpack.c.bf16 %v471_v19, %v471_v19 }
  0x91   : > { %564 = vst.msk [vmem:[%s1202_s27] sm:$0xf] %vm563_vm2, %v531_v20  ;;  %v596_v62 = vunpack.c.l.bf16 %v531_v20 }
  0x92   : > { %572 = vst.msk [vmem:[%s1202_s27 + $0x20] sm:$0xf] %vm563_vm2, %v1204_v21 }
  0x93   : > { %v699_v2 = vmul.f32 %v596_v62, %v596_v62  ;;  %v628_v3 = vsel %vm389_vm1, %v596_v62, 0.0 }
  0x95   : > { %v491_v22 = vpop.f32.mrf.mxu2  ;;  %v731_v19 = vsel %vm389_vm1, %v699_v2, 0.0 }
  0x96   : > { %v453_v23 = vpop.f32.mrf.mxu0  ;;  %v473_v24 = vpop.f32.mrf.mxu1  ;;  %v1211_v25 = vpack.c.bf16 %v491_v22, %v491_v22 }
  0x97   : > { %v532_v26 = vpack.c.bf16 %v453_v23, %v453_v23  ;;  %v1213_v27 = vpack.c.bf16 %v473_v24, %v473_v24  ;;  %v511_v28 = vpop.f32.mrf.mxu3 }
  0x98   : > { %580 = vst.msk [vmem:[%s1202_s27 + $0x40] sm:$0xf] %vm563_vm2, %v1211_v25  ;;  %v1227_v35 = vpack.c.bf16 %v511_v28, %v511_v28 }
  0x99   : > { %565 = vst.msk [vmem:[%s1202_s27 + $0x4] sm:$0xf] %vm563_vm2, %v532_v26  ;;  %v597_v55 = vunpack.c.l.bf16 %v532_v26 }
  0x9a   : > { %573 = vst.msk [vmem:[%s1202_s27 + $0x24] sm:$0xf] %vm563_vm2, %v1213_v27 }
  0x9b   : > { %588 = vst.msk [vmem:[%s1202_s27 + $0x60] sm:$0xf] %vm563_vm2, %v1227_v35  ;;  %v700_v0 = vmul.f32 %v597_v55, %v597_v55  ;;  %v629_v4 = vsel %vm389_vm1, %v597_v55, 0.0 }
  0x9c   : > { %v630_v20 = vadd.f32 %v629_v4, %v628_v3 }
  0x9d   : > { %v493_v29 = vpop.f32.mrf.mxu2  ;;  %v732_v8 = vsel %vm389_vm1, %v700_v0, 0.0 }
  0x9e   : > { %v456_v30 = vpop.f32.mrf.mxu0  ;;  %v476_v31 = vpop.f32.mrf.mxu1  ;;  %v1223_v32 = vpack.c.bf16 %v493_v29, %v493_v29  ;;  %v733_v29 = vadd.f32 %v732_v8, %v731_v19 }
  0x9f   : > { %v533_v33 = vpack.c.bf16 %v456_v30, %v456_v30  ;;  %v1225_v34 = vpack.c.bf16 %v476_v31, %v476_v31  ;;  %v513_v36 = vpop.f32.mrf.mxu3 }
  0xa0   : > { %581 = vst.msk [vmem:[%s1202_s27 + $0x44] sm:$0xf] %vm563_vm2, %v1223_v32  ;;  %v1232_v37 = vpack.c.bf16 %v513_v36, %v513_v36 }
  0xa1   : > { %566 = vst.msk [vmem:[%s1202_s27 + $0x8] sm:$0xf] %vm563_vm2, %v533_v33  ;;  %v598_v63 = vunpack.c.l.bf16 %v533_v33 }
  0xa2   : > { %574 = vst.msk [vmem:[%s1202_s27 + $0x28] sm:$0xf] %vm563_vm2, %v1225_v34 }
  0xa3   : > { %589 = vst.msk [vmem:[%s1202_s27 + $0x64] sm:$0xf] %vm563_vm2, %v1232_v37  ;;  %v701_v5 = vmul.f32 %v598_v63, %v598_v63  ;;  %v631_v9 = vsel %vm389_vm1, %v598_v63, 0.0 }
  0xa4   : > { %v632_v30 = vadd.f32 %v631_v9, %v630_v20 }
  0xa5   : > { %v496_v38 = vpop.f32.mrf.mxu2  ;;  %v734_v23 = vsel %vm389_vm1, %v701_v5, 0.0 }
  0xa6   : > { %v458_v39 = vpop.f32.mrf.mxu0  ;;  %v478_v40 = vpop.f32.mrf.mxu1  ;;  %v1245_v41 = vpack.c.bf16 %v496_v38, %v496_v38  ;;  %v735_v38 = vadd.f32 %v734_v23, %v733_v29 }
  0xa7   : > { %v534_v42 = vpack.c.bf16 %v458_v39, %v458_v39  ;;  %v1247_v43 = vpack.c.bf16 %v478_v40, %v478_v40  ;;  %v516_v44 = vpop.f32.mrf.mxu3 }
  0xa8   : > { %582 = vst.msk [vmem:[%s1202_s27 + $0x48] sm:$0xf] %vm563_vm2, %v1245_v41  ;;  %v1261_v51 = vpack.c.bf16 %v516_v44, %v516_v44 }
  0xa9   : > { %567 = vst.msk [vmem:[%s1202_s27 + $0xc] sm:$0xf] %vm563_vm2, %v534_v42  ;;  %v599_v1 = vunpack.c.l.bf16 %v534_v42 }
  0xaa   : > { %575 = vst.msk [vmem:[%s1202_s27 + $0x2c] sm:$0xf] %vm563_vm2, %v1247_v43 }
  0xab   : > { %590 = vst.msk [vmem:[%s1202_s27 + $0x68] sm:$0xf] %vm563_vm2, %v1261_v51  ;;  %v702_v10 = vmul.f32 %v599_v1, %v599_v1  ;;  %v633_v24 = vsel %vm389_vm1, %v599_v1, 0.0 }
  0xac   : > { %v634_v39 = vadd.f32 %v633_v24, %v632_v30 }
  0xad   : > { %v498_v45 = vpop.f32.mrf.mxu2  ;;  %v736_v31 = vsel %vm389_vm1, %v702_v10, 0.0 }
  0xae   : > { %v461_v46 = vpop.f32.mrf.mxu0  ;;  %v481_v47 = vpop.f32.mrf.mxu1  ;;  %v1257_v48 = vpack.c.bf16 %v498_v45, %v498_v45 }
  0xaf   : > { %v535_v49 = vpack.c.bf16 %v461_v46, %v461_v46  ;;  %v1259_v50 = vpack.c.bf16 %v481_v47, %v481_v47  ;;  %v518_v52 = vpop.f32.mrf.mxu3  ;;  %v604_v46 = vunpack.c.l.bf16 %v1204_v21  ;;  %v737_v47 = vadd.f32 %v736_v31, %v735_v38 }
  0xb0   : > { %583 = vst.msk [vmem:[%s1202_s27 + $0x4c] sm:$0xf] %vm563_vm2, %v1257_v48  ;;  %v1266_v53 = vpack.c.bf16 %v518_v52, %v518_v52  ;;  %v605_v21 = vunpack.c.l.bf16 %v1213_v27 }
  0xb1   : > { %568 = vst.msk [vmem:[%s1202_s27 + $0x10] sm:$0xf] %vm563_vm2, %v535_v49  ;;  %v600_v6 = vunpack.c.l.bf16 %v535_v49  ;;  %v707_v3 = vmul.f32 %v604_v46, %v604_v46 }
  0xb2   : > { %576 = vst.msk [vmem:[%s1202_s27 + $0x30] sm:$0xf] %vm563_vm2, %v1259_v50  ;;  %v708_v27 = vmul.f32 %v605_v21, %v605_v21  ;;  %v645_v23 = vsel %vm389_vm1, %v605_v21, 0.0 }
  0xb3   : > { %591 = vst.msk [vmem:[%s1202_s27 + $0x6c] sm:$0xf] %vm563_vm2, %v1266_v53  ;;  %v703_v26 = vmul.f32 %v600_v6, %v600_v6  ;;  %v635_v33 = vsel %vm389_vm1, %v600_v6, 0.0  ;;  %v606_v6 = vunpack.c.l.bf16 %v1225_v34 }
  0xb4   : > { %v636_v49 = vadd.f32 %v635_v33, %v634_v39  ;;  %v748_v33 = vsel %vm389_vm1, %v708_v27, 0.0 }
  0xb5   : > { %v501_v54 = vpop.f32.mrf.mxu2  ;;  %v738_v40 = vsel %vm389_vm1, %v703_v26, 0.0  ;;  %v709_v24 = vmul.f32 %v606_v6, %v606_v6  ;;  %v608_v26 = vunpack.c.l.bf16 %v1259_v50 }
  0xb6   : > { %v463_v56 = vpop.f32.mrf.mxu0  ;;  %v483_v57 = vpop.f32.mrf.mxu1  ;;  %v1279_v58 = vpack.c.bf16 %v501_v54, %v501_v54  ;;  %v739_v63 = vadd.f32 %v738_v40, %v737_v47 }
  0xb7   : > { %v536_v59 = vpack.c.bf16 %v463_v56, %v463_v56  ;;  %v1281_v60 = vpack.c.bf16 %v483_v57, %v483_v57  ;;  %v521_v61 = vpop.f32.mrf.mxu3 }
  0xb8   : > { %584 = vst.msk [vmem:[%s1202_s27 + $0x50] sm:$0xf] %vm563_vm2, %v1279_v58  ;;  %v1299_v17 = vpack.c.bf16 %v521_v61, %v521_v61 }
  0xb9   : > { %569 = vst.msk [vmem:[%s1202_s27 + $0x14] sm:$0xf] %vm563_vm2, %v536_v59  ;;  %v601_v14 = vunpack.c.l.bf16 %v536_v59  ;;  %v609_v39 = vunpack.c.l.bf16 %v1281_v60 }
  0xba   : > { %577 = vst.msk [vmem:[%s1202_s27 + $0x34] sm:$0xf] %vm563_vm2, %v1281_v60  ;;  %v651_v60 = vsel %vm389_vm1, %v608_v26, 0.0 }
  0xbb   : > { %v704_v36 = vmul.f32 %v601_v14, %v601_v14  ;;  %592 = vst.msk [vmem:[%s1202_s27 + $0x70] sm:$0xf] %vm563_vm2, %v1299_v17  ;;  %v637_v42 = vsel %vm389_vm1, %v601_v14, 0.0 }
  0xbc   : > { %v638_v0 = vadd.f32 %v637_v42, %v636_v49  ;;  %v750_v42 = vsel %vm389_vm1, %v709_v24, 0.0 }
  0xbd   : > { %v503_v7 = vpop.f32.mrf.mxu2  ;;  %v740_v56 = vsel %vm389_vm1, %v704_v36, 0.0  ;;  %v647_v36 = vsel %vm389_vm1, %v606_v6, 0.0 }
  0xbe   : > { %v466_v11 = vpop.f32.mrf.mxu0  ;;  %v486_v12 = vpop.f32.mrf.mxu1  ;;  %v1295_v13 = vpack.c.bf16 %v503_v7, %v503_v7  ;;  %v741_v4 = vadd.f32 %v740_v56, %v739_v63 }
  0xbf   : > { %v537_v15 = vpack.c.bf16 %v466_v11, %v466_v11  ;;  %v1297_v16 = vpack.c.bf16 %v486_v12, %v486_v12  ;;  %v523_v18 = vpop.f32.mrf.mxu3  ;;  %v643_v11 = vsel %vm389_vm1, %v604_v46, 0.0  ;;  %v607_v12 = vunpack.c.l.bf16 %v1247_v43 }
  0xc0   : > { %585 = vst.msk [vmem:[%s1202_s27 + $0x54] sm:$0xf] %vm563_vm2, %v1295_v13  ;;  %v1305_v22 = vpack.c.bf16 %v523_v18, %v523_v18  ;;  %v746_v18 = vsel %vm389_vm1, %v707_v3, 0.0 }
  0xc1   : > { %570 = vst.msk [vmem:[%s1202_s27 + $0x18] sm:$0xf] %vm563_vm2, %v537_v15  ;;  %v602_v28 = vunpack.c.l.bf16 %v537_v15  ;;  %v710_v38 = vmul.f32 %v607_v12, %v607_v12  ;;  %v610_v46 = vunpack.c.l.bf16 %v1297_v16 }
  0xc2   : > { %578 = vst.msk [vmem:[%s1202_s27 + $0x38] sm:$0xf] %vm563_vm2, %v1297_v16  ;;  %v613_v16 = vunpack.c.l.bf16 %v1223_v32  ;;  %v615_v32 = vunpack.c.l.bf16 %v1257_v48  ;;  %v617_v48 = vunpack.c.l.bf16 %v1295_v13 }
  0xc3   : > { %593 = vst.msk [vmem:[%s1202_s27 + $0x74] sm:$0xf] %vm563_vm2, %v1305_v22  ;;  %v705_v44 = vmul.f32 %v602_v28, %v602_v28  ;;  %v639_v57 = vsel %vm389_vm1, %v602_v28, 0.0  ;;  %v713_v21 = vmul.f32 %v610_v46, %v610_v46 }
  0xc4   : > { %v640_v5 = vadd.f32 %v639_v57, %v638_v0  ;;  %v653_v0 = vsel %vm389_vm1, %v609_v39, 0.0 }
  0xc5   : > { %v506_v45 = vpop.f32.mrf.mxu2  ;;  %v742_v1 = vsel %vm389_vm1, %v705_v44, 0.0  ;;  %v649_v44 = vsel %vm389_vm1, %v607_v12, 0.0  ;;  %v716_v12 = vmul.f32 %v613_v16, %v613_v16 }
  0xc6   : > { %v468_v52 = vpop.f32.mrf.mxu0  ;;  %v488_v54 = vpop.f32.mrf.mxu1  ;;  %v1325_v55 = vpack.c.bf16 %v506_v45, %v506_v45  ;;  %v743_v9 = vadd.f32 %v742_v1, %v741_v4  ;;  %v711_v45 = vmul.f32 %v608_v26, %v608_v26  ;;  %v655_v4 = vsel %vm389_vm1, %v610_v46, 0.0 }
  0xc7   : > { %v538_v59 = vpack.c.bf16 %v468_v52, %v468_v52  ;;  %v546_v61 = vpack.c.bf16 %v488_v54, %v488_v54  ;;  %v526_v62 = vpop.f32.mrf.mxu3  ;;  %v752_v52 = vsel %vm389_vm1, %v710_v38, 0.0  ;;  %v712_v54 = vmul.f32 %v609_v39, %v609_v39 }
  0xc8   : > { %586 = vst.msk [vmem:[%s1202_s27 + $0x58] sm:$0xf] %vm563_vm2, %v1325_v55  ;;  %v1348_v28 = vpack.c.bf16 %v526_v62, %v526_v62  ;;  %v612_v62 = vunpack.c.l.bf16 %v1211_v25  ;;  %v754_v63 = vsel %vm389_vm1, %v711_v45, 0.0  ;;  %v758_v25 = vsel %vm389_vm1, %v713_v21, 0.0 }
  0xc9   : > { %571 = vst.msk [vmem:[%s1202_s27 + $0x1c] sm:$0xf] %vm563_vm2, %v538_v59  ;;  %v603_v2 = vunpack.c.l.bf16 %v538_v59  ;;  %v611_v56 = vunpack.c.l.bf16 %v546_v61  ;;  %v756_v3 = vsel %vm389_vm1, %v712_v54, 0.0  ;;  %v665_v39 = vsel %vm389_vm1, %v615_v32, 0.0 }
  0xca   : > { %579 = vst.msk [vmem:[%s1202_s27 + $0x3c] sm:$0xf] %vm563_vm2, %v546_v61  ;;  %v659_v27 = vsel %vm389_vm1, %v612_v62, 0.0  ;;  %v720_v46 = vmul.f32 %v617_v48, %v617_v48  ;;  %v669_v54 = vsel %vm389_vm1, %v617_v48, 0.0 }
  0xcb   : > { %v641_v7 = vsel %vm389_vm1, %v603_v2, 0.0  ;;  %v706_v8 = vmul.f32 %v603_v2, %v603_v2  ;;  %594 = vst.msk [vmem:[%s1202_s27 + $0x78] sm:$0xf] %vm563_vm2, %v1348_v28 }
  0xcc   : > { %v642_v10 = vadd.f32 %v641_v7, %v640_v5  ;;  %v714_v5 = vmul.f32 %v611_v56, %v611_v56  ;;  %v715_v7 = vmul.f32 %v612_v62, %v612_v62  ;;  %v772_v62 = vsel %vm389_vm1, %v720_v46, 0.0 }
  0xcd   : > { %v744_v14 = vsel %vm389_vm1, %v706_v8, 0.0  ;;  %v508_v15 = vpop.f32.mrf.mxu2  ;;  %v614_v8 = vunpack.c.l.bf16 %v1245_v41 }
  0xce   : > { %v644_v19 = vadd.f32 %v643_v11, %v642_v10  ;;  %v745_v20 = vadd.f32 %v744_v14, %v743_v9  ;;  %v1344_v34 = vpack.c.bf16 %v508_v15, %v508_v15  ;;  %v657_v9 = vsel %vm389_vm1, %v611_v56, 0.0 }
  0xcf   : > { %v528_v29 = vpop.f32.mrf.mxu3  ;;  %v760_v14 = vsel %vm389_vm1, %v714_v5, 0.0  ;;  %v717_v41 = vmul.f32 %v614_v8, %v614_v8 }
  0xd0   : > { %v646_v43 = vadd.f32 %v645_v23, %v644_v19  ;;  %v747_v30 = vadd.f32 %v746_v18, %v745_v20  ;;  %587 = vst.msk [vmem:[%s1202_s27 + $0x5c] sm:$0xf] %vm563_vm2, %v1344_v34  ;;  %v1353_v31 = vpack.c.bf16 %v528_v29, %v528_v29  ;;  %v762_v19 = vsel %vm389_vm1, %v715_v7, 0.0 }
  0xd1   : > { %v661_v20 = vsel %vm389_vm1, %v613_v16, 0.0  ;;  %v616_v23 = vunpack.c.l.bf16 %v1279_v58  ;;  %v764_v29 = vsel %vm389_vm1, %v716_v12, 0.0  ;;  %v766_v38 = vsel %vm389_vm1, %v717_v41, 0.0 }
  0xd2   : > { %v648_v50 = vadd.f32 %v647_v36, %v646_v43  ;;  %v749_v40 = vadd.f32 %v748_v33, %v747_v30  ;;  %595 = vst.msk [vmem:[%s1202_s27 + $0x7c] sm:$0xf] %vm563_vm2, %v1353_v31  ;;  %v663_v43 = vsel %vm389_vm1, %v614_v8, 0.0  ;;  %v718_v30 = vmul.f32 %v615_v32, %v615_v32 }
  0xd3   : > { %v667_v45 = vsel %vm389_vm1, %v616_v23, 0.0 }
  0xd4   : > { %v751_v47 = vadd.f32 %v750_v42, %v749_v40  ;;  %v650_v49 = vadd.f32 %v649_v44, %v648_v50  ;;  %v719_v50 = vmul.f32 %v616_v23, %v616_v23  ;;  %v618_v40 = vunpack.c.l.bf16 %v1325_v55 }
  0xd5   : > { %v768_v44 = vsel %vm389_vm1, %v718_v30, 0.0  ;;  %v626_v23 = vunpack.c.l.bf16 %v1348_v28  ;;  %v627_v30 = vunpack.c.l.bf16 %v1353_v31 }
  0xd6   : > { %v652_v57 = vadd.f32 %v651_v60, %v650_v49  ;;  %v753_v59 = vadd.f32 %v752_v52, %v751_v47  ;;  %v619_v47 = vunpack.c.l.bf16 %v1344_v34  ;;  %v620_v52 = vunpack.c.l.bf16 %v1227_v35 }
  0xd7   : > { %v770_v60 = vsel %vm389_vm1, %v719_v50, 0.0  ;;  %v721_v56 = vmul.f32 %v618_v40, %v618_v40  ;;  %v689_v31 = vsel %vm389_vm1, %v627_v30, 0.0 }
  0xd8   : > { %v654_v1 = vadd.f32 %v653_v0, %v652_v57  ;;  %v755_v2 = vadd.f32 %v754_v63, %v753_v59  ;;  %v621_v59 = vunpack.c.l.bf16 %v1232_v37  ;;  %v671_v63 = vsel %vm389_vm1, %v618_v40, 0.0 }
  0xd9   : > { %v722_v0 = vmul.f32 %v619_v47, %v619_v47  ;;  %v774_v35 = vsel %vm389_vm1, %v721_v56, 0.0  ;;  %v673_v16 = vsel %vm389_vm1, %v619_v47, 0.0  ;;  %v675_v5 = vsel %vm389_vm1, %v620_v52, 0.0 }
  0xda   : > { %v656_v6 = vadd.f32 %v655_v4, %v654_v1  ;;  %v757_v61 = vadd.f32 %v756_v3, %v755_v2  ;;  %v723_v1 = vmul.f32 %v620_v52, %v620_v52  ;;  %v622_v2 = vunpack.c.l.bf16 %v1261_v51 }
  0xdb   : > { %v623_v37 = vunpack.c.l.bf16 %v1266_v53  ;;  %v625_v53 = vunpack.c.l.bf16 %v1305_v22  ;;  %v687_v40 = vsel %vm389_vm1, %v626_v23, 0.0 }
  0xdc   : > { %v759_v10 = vadd.f32 %v758_v25, %v757_v61  ;;  %v658_v11 = vadd.f32 %v657_v9, %v656_v6  ;;  %v724_v6 = vmul.f32 %v621_v59, %v621_v59  ;;  %v776_v61 = vsel %vm389_vm1, %v722_v0, 0.0 }
  0xdd   : > { %v778_v25 = vsel %vm389_vm1, %v723_v1, 0.0  ;;  %v677_v9 = vsel %vm389_vm1, %v621_v59, 0.0  ;;  %v725_v51 = vmul.f32 %v622_v2, %v622_v2  ;;  %v679_v32 = vsel %vm389_vm1, %v622_v2, 0.0 }
  0xde   : > { %v660_v15 = vadd.f32 %v659_v27, %v658_v11  ;;  %v761_v18 = vadd.f32 %v760_v14, %v759_v10  ;;  %v624_v10 = vunpack.c.l.bf16 %v1299_v17  ;;  %v780_v12 = vsel %vm389_vm1, %v724_v6, 0.0 }
  0xdf   : > { %v726_v14 = vmul.f32 %v623_v37, %v623_v37 }
  0xe0   : > { %v662_v24 = vadd.f32 %v661_v20, %v660_v15  ;;  %v763_v26 = vadd.f32 %v762_v19, %v761_v18  ;;  %v782_v19 = vsel %vm389_vm1, %v725_v51, 0.0  ;;  %v681_v20 = vsel %vm389_vm1, %v623_v37, 0.0 }
  0xe1   : > { %v727_v41 = vmul.f32 %v624_v10, %v624_v10 }
  0xe2   : > { %v664_v33 = vadd.f32 %v663_v43, %v662_v24  ;;  %v765_v36 = vadd.f32 %v764_v29, %v763_v26  ;;  %v784_v26 = vsel %vm389_vm1, %v726_v14, 0.0  ;;  %v683_v29 = vsel %vm389_vm1, %v624_v10, 0.0 }
  0xe3   : > { %v728_v43 = vmul.f32 %v625_v53, %v625_v53 }
  0xe4   : > { %v767_v42 = vadd.f32 %v766_v38, %v765_v36  ;;  %v666_v58 = vadd.f32 %v665_v39, %v664_v33  ;;  %v786_v33 = vsel %vm389_vm1, %v727_v41, 0.0  ;;  %v685_v36 = vsel %vm389_vm1, %v625_v53, 0.0 }
  0xe5   : > { %v729_v38 = vmul.f32 %v626_v23, %v626_v23  ;;  %v788_v28 = vsel %vm389_vm1, %v728_v43, 0.0 }
  0xe6   : > { %v668_v49 = vadd.f32 %v667_v45, %v666_v58  ;;  %v769_v13 = vadd.f32 %v768_v44, %v767_v42  ;;  %v730_v42 = vmul.f32 %v627_v30, %v627_v30 }
  0xe7   : > { %v790_v45 = vsel %vm389_vm1, %v729_v38, 0.0 }
  0xe8   : > { %v670_v57 = vadd.f32 %v669_v54, %v668_v49  ;;  %v771_v55 = vadd.f32 %v770_v60, %v769_v13  ;;  %v792_v49 = vsel %vm389_vm1, %v730_v42, 0.0 }
  0xea   : > { %v773_v21 = vadd.f32 %v772_v62, %v771_v55  ;;  %v672_v34 = vadd.f32 %v671_v63, %v670_v57 }
  0xec   : > { %v775_v3 = vadd.f32 %v774_v35, %v773_v21  ;;  %v674_v4 = vadd.f32 %v673_v16, %v672_v34 }
  0xee   : > { %v676_v7 = vadd.f32 %v675_v5, %v674_v4  ;;  %v777_v8 = vadd.f32 %v776_v61, %v775_v3 }
  0xf0   : > { %v678_v11 = vadd.f32 %v677_v9, %v676_v7  ;;  %v779_v27 = vadd.f32 %v778_v25, %v777_v8 }
  0xf2   : > { %v680_v15 = vadd.f32 %v679_v32, %v678_v11  ;;  %v781_v18 = vadd.f32 %v780_v12, %v779_v27 }
  0xf4   : > { %v783_v24 = vadd.f32 %v782_v19, %v781_v18  ;;  %v682_v17 = vadd.f32 %v681_v20, %v680_v15 }
  0xf6   : > { %v684_v48 = vadd.f32 %v683_v29, %v682_v17  ;;  %v785_v22 = vadd.f32 %v784_v26, %v783_v24 }
  0xf8   : > { %v686_v39 = vadd.f32 %v685_v36, %v684_v48  ;;  %v787_v50 = vadd.f32 %v786_v33, %v785_v22 }
  0xfa   : > { %v789_v58 = vadd.f32 %v788_v28, %v787_v50  ;;  %v688_v44 = vadd.f32 %v687_v40, %v686_v39 }
  0xfc   : > { %v791_v46 = vadd.f32 %v790_v45, %v789_v58  ;;  %v690_v47 = vadd.f32 %v689_v31, %v688_v44 }
  0xfe   : > { %v691_v13 = vrot.slane %v690_v47, 4  ;;  %v793_v52 = vadd.f32 %v792_v49, %v791_v46 }
 0x100   : > { %v692_v60 = vadd.f32 %v691_v13, %v690_v47  ;;  %v794_v54 = vrot.slane %v793_v52, 4 }
 0x102   : > { %v693_v56 = vrot.slane %v692_v60, 2  ;;  %v795_v57 = vadd.f32 %v794_v54, %v793_v52 }
 0x104   : > { %v694_v55 = vadd.f32 %v693_v56, %v692_v60  ;;  %v796_v59 = vrot.slane %v795_v57, 2 }
 0x106   : > { %v695_v62 = vrot.slane %v694_v55, 1  ;;  %v797_v63 = vadd.f32 %v796_v59, %v795_v57 }
 0x108   : > { %v696_v0 = vadd.f32 %v695_v62, %v694_v55  ;;  %v798_v21 = vrot.slane %v797_v63, 1 }
 0x10a   : > { %698 = vst.msk [vmem:[%s268_s30] sm:$0x1] %vm697_vm3, %v696_v0  ;;  %v799_v34 = vadd.f32 %v798_v21, %v797_v63 }
 0x10c   : > { %800 = vst.msk [vmem:[%s274_s7] sm:$0x1] %vm697_vm3, %v799_v34 }
 0x10d PF: > { %s15_s17 = sadd.s32 1, %s1125_s17   ;;  %s1446_s15 = smov %s1121_s16 }
 0x10e   : > { %p12_p5 = scmp.ge.s32.totalorder %s15_s17, 4   ;;  %s1447_s16 = smov %s1449_s18 }
 0x110   :  { %14 = sbr.rel (!%p12_p5) target bundleno = 2 (0x2), region = 82 }

// kernel: input_bottleneck_block.5
= control target key start
LH: loop header
LB: loop body
LE: loop exit
PB: predicated region body
PF: predicated region fallthrough
CT: control target
= control target key end

     0   :  { %s1360_s21 = smov 0   ;;  %s1362_s22 = smov 0   ;;  %s1614_s0 = inlined_call_operand.vmem [shape: bf16[2,16,16,4], index: 0, kind: input, shape index: {}]   ;;  %s1615_s1 = inlined_call_operand.vmem [shape: bf16[2,16,16,4], index: 1, kind: input, shape index: {}]   ;;  %s1616_s2 = inlined_call_operand.vmem [shape: f32[1,4], index: 2, kind: input, shape index: {}]   ;;  %s1617_s3 = inlined_call_operand.vmem [shape: f32[1,4], index: 3, kind: input, shape index: {}]   ;;  %s1618_s4 = inlined_call_operand.vmem [shape: bf16[4,16], index: 4, kind: input, shape index: {}]   ;;  %s1619_s5 = inlined_call_operand.vmem [shape: bf16[4,16], index: 5, kind: input, shape index: {}]   ;;  %s1620_s6 = inlined_call_operand.vmem [shape: f32[2,16,16,16], index: 6, kind: output, shape index: {}]  }
   0x1   :  { %s1364_s23 = smov 0  }
   0x2 LB: > { %s28_s24 = sadd.s32 1, %s1319_s22  ;;  %p1070_p0 = scmp.ge.s32.totalorder %s1323_s23, 1  ;;  %s1323_s23 = sphi %s1364_s23, %s16_s23   ;;  %s1319_s22 = sphi %s1362_s22, %s1622_s22   ;;  %s1315_s21 = sphi %s1360_s21, %s1621_s21  }
   0x3   : > { %p30_p1 = scmp.ge.s32.totalorder %s28_s24, 2  ;;  %p252_p2 = scmp.lt.s32.totalorder %s1323_s23, 3 }
   0x5   : > { %s1624_s24 = smov (%p30_p1, %s28_s24), 0  ;;  %p253_p3 = pnand %p1070_p0, %p252_p2 }
   0x6   : > { %p303_p4 = scmp.lt.s32.totalorder (!%p253_p3), %s1315_s21, 1 }
   0x7   : > { %256 = sbr.rel (%p253_p3) target bundleno = 285 (0x11d), region = 44 }
   0xc   : > { %v553_v0 = vld [vmem:[%s1619_s5] sm:$0x3]  ;;  %vm683_vm0 = vcmask 1041408   ;;  %s1626_s21 = smov (!%p303_p4, %s1315_s21), 1  ;;  %vm634_vm1 = vcmask 31744   ;;  %vm916_vm2 = vcmask 130048  }
   0xd   : > { %v685_v1 = vsel %vm683_vm0, %v553_v0, 0  ;;  %v520_v2 = vld [vmem:[%s1618_s4] sm:$0x3]  ;;  %s1175_s29 = sshll.u32 %s1626_s21, 7  ;;  %s1177_s16 = sshll.u32 %s1626_s21, 8 }
   0xe   : > { %1273 = vmatpush.bf16.msra.mxu2 %v685_v1  ;;  %694 = vmatpush.bf16.msra.mxu0 %v685_v1  ;;  %v825_v3 = vsel %vm683_vm0, %v520_v2, 0  ;;  %s1390_s8 = scalar_lea.vmem %s1615_s1, %s1175_s29  ;;  %s1395_s11 = scalar_lea.vmem %s1614_s0, %s1175_s29  ;;  %v1400_v4 = vld [vmem:[%s1616_s2] ss:$0 sm:$0xff] }
   0xf   : > { %834 = vmatpush.bf16.msra.mxu1 %v825_v3  ;;  %1274 = vmatpush.bf16.msra.mxu3 %v825_v3  ;;  %v1186_v5 = vld [vmem:[%s1390_s8 + $0x40] sm:$0xff]  ;;  %v1258_v18 = vld [vmem:[%s1395_s11 + $0x8] sm:$0xff]   ;;  %v1259_v48 = vld [vmem:[%s1395_s11 + $0x10] sm:$0xff]   ;;  %s1539_s19 = scalar_lea.vmem %s1620_s6, %s1177_s16 }
  0x10   : > { %v1178_v6 = vld [vmem:[%s1390_s8] sm:$0xff]  ;;  %v1266_v21 = vld [vmem:[%s1395_s11 + $0x48] sm:$0xff]   ;;  %v1200_v26 = vunpack.c.l.bf16 %v1258_v18  ;;  %v1201_v27 = vunpack.c.h.bf16 %v1258_v18  ;;  %v1267_v49 = vld [vmem:[%s1395_s11 + $0x50] sm:$0xff]   ;;  %v1204_v51 = vunpack.c.l.bf16 %v1259_v48  ;;  %v1205_v52 = vunpack.c.h.bf16 %v1259_v48 }
  0x11   : > { %v1195_v7 = vld [vmem:[%s1395_s11] sm:$0xff]   ;;  %1149 = vmatmul.msk.bf16.vlgmr.msra.gmra.mxu2 %vm634_vm1, %v1186_v5  ;;  %1141 = vmatmul.msk.bf16.vlgmr.msra.gmra.mxu0 %vm634_vm1, %v1178_v6  ;;  %v1232_v30 = vunpack.c.l.bf16 %v1266_v21  ;;  %v1233_v31 = vunpack.c.h.bf16 %v1266_v21  ;;  %v1187_v38 = vld [vmem:[%s1390_s8 + $0x48] sm:$0xff]  ;;  %v1236_v54 = vunpack.c.l.bf16 %v1267_v49  ;;  %v1237_v55 = vunpack.c.h.bf16 %v1267_v49  ;;  %v1188_v60 = vld [vmem:[%s1390_s8 + $0x50] sm:$0xff] }
  0x12   : > { %v1196_v8 = vunpack.c.l.bf16 %v1195_v7  ;;  %v1197_v9 = vunpack.c.h.bf16 %v1195_v7  ;;  %v1408_v10 = vld [vmem:[%s1617_s3] ss:$0 sm:$0xff]  ;;  %v406_v34 = vmul.f32 %v1400_v4, %v1200_v26  ;;  %v407_v35 = vmul.f32 %v1400_v4, %v1201_v27  ;;  %v1179_v39 = vld [vmem:[%s1390_s8 + $0x8] sm:$0xff]  ;;  %v1180_v61 = vld [vmem:[%s1390_s8 + $0x10] sm:$0xff] }
  0x13   : > { %v1265_v11 = vld [vmem:[%s1395_s11 + $0x40] sm:$0xff]   ;;  %v422_v36 = vmul.f32 %v1400_v4, %v1232_v30  ;;  %v423_v37 = vmul.f32 %v1400_v4, %v1233_v31  ;;  %v408_v56 = vmul.f32 %v1400_v4, %v1204_v51  ;;  %v409_v57 = vmul.f32 %v1400_v4, %v1205_v52  ;;  %v1260_v7 = vld [vmem:[%s1395_s11 + $0x18] sm:$0xff]   ;;  %v1262_v52 = vld [vmem:[%s1395_s11 + $0x28] sm:$0xff]  }
  0x14   : > { %v1228_v12 = vunpack.c.l.bf16 %v1265_v11  ;;  %v1229_v13 = vunpack.c.h.bf16 %v1265_v11  ;;  %v404_v14 = vmul.f32 %v1400_v4, %v1196_v8  ;;  %v405_v15 = vmul.f32 %v1400_v4, %v1197_v9  ;;  %v1268_v8 = vld [vmem:[%s1395_s11 + $0x58] sm:$0xff]   ;;  %v1261_v30 = vld [vmem:[%s1395_s11 + $0x20] sm:$0xff]  }
  0x15   : > { %v442_v40 = vadd.f32 %v1408_v10, %v406_v34  ;;  %v443_v41 = vadd.f32 %v1408_v10, %v407_v35  ;;  %v458_v42 = vadd.f32 %v1408_v10, %v422_v36  ;;  %v459_v43 = vadd.f32 %v1408_v10, %v423_v37  ;;  %v1181_v21 = vld [vmem:[%s1390_s8 + $0x18] sm:$0xff]  ;;  %v1269_v31 = vld [vmem:[%s1395_s11 + $0x60] sm:$0xff]  }
  0x16   : > { %v420_v16 = vmul.f32 %v1400_v4, %v1228_v12  ;;  %v421_v17 = vmul.f32 %v1400_v4, %v1229_v13  ;;  %v440_v19 = vadd.f32 %v1408_v10, %v404_v14  ;;  %v441_v20 = vadd.f32 %v1408_v10, %v405_v15 }
  0x17   : > { %v474_v44 = vmax.f32 %v442_v40, 0.0  ;;  %v475_v45 = vmax.f32 %v443_v41, 0.0  ;;  %v490_v46 = vmax.f32 %v458_v42, 0.0  ;;  %v491_v47 = vmax.f32 %v459_v43, 0.0  ;;  %v1190_v42 = vld [vmem:[%s1390_s8 + $0x60] sm:$0xff] }
  0x18   : > { %v456_v22 = vadd.f32 %v1408_v10, %v420_v16  ;;  %v457_v23 = vadd.f32 %v1408_v10, %v421_v17  ;;  %v472_v24 = vmax.f32 %v440_v19, 0.0  ;;  %v473_v25 = vmax.f32 %v441_v20, 0.0  ;;  %v1189_v20 = vld [vmem:[%s1390_s8 + $0x58] sm:$0xff]  ;;  %v1182_v43 = vld [vmem:[%s1390_s8 + $0x20] sm:$0xff] }
  0x19   : > { %v505_v50 = vpack.c.bf16 %v475_v45, %v474_v44  ;;  %v513_v53 = vpack.c.bf16 %v491_v47, %v490_v46  ;;  %v424_v58 = vmul.f32 %v1400_v4, %v1236_v54  ;;  %v425_v59 = vmul.f32 %v1400_v4, %v1237_v55 }
  0x1a   : > { %v488_v28 = vmax.f32 %v456_v22, 0.0  ;;  %v489_v29 = vmax.f32 %v457_v23, 0.0  ;;  %v504_v32 = vpack.c.bf16 %v473_v25, %v472_v24  ;;  %v444_v62 = vadd.f32 %v1408_v10, %v408_v56 }
  0x1b   : > { %v445_v63 = vadd.f32 %v1408_v10, %v409_v57  ;;  %v460_v0 = vadd.f32 %v1408_v10, %v424_v58  ;;  %v461_v1 = vadd.f32 %v1408_v10, %v425_v59  ;;  %v1208_v11 = vunpack.c.l.bf16 %v1260_v7 }
  0x1c   : > { %v512_v33 = vpack.c.bf16 %v489_v29, %v488_v28  ;;  %1157 = vmatmul.msk.bf16.vlgmr.msra.gmra.mxu1 %vm634_vm1, %v504_v32  ;;  %v476_v2 = vmax.f32 %v444_v62, 0.0  ;;  %v1209_v12 = vunpack.c.h.bf16 %v1260_v7  ;;  %v1240_v14 = vunpack.c.l.bf16 %v1268_v8 }
  0x1d   : > { %v477_v3 = vmax.f32 %v445_v63, 0.0  ;;  %v492_v5 = vmax.f32 %v460_v0, 0.0  ;;  %v493_v6 = vmax.f32 %v461_v1, 0.0  ;;  %v1241_v15 = vunpack.c.h.bf16 %v1268_v8  ;;  %v1191_v0 = vld [vmem:[%s1390_s8 + $0x68] sm:$0xff] }
  0x1e   : > { %1165 = vmatmul.msk.bf16.vlgmr.msra.gmra.mxu3 %vm634_vm1, %v512_v33  ;;  %v410_v16 = vmul.f32 %v1400_v4, %v1208_v11  ;;  %v411_v17 = vmul.f32 %v1400_v4, %v1209_v12  ;;  %v426_v18 = vmul.f32 %v1400_v4, %v1240_v14  ;;  %v1212_v33 = vunpack.c.l.bf16 %v1261_v30  ;;  %v1183_v1 = vld [vmem:[%s1390_s8 + $0x28] sm:$0xff]  ;;  %v1263_v12 = vld [vmem:[%s1395_s11 + $0x30] sm:$0xff]  }
  0x1f   : > { %v506_v9 = vpack.c.bf16 %v477_v3, %v476_v2  ;;  %v514_v13 = vpack.c.bf16 %v493_v6, %v492_v5  ;;  %v427_v19 = vmul.f32 %v1400_v4, %v1241_v15  ;;  %v1213_v34 = vunpack.c.h.bf16 %v1261_v30 }
  0x20   : > { %v446_v22 = vadd.f32 %v1408_v10, %v410_v16  ;;  %v447_v23 = vadd.f32 %v1408_v10, %v411_v17  ;;  %v462_v24 = vadd.f32 %v1408_v10, %v426_v18  ;;  %v1244_v36 = vunpack.c.l.bf16 %v1269_v31 }
  0x21   : > { %1150 = vmatmul.msk.bf16.gmra.mxu2 %vm634_vm1, %v1187_v38  ;;  %1142 = vmatmul.msk.bf16.gmra.mxu0 %vm634_vm1, %v1179_v39  ;;  %v463_v25 = vadd.f32 %v1408_v10, %v427_v19  ;;  %v1245_v37 = vunpack.c.h.bf16 %v1269_v31  ;;  %v412_v38 = vmul.f32 %v1400_v4, %v1212_v33  ;;  %v413_v39 = vmul.f32 %v1400_v4, %v1213_v34  ;;  %v1264_v34 = vld [vmem:[%s1395_s11 + $0x38] sm:$0xff]  }
  0x22   : > { %v478_v26 = vmax.f32 %v446_v22, 0.0  ;;  %v479_v27 = vmax.f32 %v447_v23, 0.0  ;;  %v494_v28 = vmax.f32 %v462_v24, 0.0  ;;  %v428_v40 = vmul.f32 %v1400_v4, %v1244_v36  ;;  %v1192_v24 = vld [vmem:[%s1390_s8 + $0x70] sm:$0xff] }
  0x23   : > { %v495_v29 = vmax.f32 %v463_v25, 0.0  ;;  %v429_v41 = vmul.f32 %v1400_v4, %v1245_v37  ;;  %v448_v44 = vadd.f32 %v1408_v10, %v412_v38  ;;  %v449_v45 = vadd.f32 %v1408_v10, %v413_v39  ;;  %v1184_v25 = vld [vmem:[%s1390_s8 + $0x30] sm:$0xff] }
  0x24   : > { %v507_v32 = vpack.c.bf16 %v479_v27, %v478_v26  ;;  %v464_v46 = vadd.f32 %v1408_v10, %v428_v40  ;;  %v1216_v55 = vunpack.c.l.bf16 %v1262_v52  ;;  %v1217_v56 = vunpack.c.h.bf16 %v1262_v52 }
  0x25   : > { %v515_v35 = vpack.c.bf16 %v495_v29, %v494_v28  ;;  %v465_v47 = vadd.f32 %v1408_v10, %v429_v41  ;;  %v480_v48 = vmax.f32 %v448_v44, 0.0  ;;  %v481_v49 = vmax.f32 %v449_v45, 0.0 }
  0x26   : > { %v1220_v15 = vunpack.c.l.bf16 %v1263_v12  ;;  %v1221_v16 = vunpack.c.h.bf16 %v1263_v12  ;;  %v1224_v37 = vunpack.c.l.bf16 %v1264_v34  ;;  %v1225_v38 = vunpack.c.h.bf16 %v1264_v34 }
  0x27   : > { %v497_v51 = vmax.f32 %v465_v47, 0.0  ;;  %v508_v54 = vpack.c.bf16 %v481_v49, %v480_v48  ;;  %v1185_v47 = vld [vmem:[%s1390_s8 + $0x38] sm:$0xff] }
  0x2c   : > { %1158 = vmatmul.msk.bf16.gmra.mxu1 %vm634_vm1, %v505_v50  ;;  %v496_v50 = vmax.f32 %v464_v46, 0.0  ;;  %v1193_v46 = vld [vmem:[%s1390_s8 + $0x78] sm:$0xff] }
  0x2e   : > { %1166 = vmatmul.msk.bf16.gmra.mxu3 %vm634_vm1, %v513_v53  ;;  %v1270_v53 = vld [vmem:[%s1395_s11 + $0x68] sm:$0xff]   ;;  %v516_v57 = vpack.c.bf16 %v497_v51, %v496_v50 }
  0x2f   : > { %v1248_v58 = vunpack.c.l.bf16 %v1270_v53  ;;  %v1249_v59 = vunpack.c.h.bf16 %v1270_v53 }
  0x31   : > { %1151 = vmatmul.msk.bf16.gmra.mxu2 %vm634_vm1, %v1188_v60  ;;  %1143 = vmatmul.msk.bf16.gmra.mxu0 %vm634_vm1, %v1180_v61  ;;  %v414_v60 = vmul.f32 %v1400_v4, %v1216_v55  ;;  %v415_v61 = vmul.f32 %v1400_v4, %v1217_v56  ;;  %v430_v62 = vmul.f32 %v1400_v4, %v1248_v58 }
  0x32   : > { %v431_v63 = vmul.f32 %v1400_v4, %v1249_v59 }
  0x33   : > { %v450_v2 = vadd.f32 %v1408_v10, %v414_v60  ;;  %v451_v3 = vadd.f32 %v1408_v10, %v415_v61  ;;  %v466_v5 = vadd.f32 %v1408_v10, %v430_v62 }
  0x34   : > { %v467_v6 = vadd.f32 %v1408_v10, %v431_v63 }
  0x35   : > { %v482_v7 = vmax.f32 %v450_v2, 0.0  ;;  %v483_v8 = vmax.f32 %v451_v3, 0.0 }
  0x36   : > { %v499_v11 = vmax.f32 %v467_v6, 0.0 }
  0x37   : > { %v509_v14 = vpack.c.bf16 %v483_v8, %v482_v7 }
  0x3c   : > { %1159 = vmatmul.msk.bf16.gmra.mxu1 %vm634_vm1, %v506_v9  ;;  %v498_v9 = vmax.f32 %v466_v5, 0.0 }
  0x3e   : > { %1167 = vmatmul.msk.bf16.gmra.mxu3 %vm634_vm1, %v514_v13  ;;  %v1271_v13 = vld [vmem:[%s1395_s11 + $0x70] sm:$0xff]   ;;  %v517_v17 = vpack.c.bf16 %v499_v11, %v498_v9 }
  0x3f   : > { %v1252_v18 = vunpack.c.l.bf16 %v1271_v13  ;;  %v1253_v19 = vunpack.c.h.bf16 %v1271_v13 }
  0x41   : > { %1152 = vmatmul.msk.bf16.gmra.mxu2 %vm634_vm1, %v1189_v20  ;;  %1144 = vmatmul.msk.bf16.gmra.mxu0 %vm634_vm1, %v1181_v21  ;;  %v416_v20 = vmul.f32 %v1400_v4, %v1220_v15  ;;  %v417_v21 = vmul.f32 %v1400_v4, %v1221_v16  ;;  %v432_v22 = vmul.f32 %v1400_v4, %v1252_v18 }
  0x42   : > { %v433_v23 = vmul.f32 %v1400_v4, %v1253_v19 }
  0x43   : > { %v452_v26 = vadd.f32 %v1408_v10, %v416_v20  ;;  %v453_v27 = vadd.f32 %v1408_v10, %v417_v21  ;;  %v468_v28 = vadd.f32 %v1408_v10, %v432_v22 }
  0x44   : > { %v469_v29 = vadd.f32 %v1408_v10, %v433_v23 }
  0x45   : > { %v484_v30 = vmax.f32 %v452_v26, 0.0  ;;  %v485_v31 = vmax.f32 %v453_v27, 0.0 }
  0x46   : > { %v501_v33 = vmax.f32 %v469_v29, 0.0 }
  0x47   : > { %v510_v36 = vpack.c.bf16 %v485_v31, %v484_v30 }
  0x4c   : > { %1160 = vmatmul.msk.bf16.gmra.mxu1 %vm634_vm1, %v507_v32  ;;  %v500_v32 = vmax.f32 %v468_v28, 0.0 }
  0x4e   : > { %1168 = vmatmul.msk.bf16.gmra.mxu3 %vm634_vm1, %v515_v35  ;;  %v1272_v35 = vld [vmem:[%s1395_s11 + $0x78] sm:$0xff]   ;;  %v518_v39 = vpack.c.bf16 %v501_v33, %v500_v32 }
  0x4f   : > { %v1256_v40 = vunpack.c.l.bf16 %v1272_v35  ;;  %v1257_v41 = vunpack.c.h.bf16 %v1272_v35 }
  0x51   : > { %1153 = vmatmul.msk.bf16.gmra.mxu2 %vm634_vm1, %v1190_v42  ;;  %1145 = vmatmul.msk.bf16.gmra.mxu0 %vm634_vm1, %v1182_v43  ;;  %v418_v42 = vmul.f32 %v1400_v4, %v1224_v37  ;;  %v419_v43 = vmul.f32 %v1400_v4, %v1225_v38  ;;  %v434_v44 = vmul.f32 %v1400_v4, %v1256_v40 }
  0x52   : > { %v435_v45 = vmul.f32 %v1400_v4, %v1257_v41 }
  0x53   : > { %v454_v48 = vadd.f32 %v1408_v10, %v418_v42  ;;  %v455_v49 = vadd.f32 %v1408_v10, %v419_v43  ;;  %v470_v50 = vadd.f32 %v1408_v10, %v434_v44 }
  0x54   : > { %v471_v51 = vadd.f32 %v1408_v10, %v435_v45 }
  0x55   : > { %v486_v52 = vmax.f32 %v454_v48, 0.0  ;;  %v487_v53 = vmax.f32 %v455_v49, 0.0 }
  0x56   : > { %v503_v55 = vmax.f32 %v471_v51, 0.0 }
  0x57   : > { %v511_v4 = vpack.c.bf16 %v487_v53, %v486_v52 }
  0x5c   : > { %1161 = vmatmul.msk.bf16.gmra.mxu1 %vm634_vm1, %v508_v54  ;;  %v502_v54 = vmax.f32 %v470_v50, 0.0 }
  0x5e   : > { %1169 = vmatmul.msk.bf16.gmra.mxu3 %vm634_vm1, %v516_v57  ;;  %v519_v56 = vpack.c.bf16 %v503_v55, %v502_v54 }
  0x61   : > { %1154 = vmatmul.msk.bf16.gmra.mxu2 %vm634_vm1, %v1191_v0  ;;  %1146 = vmatmul.msk.bf16.gmra.mxu0 %vm634_vm1, %v1183_v1 }
  0x6c   : > { %1162 = vmatmul.msk.bf16.gmra.mxu1 %vm634_vm1, %v509_v14 }
  0x6e   : > { %1170 = vmatmul.msk.bf16.gmra.mxu3 %vm634_vm1, %v517_v17 }
  0x71   : > { %1155 = vmatmul.msk.bf16.gmra.mxu2 %vm634_vm1, %v1192_v24  ;;  %1147 = vmatmul.msk.bf16.gmra.mxu0 %vm634_vm1, %v1184_v25 }
  0x7c   : > { %1163 = vmatmul.msk.bf16.gmra.mxu1 %vm634_vm1, %v510_v36 }
  0x7e   : > { %1171 = vmatmul.msk.bf16.gmra.mxu3 %vm634_vm1, %v518_v39 }
  0x81   : > { %1156 = vmatmul.msk.bf16.gmra.mxu2 %vm634_vm1, %v1193_v46  ;;  %1148 = vmatmul.msk.bf16.gmra.mxu0 %vm634_vm1, %v1185_v47 }
  0x8c   : > { %1164 = vmatmul.msk.bf16.gmra.mxu1 %vm634_vm1, %v511_v4 }
  0x8e   : > { %1172 = vmatmul.msk.bf16.gmra.mxu3 %vm634_vm1, %v519_v56  ;;  %v696_v57 = vpop.f32.mrf.mxu0 }
  0x94   : > { %v736_v58 = vpop.f32.mrf.mxu2 }
  0x96   : > { %v698_v59 = vpop.f32.mrf.mxu0 }
  0x99   : > { %v836_v10 = vpop.f32.mrf.mxu1 }
  0x9a   : > { %v837_v60 = vadd.f32 %v836_v10, %v696_v57 }
  0x9c   : > { %917 = vst.msk [vmem:[%s1539_s19] sm:$0xff] %vm916_vm2, %v837_v60  ;;  %v738_v61 = vpop.f32.mrf.mxu2 }
  0x9e   : > { %v701_v63 = vpop.f32.mrf.mxu0 }
  0xa1   : > { %v876_v62 = vpop.f32.mrf.mxu3  ;;  %v838_v1 = vpop.f32.mrf.mxu1 }
  0xa2   : > { %v877_v0 = vadd.f32 %v876_v62, %v736_v58  ;;  %v839_v2 = vadd.f32 %v838_v1, %v698_v59 }
  0xa4   : > { %933 = vst.msk [vmem:[%s1539_s19 + $0x80] sm:$0xff] %vm916_vm2, %v877_v0  ;;  %v741_v3 = vpop.f32.mrf.mxu2 }
  0xa5   : > { %918 = vst.msk [vmem:[%s1539_s19 + $0x8] sm:$0xff] %vm916_vm2, %v839_v2 }
  0xa6   : > { %v703_v6 = vpop.f32.mrf.mxu0 }
  0xa9   : > { %v878_v5 = vpop.f32.mrf.mxu3  ;;  %v841_v8 = vpop.f32.mrf.mxu1 }
  0xaa   : > { %v879_v7 = vadd.f32 %v878_v5, %v738_v61  ;;  %v842_v9 = vadd.f32 %v841_v8, %v701_v63 }
  0xac   : > { %934 = vst.msk [vmem:[%s1539_s19 + $0x88] sm:$0xff] %vm916_vm2, %v879_v7  ;;  %v743_v11 = vpop.f32.mrf.mxu2 }
  0xad   : > { %919 = vst.msk [vmem:[%s1539_s19 + $0x10] sm:$0xff] %vm916_vm2, %v842_v9 }
  0xae   : > { %v706_v13 = vpop.f32.mrf.mxu0 }
  0xb1   : > { %v881_v12 = vpop.f32.mrf.mxu3  ;;  %v843_v15 = vpop.f32.mrf.mxu1 }
  0xb2   : > { %v882_v14 = vadd.f32 %v881_v12, %v741_v3  ;;  %v844_v16 = vadd.f32 %v843_v15, %v703_v6 }
  0xb4   : > { %935 = vst.msk [vmem:[%s1539_s19 + $0x90] sm:$0xff] %vm916_vm2, %v882_v14  ;;  %v746_v17 = vpop.f32.mrf.mxu2 }
  0xb5   : > { %920 = vst.msk [vmem:[%s1539_s19 + $0x18] sm:$0xff] %vm916_vm2, %v844_v16 }
  0xb6   : > { %v708_v19 = vpop.f32.mrf.mxu0 }
  0xb9   : > { %v883_v18 = vpop.f32.mrf.mxu3  ;;  %v846_v21 = vpop.f32.mrf.mxu1 }
  0xba   : > { %v884_v20 = vadd.f32 %v883_v18, %v743_v11  ;;  %v847_v22 = vadd.f32 %v846_v21, %v706_v13 }
  0xbc   : > { %936 = vst.msk [vmem:[%s1539_s19 + $0x98] sm:$0xff] %vm916_vm2, %v884_v20  ;;  %v748_v23 = vpop.f32.mrf.mxu2 }
  0xbd   : > { %921 = vst.msk [vmem:[%s1539_s19 + $0x20] sm:$0xff] %vm916_vm2, %v847_v22 }
  0xbe   : > { %v711_v25 = vpop.f32.mrf.mxu0 }
  0xc1   : > { %v886_v24 = vpop.f32.mrf.mxu3  ;;  %v848_v27 = vpop.f32.mrf.mxu1 }
  0xc2   : > { %v887_v26 = vadd.f32 %v886_v24, %v746_v17  ;;  %v849_v28 = vadd.f32 %v848_v27, %v708_v19 }
  0xc4   : > { %937 = vst.msk [vmem:[%s1539_s19 + $0xa0] sm:$0xff] %vm916_vm2, %v887_v26  ;;  %v751_v29 = vpop.f32.mrf.mxu2 }
  0xc5   : > { %922 = vst.msk [vmem:[%s1539_s19 + $0x28] sm:$0xff] %vm916_vm2, %v849_v28 }
  0xc6   : > { %v713_v31 = vpop.f32.mrf.mxu0 }
  0xc9   : > { %v888_v30 = vpop.f32.mrf.mxu3  ;;  %v851_v33 = vpop.f32.mrf.mxu1 }
  0xca   : > { %v889_v32 = vadd.f32 %v888_v30, %v748_v23  ;;  %v852_v34 = vadd.f32 %v851_v33, %v711_v25 }
  0xcc   : > { %938 = vst.msk [vmem:[%s1539_s19 + $0xa8] sm:$0xff] %vm916_vm2, %v889_v32  ;;  %v753_v35 = vpop.f32.mrf.mxu2 }
  0xcd   : > { %923 = vst.msk [vmem:[%s1539_s19 + $0x30] sm:$0xff] %vm916_vm2, %v852_v34 }
  0xce   : > { %v716_v37 = vpop.f32.mrf.mxu0 }
  0xd1   : > { %v891_v36 = vpop.f32.mrf.mxu3  ;;  %v853_v39 = vpop.f32.mrf.mxu1 }
  0xd2   : > { %v892_v38 = vadd.f32 %v891_v36, %v751_v29  ;;  %v854_v40 = vadd.f32 %v853_v39, %v713_v31 }
  0xd4   : > { %939 = vst.msk [vmem:[%s1539_s19 + $0xb0] sm:$0xff] %vm916_vm2, %v892_v38  ;;  %v756_v41 = vpop.f32.mrf.mxu2 }
  0xd5   : > { %924 = vst.msk [vmem:[%s1539_s19 + $0x38] sm:$0xff] %vm916_vm2, %v854_v40 }
  0xd6   : > { %v718_v43 = vpop.f32.mrf.mxu0 }
  0xd9   : > { %v893_v42 = vpop.f32.mrf.mxu3  ;;  %v856_v45 = vpop.f32.mrf.mxu1 }
  0xda   : > { %v894_v44 = vadd.f32 %v893_v42, %v753_v35  ;;  %v857_v46 = vadd.f32 %v856_v45, %v716_v37 }
  0xdc   : > { %940 = vst.msk [vmem:[%s1539_s19 + $0xb8] sm:$0xff] %vm916_vm2, %v894_v44  ;;  %v758_v47 = vpop.f32.mrf.mxu2 }
  0xdd   : > { %925 = vst.msk [vmem:[%s1539_s19 + $0x40] sm:$0xff] %vm916_vm2, %v857_v46 }
  0xde   : > { %v721_v49 = vpop.f32.mrf.mxu0 }
  0xe1   : > { %v896_v48 = vpop.f32.mrf.mxu3  ;;  %v858_v51 = vpop.f32.mrf.mxu1 }
  0xe2   : > { %v897_v50 = vadd.f32 %v896_v48, %v756_v41  ;;  %v859_v52 = vadd.f32 %v858_v51, %v718_v43 }
  0xe4   : > { %941 = vst.msk [vmem:[%s1539_s19 + $0xc0] sm:$0xff] %vm916_vm2, %v897_v50  ;;  %v761_v53 = vpop.f32.mrf.mxu2 }
  0xe5   : > { %926 = vst.msk [vmem:[%s1539_s19 + $0x48] sm:$0xff] %vm916_vm2, %v859_v52 }
  0xe6   : > { %v723_v56 = vpop.f32.mrf.mxu0 }
  0xe9   : > { %v898_v54 = vpop.f32.mrf.mxu3  ;;  %v861_v4 = vpop.f32.mrf.mxu1 }
  0xea   : > { %v899_v55 = vadd.f32 %v898_v54, %v758_v47  ;;  %v862_v57 = vadd.f32 %v861_v4, %v721_v49 }
  0xec   : > { %942 = vst.msk [vmem:[%s1539_s19 + $0xc8] sm:$0xff] %vm916_vm2, %v899_v55  ;;  %v763_v58 = vpop.f32.mrf.mxu2 }
  0xed   : > { %927 = vst.msk [vmem:[%s1539_s19 + $0x50] sm:$0xff] %vm916_vm2, %v862_v57 }
  0xee   : > { %v726_v62 = vpop.f32.mrf.mxu0 }
  0xf1   : > { %v901_v59 = vpop.f32.mrf.mxu3  ;;  %v863_v60 = vpop.f32.mrf.mxu1 }
  0xf2   : > { %v902_v10 = vadd.f32 %v901_v59, %v761_v53  ;;  %v864_v61 = vadd.f32 %v863_v60, %v723_v56 }
  0xf4   : > { %943 = vst.msk [vmem:[%s1539_s19 + $0xd0] sm:$0xff] %vm916_vm2, %v902_v10  ;;  %v766_v2 = vpop.f32.mrf.mxu2 }
  0xf5   : > { %928 = vst.msk [vmem:[%s1539_s19 + $0x58] sm:$0xff] %vm916_vm2, %v864_v61 }
  0xf6   : > { %v728_v5 = vpop.f32.mrf.mxu0 }
  0xf9   : > { %v903_v63 = vpop.f32.mrf.mxu3  ;;  %v866_v1 = vpop.f32.mrf.mxu1 }
  0xfa   : > { %v904_v0 = vadd.f32 %v903_v63, %v763_v58  ;;  %v867_v3 = vadd.f32 %v866_v1, %v726_v62 }
  0xfc   : > { %944 = vst.msk [vmem:[%s1539_s19 + $0xd8] sm:$0xff] %vm916_vm2, %v904_v0  ;;  %v768_v11 = vpop.f32.mrf.mxu2 }
  0xfd   : > { %929 = vst.msk [vmem:[%s1539_s19 + $0x60] sm:$0xff] %vm916_vm2, %v867_v3 }
  0xfe   : > { %v731_v12 = vpop.f32.mrf.mxu0 }
 0x101   : > { %v906_v6 = vpop.f32.mrf.mxu3  ;;  %v868_v8 = vpop.f32.mrf.mxu1 }
 0x102   : > { %v907_v7 = vadd.f32 %v906_v6, %v766_v2  ;;  %v869_v9 = vadd.f32 %v868_v8, %v728_v5 }
 0x104   : > { %945 = vst.msk [vmem:[%s1539_s19 + $0xe0] sm:$0xff] %vm916_vm2, %v907_v7  ;;  %v771_v17 = vpop.f32.mrf.mxu2 }
 0x105   : > { %930 = vst.msk [vmem:[%s1539_s19 + $0x68] sm:$0xff] %vm916_vm2, %v869_v9 }
 0x106   : > { %v733_v19 = vpop.f32.mrf.mxu0 }
 0x109   : > { %v908_v13 = vpop.f32.mrf.mxu3  ;;  %v871_v15 = vpop.f32.mrf.mxu1 }
 0x10a   : > { %v909_v14 = vadd.f32 %v908_v13, %v768_v11  ;;  %v872_v16 = vadd.f32 %v871_v15, %v731_v12 }
 0x10c   : > { %946 = vst.msk [vmem:[%s1539_s19 + $0xe8] sm:$0xff] %vm916_vm2, %v909_v14  ;;  %v773_v23 = vpop.f32.mrf.mxu2 }
 0x10d   : > { %931 = vst.msk [vmem:[%s1539_s19 + $0x70] sm:$0xff] %vm916_vm2, %v872_v16 }
 0x111   : > { %v911_v18 = vpop.f32.mrf.mxu3  ;;  %v873_v21 = vpop.f32.mrf.mxu1 }
 0x112   : > { %v912_v20 = vadd.f32 %v911_v18, %v771_v17  ;;  %v874_v22 = vadd.f32 %v873_v21, %v733_v19 }
 0x114   : > { %947 = vst.msk [vmem:[%s1539_s19 + $0xf0] sm:$0xff] %vm916_vm2, %v912_v20 }
 0x115   : > { %932 = vst.msk [vmem:[%s1539_s19 + $0x78] sm:$0xff] %vm916_vm2, %v874_v22 }
 0x119   : > { %v913_v24 = vpop.f32.mrf.mxu3 }
 0x11a   : > { %v914_v25 = vadd.f32 %v913_v24, %v773_v23 }
 0x11c   : > { %948 = vst.msk [vmem:[%s1539_s19 + $0xf8] sm:$0xff] %vm916_vm2, %v914_v25 }
 0x11d PF: > { %s16_s23 = sadd.s32 1, %s1323_s23   ;;  %s1621_s21 = smov %s1319_s22 }
 0x11e   : > { %p13_p5 = scmp.ge.s32.totalorder %s16_s23, 4   ;;  %s1622_s22 = smov %s1624_s24 }
 0x120   :  { %15 = sbr.rel (!%p13_p5) target bundleno = 2 (0x2), region = 77 }

// kernel: input_bottleneck_block.4
= control target key start
LH: loop header
LB: loop body
LE: loop exit
PB: predicated region body
PF: predicated region fallthrough
CT: control target
= control target key end

     0   :  { %s6612_s27 = smov 0   ;;  %s6614_s28 = smov 0   ;;  %s8634_s0 = inlined_call_operand.vmem [shape: bf16[2,16,16,4], index: 0, kind: input, shape index: {}, may-alias: {0,1,2}]   ;;  %s8635_s1 = inlined_call_operand.vmem [shape: bf16[2,16,16,4], index: 1, kind: input, shape index: {}, may-alias: {0,1,2}]   ;;  %s8636_s2 = inlined_call_operand.vmem [shape: bf16[2,16,16,4], index: 2, kind: input, shape index: {}, may-alias: {0,1,2}]   ;;  %s8637_s3 = inlined_call_operand.vmem [shape: f32[1,4], index: 3, kind: input, shape index: {}]   ;;  %s8638_s4 = inlined_call_operand.vmem [shape: f32[1,4], index: 4, kind: input, shape index: {}]   ;;  %s8639_s5 = inlined_call_operand.vmem [shape: bf16[9,4,4], index: 5, kind: input, shape index: {}]   ;;  %s8640_s6 = inlined_call_operand.vmem [shape: bf16[2,16,16,4], index: 6, kind: output, shape index: {0}]   ;;  %s8641_s7 = inlined_call_operand.vmem [shape: f32[2,1,1,4], index: 7, kind: output, shape index: {1}]   ;;  %s8642_s8 = inlined_call_operand.vmem [shape: f32[2,1,1,4], index: 8, kind: output, shape index: {2}]  }
   0x1   :  { %s6616_s29 = smov 0  }
   0x2 LB: > { %s31_s30 = sadd.s32 1, %s6558_s28  ;;  %p5524_p0 = scmp.ge.s32.totalorder %s6562_s29, 1  ;;  %s6562_s29 = sphi %s6616_s29, %s19_s29   ;;  %s6558_s28 = sphi %s6614_s28, %s8959_s28   ;;  %s6554_s27 = sphi %s6612_s27, %s8958_s27  }
   0x3   : > { %p33_p1 = scmp.ge.s32.totalorder %s31_s30, 2  ;;  %p357_p2 = scmp.lt.s32.totalorder %s6562_s29, 3 }
   0x5   : > { %s8961_s30 = smov (%p33_p1, %s31_s30), 0  ;;  %p358_p3 = pnand %p5524_p0, %p357_p2 }
   0x7   : > { %361 = sbr.rel (%p358_p3) target bundleno = 771 (0x303), region = 44 }
   0xc   : > { %v5565_v0 = vld [vmem:[%s8639_s5 + $0x2] sm:$0x3]  ;;  %vm1901_vm0 = vcmask 1041408   ;;  %p440_p4 = scmp.lt.s32.totalorder %s6554_s27, 1  ;;  %v5662_v2 = vld [vmem:[%s8639_s5 + $0x4] sm:$0x3] }
   0xd   : > { %v1903_v1 = vsel %vm1901_vm0, %v5565_v0, 0  ;;  %v2748_v3 = vsel %vm1901_vm0, %v5662_v2, 0  ;;  %v5680_v4 = vld [vmem:[%s8639_s5 + $0x8] sm:$0x3]  ;;  %v1769_v5 = vld [vmem:[%s8639_s5] sm:$0x3] }
   0xe   : > { %6502 = vmatpush.bf16.msra.mxu1 %v1903_v1  ;;  %6503 = vmatpush.bf16.msra.mxu2 %v1903_v1  ;;  %s8963_s27 = smov (!%p440_p4, %s6554_s27), 1  ;;  %v3120_v6 = vsel %vm1901_vm0, %v5680_v4, 0  ;;  %v2196_v7 = vsel %vm1901_vm0, %v1769_v5, 0  ;;  %v5679_v8 = vld [vmem:[%s8639_s5 + $0x6] sm:$0x3]  ;;  %vm510_vm1 = vcmask 27648  }
   0xf   : > { %6504 = vmatpush.bf16.msra.mxu3 %v1903_v1  ;;  %1912 = vmatpush.bf16.msra.mxu0 %v1903_v1  ;;  %s6647_s17 = sshll.u32 %s8963_s27, 7  ;;  %v6663_v9 = vld [vmem:[%s8637_s3] ss:$0 sm:$0xff]  ;;  %v3412_v10 = vsel %vm1901_vm0, %v5679_v8, 0  ;;  %v8643_v14 = vmov 0.0   ;;  %vm1852_vm2 = vcmask 31744   ;;  %s500_s20 = scalar_lea.vmem %s8641_s7, %s8963_s27 }
  0x10   : > { %s6658_s22 = scalar_lea.vmem %s8634_s0, %s6647_s17  ;;  %s462_s9 = scalar_lea.vmem %s8635_s1, %s6647_s17  ;;  %v6674_v15 = vunpack.c.l.bf16 %v8643_v14  ;;  %v6679_v16 = vld [vmem:[%s8638_s4] ss:$0 sm:$0xff]  ;;  %vm1622_vm7 = vcmask 1046528   ;;  %vm2417_vm8 = vcmask 1040384   ;;  %vm1994_vm11 = vsmask.f32 4352 }
  0x11   : > { %v6399_v11 = vld [vmem:[%s6658_s22 + $0x18] sm:$0xff]   ;;  %v5965_v21 = vld [vmem:[%s462_s9] sm:$0xff]   ;;  %vm2566_vm12 = vsmask.f32 7424  ;;  %s8195_s9 = scalar_lea.vmem %s8640_s6, %s6647_s17  ;;  %s5914_s10 = sadd.s32 120, %s6647_s17 }
  0x12   : > { %2757 = vmatpush.bf16.msrb.mxu2 %v2748_v3  ;;  %2205 = vmatpush.bf16.msrb.mxu1 %v2196_v7  ;;  %v6403_v12 = vld [vmem:[%s6658_s22 + $0x38] sm:$0xff]   ;;  %8723 = vst [vmem:[#allocation3_spill] sm:$0xff] %v6674_v15  ;;  %v5982_v17 = vunpack.c.l.bf16 %v6399_v11  ;;  %v5983_v18 = vunpack.c.h.bf16 %v6399_v11  ;;  %v5966_v24 = vunpack.c.l.bf16 %v5965_v21  ;;  %v5967_v25 = vunpack.c.h.bf16 %v5965_v21  ;;  %v6400_v50 = vld [vmem:[%s6658_s22 + $0x20] sm:$0xff]   ;;  %s479_s12 = scalar_lea.vmem %s8636_s2, %s5914_s10  ;;  %s506_s23 = scalar_lea.vmem %s8642_s8, %s8963_s27 }
  0x13   : > { %3129 = vmatpush.bf16.msrb.mxu3 %v3120_v6  ;;  %v6407_v13 = vld [vmem:[%s6658_s22 + $0x58] sm:$0xff]   ;;  %3421 = vmatpush.bf16.msrb.mxu0 %v3412_v10  ;;  %v5998_v19 = vunpack.c.l.bf16 %v6403_v12  ;;  %v5999_v20 = vunpack.c.h.bf16 %v6403_v12  ;;  %v6404_v51 = vld [vmem:[%s6658_s22 + $0x40] sm:$0xff]   ;;  %v5986_v61 = vunpack.c.l.bf16 %v6400_v50  ;;  %v5987_v62 = vunpack.c.h.bf16 %v6400_v50 }
  0x14   : > { %v6014_v22 = vunpack.c.l.bf16 %v6407_v13  ;;  %v6015_v23 = vunpack.c.h.bf16 %v6407_v13  ;;  %v640_v26 = vmul.f32 %v6663_v9, %v5982_v17  ;;  %v641_v27 = vmul.f32 %v6663_v9, %v5983_v18  ;;  %v6408_v56 = vld [vmem:[%s6658_s22 + $0x60] sm:$0xff]  }
  0x15   : > { %v648_v28 = vmul.f32 %v6663_v9, %v5998_v19  ;;  %v649_v29 = vmul.f32 %v6663_v9, %v5999_v20  ;;  %v546_v32 = vmul.f32 %v6663_v9, %v5966_v24  ;;  %v547_v33 = vmul.f32 %v6663_v9, %v5967_v25  ;;  %v5969_v21 = vld [vmem:[%s6658_s22] sm:$0xff]  }
  0x16   : > { %v656_v30 = vmul.f32 %v6663_v9, %v6014_v22  ;;  %v657_v31 = vmul.f32 %v6663_v9, %v6015_v23  ;;  %v672_v34 = vadd.f32 %v6679_v16, %v640_v26  ;;  %v673_v35 = vadd.f32 %v6679_v16, %v641_v27 }
  0x17   : > { %v680_v36 = vadd.f32 %v6679_v16, %v648_v28  ;;  %v681_v37 = vadd.f32 %v6679_v16, %v649_v29  ;;  %v551_v40 = vadd.f32 %v6679_v16, %v546_v32  ;;  %v552_v41 = vadd.f32 %v6679_v16, %v547_v33 }
  0x18   : > { %v688_v38 = vadd.f32 %v6679_v16, %v656_v30  ;;  %v689_v39 = vadd.f32 %v6679_v16, %v657_v31  ;;  %v704_v42 = vmax.f32 %v672_v34, 0.0  ;;  %v705_v43 = vmax.f32 %v673_v35, 0.0  ;;  %v6401_v34 = vld [vmem:[%s6658_s22 + $0x28] sm:$0xff]  }
  0x19   : > { %v712_v44 = vmax.f32 %v680_v36, 0.0  ;;  %v713_v45 = vmax.f32 %v681_v37, 0.0  ;;  %v553_v48 = vmax.f32 %v551_v40, 0.0  ;;  %v554_v49 = vmax.f32 %v552_v41, 0.0  ;;  %v6405_v35 = vld [vmem:[%s6658_s22 + $0x48] sm:$0xff]  }
  0x1a   : > { %v720_v46 = vmax.f32 %v688_v38, 0.0  ;;  %v721_v47 = vmax.f32 %v689_v39, 0.0  ;;  %v736_v52 = vpack.c.bf16 %v704_v42, %v704_v42  ;;  %v737_v53 = vpack.c.bf16 %v705_v43, %v705_v43  ;;  %v6409_v41 = vld [vmem:[%s6658_s22 + $0x68] sm:$0xff]  }
  0x1b   : > { %v744_v54 = vpack.c.bf16 %v712_v44, %v712_v44  ;;  %v745_v55 = vpack.c.bf16 %v713_v45, %v713_v45  ;;  %v555_v59 = vpack.c.bf16 %v553_v48, %v553_v48  ;;  %v556_v60 = vpack.c.bf16 %v554_v49, %v554_v49 }
  0x1c   : > { %v752_v57 = vpack.c.bf16 %v720_v46, %v720_v46  ;;  %v753_v58 = vpack.c.bf16 %v721_v47, %v721_v47  ;;  %768 = vst.msk [vmem:[#allocation2 + $0x24] sm:$0xf] %vm510_vm1, %v736_v52  ;;  %v6002_v63 = vunpack.c.l.bf16 %v6404_v51  ;;  %v6003_v0 = vunpack.c.h.bf16 %v6404_v51  ;;  %v6397_v46 = vld [vmem:[%s6658_s22 + $0x8] sm:$0xff]  }
  0x1d   : > { %769 = vst.msk [vmem:[#allocation2 + $0x28] sm:$0xf] %vm510_vm1, %v737_v53  ;;  %v561_v1 = vunpack.c.l.bf16 %v555_v59  ;;  %v562_v2 = vunpack.c.l.bf16 %v556_v60  ;;  %v6018_v3 = vunpack.c.l.bf16 %v6408_v56  ;;  %v6019_v4 = vunpack.c.h.bf16 %v6408_v56 }
  0x1e   : > { %776 = vst.msk [vmem:[#allocation2 + $0x44] sm:$0xf] %vm510_vm1, %v744_v54  ;;  %v642_v5 = vmul.f32 %v6663_v9, %v5986_v61  ;;  %v643_v6 = vmul.f32 %v6663_v9, %v5987_v62  ;;  %v650_v7 = vmul.f32 %v6663_v9, %v6002_v63  ;;  %v651_v8 = vmul.f32 %v6663_v9, %v6003_v0 }
  0x1f   : > { %777 = vst.msk [vmem:[#allocation2 + $0x48] sm:$0xf] %vm510_vm1, %v745_v55  ;;  %v564_v10 = vmul.f32 %v6674_v15, %v561_v1  ;;  %v565_v11 = vmul.f32 %v6674_v15, %v562_v2  ;;  %v658_v12 = vmul.f32 %v6663_v9, %v6018_v3  ;;  %v659_v13 = vmul.f32 %v6663_v9, %v6019_v4 }
  0x20   : > { %784 = vst.msk [vmem:[#allocation2 + $0x64] sm:$0xf] %vm510_vm1, %v752_v57  ;;  %v674_v17 = vadd.f32 %v6679_v16, %v642_v5  ;;  %v675_v18 = vadd.f32 %v6679_v16, %v643_v6  ;;  %v682_v19 = vadd.f32 %v6679_v16, %v650_v7  ;;  %v683_v20 = vadd.f32 %v6679_v16, %v651_v8 }
  0x21   : > { %785 = vst.msk [vmem:[#allocation2 + $0x68] sm:$0xf] %vm510_vm1, %v753_v58  ;;  %v566_v22 = vpack.c.bf16 %v564_v10, %v564_v10  ;;  %v567_v23 = vpack.c.bf16 %v565_v11, %v565_v11  ;;  %v690_v24 = vadd.f32 %v6679_v16, %v658_v12  ;;  %v691_v25 = vadd.f32 %v6679_v16, %v659_v13 }
  0x22   : > { %v706_v26 = vmax.f32 %v674_v17, 0.0  ;;  %v707_v27 = vmax.f32 %v675_v18, 0.0  ;;  %v714_v28 = vmax.f32 %v682_v19, 0.0  ;;  %v715_v29 = vmax.f32 %v683_v20, 0.0 }
  0x23   : > { %568 = vst.msk [vmem:[#allocation2 + $0x4] sm:$0xf] %vm510_vm1, %v566_v22  ;;  %v722_v30 = vmax.f32 %v690_v24, 0.0  ;;  %v723_v31 = vmax.f32 %v691_v25, 0.0  ;;  %v5970_v32 = vunpack.c.l.bf16 %v5969_v21  ;;  %v5971_v33 = vunpack.c.h.bf16 %v5969_v21  ;;  %v6402_v22 = vld [vmem:[%s6658_s22 + $0x30] sm:$0xff]  }
  0x24   : > { %v5920_v36 = vld [vmem:[#allocation2 + $0x24] sm:$0xff]  ;;  %569 = vst.msk [vmem:[#allocation2 + $0x8] sm:$0xf] %vm510_vm1, %v567_v23  ;;  %v738_v37 = vpack.c.bf16 %v706_v26, %v706_v26  ;;  %v739_v38 = vpack.c.bf16 %v707_v27, %v707_v27  ;;  %v746_v39 = vpack.c.bf16 %v714_v28, %v714_v28  ;;  %v747_v40 = vpack.c.bf16 %v715_v29, %v715_v29  ;;  %v6406_v23 = vld [vmem:[%s6658_s22 + $0x50] sm:$0xff]  }
  0x25   : > { %v754_v42 = vpack.c.bf16 %v722_v30, %v722_v30  ;;  %v755_v43 = vpack.c.bf16 %v723_v31, %v723_v31  ;;  %v634_v44 = vmul.f32 %v6663_v9, %v5970_v32  ;;  %v635_v45 = vmul.f32 %v6663_v9, %v5971_v33  ;;  %5634 = vmatmul.msk.bf16.vlgmr.msra.gmra.mxu1 %vm1852_vm2, %v5920_v36  ;;  %v6410_v32 = vld [vmem:[%s6658_s22 + $0x70] sm:$0xff]  }
  0x26   : > { %v5924_v47 = vld [vmem:[#allocation2 + $0x44] sm:$0xff]  ;;  %770 = vst.msk [vmem:[#allocation2 + $0x2c] sm:$0xf] %vm510_vm1, %v738_v37  ;;  %v5990_v48 = vunpack.c.l.bf16 %v6401_v34  ;;  %v5991_v49 = vunpack.c.h.bf16 %v6401_v34  ;;  %v6006_v50 = vunpack.c.l.bf16 %v6405_v35  ;;  %v6007_v51 = vunpack.c.h.bf16 %v6405_v35 }
  0x27   : > { %771 = vst.msk [vmem:[#allocation2 + $0x30] sm:$0xf] %vm510_vm1, %v739_v38  ;;  %v666_v52 = vadd.f32 %v6679_v16, %v634_v44  ;;  %v667_v53 = vadd.f32 %v6679_v16, %v635_v45  ;;  %v6022_v54 = vunpack.c.l.bf16 %v6409_v41  ;;  %v6023_v55 = vunpack.c.h.bf16 %v6409_v41  ;;  %5638 = vmatmul.msk.bf16.vlgmr.msra.gmra.mxu2 %vm1852_vm2, %v5924_v47 }
  0x28   : > { %v5928_v56 = vld [vmem:[#allocation2 + $0x64] sm:$0xff]  ;;  %778 = vst.msk [vmem:[#allocation2 + $0x4c] sm:$0xf] %vm510_vm1, %v746_v39  ;;  %v644_v57 = vmul.f32 %v6663_v9, %v5990_v48  ;;  %v645_v58 = vmul.f32 %v6663_v9, %v5991_v49  ;;  %v652_v59 = vmul.f32 %v6663_v9, %v6006_v50  ;;  %v5974_v60 = vunpack.c.l.bf16 %v6397_v46 }
  0x29   : > { %779 = vst.msk [vmem:[#allocation2 + $0x50] sm:$0xf] %vm510_vm1, %v747_v40  ;;  %v698_v61 = vmax.f32 %v666_v52, 0.0  ;;  %v699_v62 = vmax.f32 %v667_v53, 0.0  ;;  %v653_v63 = vmul.f32 %v6663_v9, %v6007_v51  ;;  %v660_v0 = vmul.f32 %v6663_v9, %v6022_v54  ;;  %5642 = vmatmul.msk.bf16.vlgmr.msra.gmra.mxu3 %vm1852_vm2, %v5928_v56 }
  0x2a   : > { %786 = vst.msk [vmem:[#allocation2 + $0x6c] sm:$0xf] %vm510_vm1, %v754_v42  ;;  %v676_v1 = vadd.f32 %v6679_v16, %v644_v57  ;;  %v677_v2 = vadd.f32 %v6679_v16, %v645_v58  ;;  %v684_v3 = vadd.f32 %v6679_v16, %v652_v59  ;;  %v5975_v4 = vunpack.c.h.bf16 %v6397_v46  ;;  %v6398_v46 = vld [vmem:[%s6658_s22 + $0x10] sm:$0xff]  }
  0x2b   : > { %v5916_v5 = vld [vmem:[#allocation2 + $0x4] sm:$0xff]  ;;  %787 = vst.msk [vmem:[#allocation2 + $0x70] sm:$0xf] %vm510_vm1, %v755_v43  ;;  %v730_v6 = vpack.c.bf16 %v698_v61, %v698_v61  ;;  %v731_v7 = vpack.c.bf16 %v699_v62, %v699_v62  ;;  %v685_v8 = vadd.f32 %v6679_v16, %v653_v63  ;;  %v661_v10 = vmul.f32 %v6663_v9, %v6023_v55 }
  0x2c   : > { %v708_v11 = vmax.f32 %v676_v1, 0.0  ;;  %v709_v12 = vmax.f32 %v677_v2, 0.0  ;;  %v716_v13 = vmax.f32 %v684_v3, 0.0  ;;  %v692_v17 = vadd.f32 %v6679_v16, %v660_v0  ;;  %5630 = vmatmul.msk.bf16.vlgmr.msra.gmra.mxu0 %vm1852_vm2, %v5916_v5 }
  0x2d   : > { %762 = vst.msk [vmem:[#allocation2 + $0xc] sm:$0xf] %vm510_vm1, %v730_v6  ;;  %v717_v18 = vmax.f32 %v685_v8, 0.0  ;;  %v693_v19 = vadd.f32 %v6679_v16, %v661_v10  ;;  %v636_v20 = vmul.f32 %v6663_v9, %v5974_v60  ;;  %v637_v21 = vmul.f32 %v6663_v9, %v5975_v4 }
  0x2e   : > { %763 = vst.msk [vmem:[#allocation2 + $0x10] sm:$0xf] %vm510_vm1, %v731_v7  ;;  %v740_v24 = vpack.c.bf16 %v708_v11, %v708_v11  ;;  %v741_v25 = vpack.c.bf16 %v709_v12, %v709_v12  ;;  %v748_v26 = vpack.c.bf16 %v716_v13, %v716_v13  ;;  %v724_v27 = vmax.f32 %v692_v17, 0.0  ;;  %v5921_v41 = vld [vmem:[#allocation2 + $0x2c] sm:$0xff] }
  0x2f   : > { %v749_v28 = vpack.c.bf16 %v717_v18, %v717_v18  ;;  %v725_v29 = vmax.f32 %v693_v19, 0.0  ;;  %v668_v30 = vadd.f32 %v6679_v16, %v636_v20  ;;  %v669_v31 = vadd.f32 %v6679_v16, %v637_v21 }
  0x30   : > { %772 = vst.msk [vmem:[#allocation2 + $0x34] sm:$0xf] %vm510_vm1, %v740_v24  ;;  %v756_v33 = vpack.c.bf16 %v724_v27, %v724_v27  ;;  %v5994_v34 = vunpack.c.l.bf16 %v6402_v22  ;;  %v5995_v35 = vunpack.c.h.bf16 %v6402_v22  ;;  %v6010_v36 = vunpack.c.l.bf16 %v6406_v23  ;;  %v5925_v51 = vld [vmem:[#allocation2 + $0x4c] sm:$0xff] }
  0x31   : > { %773 = vst.msk [vmem:[#allocation2 + $0x38] sm:$0xf] %vm510_vm1, %v741_v25  ;;  %v757_v37 = vpack.c.bf16 %v725_v29, %v725_v29  ;;  %v700_v38 = vmax.f32 %v668_v30, 0.0  ;;  %v701_v39 = vmax.f32 %v669_v31, 0.0  ;;  %v6011_v40 = vunpack.c.h.bf16 %v6406_v23 }
  0x32   : > { %780 = vst.msk [vmem:[#allocation2 + $0x54] sm:$0xf] %vm510_vm1, %v748_v26  ;;  %v646_v42 = vmul.f32 %v6663_v9, %v5994_v34  ;;  %v647_v43 = vmul.f32 %v6663_v9, %v5995_v35  ;;  %v654_v44 = vmul.f32 %v6663_v9, %v6010_v36  ;;  %v6026_v45 = vunpack.c.l.bf16 %v6410_v32  ;;  %v5929_v60 = vld [vmem:[#allocation2 + $0x6c] sm:$0xff] }
  0x33   : > { %781 = vst.msk [vmem:[#allocation2 + $0x58] sm:$0xf] %vm510_vm1, %v749_v28  ;;  %v732_v47 = vpack.c.bf16 %v700_v38, %v700_v38  ;;  %v733_v48 = vpack.c.bf16 %v701_v39, %v701_v39  ;;  %v655_v49 = vmul.f32 %v6663_v9, %v6011_v40  ;;  %v6027_v50 = vunpack.c.h.bf16 %v6410_v32 }
  0x34   : > { %788 = vst.msk [vmem:[#allocation2 + $0x74] sm:$0xf] %vm510_vm1, %v756_v33  ;;  %v678_v52 = vadd.f32 %v6679_v16, %v646_v42  ;;  %v679_v53 = vadd.f32 %v6679_v16, %v647_v43  ;;  %v686_v54 = vadd.f32 %v6679_v16, %v654_v44  ;;  %v662_v55 = vmul.f32 %v6663_v9, %v6026_v45  ;;  %v6810_v40 = vld [vmem:[#allocation2 + $0x8] sm:$0xff]  }
  0x35   : > { %789 = vst.msk [vmem:[#allocation2 + $0x78] sm:$0xf] %vm510_vm1, %v757_v37  ;;  %v687_v56 = vadd.f32 %v6679_v16, %v655_v49  ;;  %v663_v57 = vmul.f32 %v6663_v9, %v6027_v50  ;;  %v5978_v58 = vunpack.c.l.bf16 %v6398_v46  ;;  %v5979_v59 = vunpack.c.h.bf16 %v6398_v46  ;;  %5635 = vmatmul.msk.bf16.gmra.mxu1 %vm1852_vm2, %v5921_v41  ;;  %v5917_v10 = vld [vmem:[#allocation2 + $0xc] sm:$0xff]  ;;  %v1493_v37 = vld [vmem:[#allocation2 + $0x4] sm:$0xf] }
  0x36   : > { %764 = vst.msk [vmem:[#allocation2 + $0x14] sm:$0xf] %vm510_vm1, %v732_v47  ;;  %v710_v61 = vmax.f32 %v678_v52, 0.0  ;;  %v711_v62 = vmax.f32 %v679_v53, 0.0  ;;  %v718_v63 = vmax.f32 %v686_v54, 0.0  ;;  %v694_v0 = vadd.f32 %v6679_v16, %v662_v55 }
  0x37   : > { %765 = vst.msk [vmem:[#allocation2 + $0x18] sm:$0xf] %vm510_vm1, %v733_v48  ;;  %v719_v1 = vmax.f32 %v687_v56, 0.0  ;;  %v695_v2 = vadd.f32 %v6679_v16, %v663_v57  ;;  %v638_v3 = vmul.f32 %v6663_v9, %v5978_v58  ;;  %v639_v4 = vmul.f32 %v6663_v9, %v5979_v59  ;;  %5639 = vmatmul.msk.bf16.gmra.mxu2 %vm1852_vm2, %v5925_v51 }
  0x38   : > { %v742_v5 = vpack.c.bf16 %v710_v61, %v710_v61  ;;  %v743_v6 = vpack.c.bf16 %v711_v62, %v711_v62  ;;  %v750_v7 = vpack.c.bf16 %v718_v63, %v718_v63  ;;  %v726_v8 = vmax.f32 %v694_v0, 0.0  ;;  %v5922_v32 = vld [vmem:[#allocation2 + $0x34] sm:$0xff]  ;;  %v2287_v63 = vld [vmem:[#allocation2 + $0x4] sm:$0xf] }
  0x39   : > { %v751_v11 = vpack.c.bf16 %v719_v1, %v719_v1  ;;  %v727_v12 = vmax.f32 %v695_v2, 0.0  ;;  %v670_v13 = vadd.f32 %v6679_v16, %v638_v3  ;;  %v671_v17 = vadd.f32 %v6679_v16, %v639_v4  ;;  %5643 = vmatmul.msk.bf16.gmra.mxu3 %vm1852_vm2, %v5929_v60 }
  0x3a   : > { %774 = vst.msk [vmem:[#allocation2 + $0x3c] sm:$0xf] %vm510_vm1, %v742_v5  ;;  %v758_v18 = vpack.c.bf16 %v726_v8, %v726_v8  ;;  %v819_v19 = vlaneseq  ;;  %v6565_v29 = vmov 1.0|1.0   ;;  %v6566_v33 = vmov 0   ;;  %v5926_v36 = vld [vmem:[#allocation2 + $0x54] sm:$0xff] }
  0x3b   : > { %775 = vst.msk [vmem:[#allocation2 + $0x40] sm:$0xf] %vm510_vm1, %v743_v6  ;;  %v759_v9 = vpack.c.bf16 %v727_v12, %v727_v12  ;;  %v702_v20 = vmax.f32 %v670_v13, 0.0  ;;  %v703_v21 = vmax.f32 %v671_v17, 0.0  ;;  %v1559_v30 = vunpack.c.l.bf16 %v6565_v29 }
  0x3c   : > { %782 = vst.msk [vmem:[#allocation2 + $0x5c] sm:$0xf] %vm510_vm1, %v750_v7  ;;  %v6793_v22 = vshrl.u32 %v819_v19, 7  ;;  %5631 = vmatmul.msk.bf16.gmra.mxu0 %vm1852_vm2, %v5917_v10  ;;  %v5930_v44 = vld [vmem:[#allocation2 + $0x74] sm:$0xff]  ;;  %v1526_v48 = vunpack.c.l.bf16 %v1493_v37  ;;  %v6038_v51 = vunpack.c.l.bf16 %v6810_v40  ;;  %v6039_v57 = vunpack.c.h.bf16 %v6810_v40 }
  0x3d   : > { %783 = vst.msk [vmem:[#allocation2 + $0x60] sm:$0xf] %vm510_vm1, %v751_v11  ;;  %v734_v16 = vpack.c.bf16 %v702_v20, %v702_v20  ;;  %v735_v23 = vpack.c.bf16 %v703_v21, %v703_v21  ;;  %v6812_v41 = vrot.slane %v1559_v30, 1  ;;  %v6428_v45 = vld [vmem:[#allocation2 + $0x10] sm:$0xff]   ;;  %v6818_v46 = vrot.slane %v1559_v30, 7 }
  0x3e   : > { %790 = vst.msk [vmem:[#allocation2 + $0x7c] sm:$0xf] %vm510_vm1, %v758_v18  ;;  %v822_v24 = vadd.s32 16, %v6793_v22  ;;  %v856_v25 = vand.u32 15, %v6793_v22  ;;  %v821_v26 = vadd.s32 8, %v6793_v22  ;;  %v823_v28 = vadd.s32 24, %v6793_v22 }
  0x3f   : > { %791 = vst.msk [vmem:[#allocation2 + $0x80] sm:$0xf] %vm510_vm1, %v759_v9  ;;  %v5918_v55 = vld [vmem:[#allocation2 + $0x14] sm:$0xff]  ;;  %v6834_v60 = vunpack.c.l.bf16 %v6428_v45  ;;  %v6845_v1 = vunpack.c.h.bf16 %v6428_v45  ;;  %v5795_v11 = vld [vmem:[%s8639_s5 + $0xe] sm:$0x3]  ;;  %v2320_v12 = vunpack.c.l.bf16 %v2287_v63  ;;  %v825_v45 = vadd.s32 40, %v6793_v22 }
  0x40   : > { %766 = vst.msk [vmem:[#allocation2 + $0x1c] sm:$0xf] %vm510_vm1, %v734_v16  ;;  %v870_v27 = vand.u32 15, %v822_v24  ;;  %v863_v31 = vand.u32 15, %v821_v26  ;;  %vm1236_vm3 = vcmp.gt.s32.totalorder %v856_v25, 0  ;;  %v877_v34 = vand.u32 15, %v823_v28 }
  0x41   : > { %767 = vst.msk [vmem:[#allocation2 + $0x20] sm:$0xf] %vm510_vm1, %v735_v23  ;;  %v5533_v39 = vsel %vm1236_vm3, 1.0, %v8643_v14  ;;  %v5794_v9 = vld [vmem:[%s8639_s5 + $0xc] sm:$0x3]  ;;  %v4174_v23 = vsel %vm1901_vm0, %v5795_v11, 0  ;;  %v2514_v29 = vmul.f32 %v6818_v46, %v2320_v12 }
  0x42   : > { %511 = vst.msk [vmem:[#allocation2] sm:$0xf] %vm510_vm1, %v6566_v33  ;;  %vm1238_vm4 = vcmp.gt.s32.totalorder %v870_v27, 0  ;;  %vm1365_vm5 = vcmp.lt.s32.totalorder %v863_v31, 15  ;;  %vm1367_vm6 = vcmp.lt.s32.totalorder %v877_v34, 15  ;;  %v6823_v52 = vrot.slane %v5533_v39, 1  ;;  %4183 = vmatpush.bf16.msra.mxu2 %v4174_v23 }
  0x43   : > { %v5534_v35 = vsel %vm1238_vm4, 1.0, %v8643_v14  ;;  %512 = vst.msk [vmem:[#allocation2 + $0x94] sm:$0xf] %vm510_vm1, %v6566_v33  ;;  %v5549_v38 = vsel %vm1365_vm5, 1.0, %v8643_v14  ;;  %v6815_v43 = vsel %vm1367_vm6, 1.0, %v8643_v14  ;;  %v4466_v31 = vsel %vm1901_vm0, %v5794_v9, 0 }
  0x44   : > { %v1626_v42 = vrot.slane %v5534_v35, 1  ;;  %v2419_v47 = vrot.slane %v5549_v38, 7  ;;  %v2423_v50 = vrot.slane %v6815_v43, 7  ;;  %v6861_v7 = vsel %vm1622_vm7, %v6823_v52, %v6812_v41  ;;  %v2871_v24 = vld [vmem:[#allocation2 + $0x8] sm:$0x8]  ;;  %4475 = vmatpush.bf16.msra.mxu3 %v4466_v31  ;;  %v5927_v39 = vld [vmem:[#allocation2 + $0x5c] sm:$0xff] }
  0x45   : > { %5636 = vmatmul.msk.bf16.gmra.mxu1 %vm1852_vm2, %v5922_v32  ;;  %v1720_v21 = vmul.f32 %v6861_v7, %v1526_v48  ;;  %v2872_v25 = vld [vmem:[#allocation2 + $0xc] sm:$0xf]  ;;  %v5777_v27 = vld [vmem:[%s8639_s5 + $0xa] sm:$0x3]  ;;  %v5892_v28 = vld [vmem:[%s8639_s5 + $0x10] sm:$0x3]  ;;  %v2904_v34 = vunpack.c.l.bf16 %v2871_v24 }
  0x46   : > { %v1627_v58 = vsel %vm1622_vm7, %v6812_v41, %v1626_v42  ;;  %v1629_v59 = vsel %vm1622_vm7, %v1626_v42, %v6812_v41  ;;  %v2420_v0 = vsel %vm2417_vm8, %v6818_v46, %v2419_v47  ;;  %v2422_v3 = vsel %vm2417_vm8, %v2419_v47, %v6818_v46  ;;  %v5923_v32 = vld [vmem:[#allocation2 + $0x3c] sm:$0xff] }
  0x47   : > { %v6472_v49 = vld [vmem:[#allocation2 + $0x18] sm:$0xff]   ;;  %5640 = vmatmul.msk.bf16.gmra.mxu2 %vm1852_vm2, %v5926_v36  ;;  %v2424_v4 = vsel %vm2417_vm8, %v6818_v46, %v2423_v50  ;;  %v6854_v5 = vmul.f32 %v6834_v60, %v2420_v0  ;;  %v6864_v8 = vmul.f32 %v6845_v1, %v2422_v3  ;;  %v1721_v13 = vmul.f32 %v6038_v51, %v1627_v58 }
  0x48   : > { %v6825_v53 = vunpack.c.l.bf16 %v6472_v49  ;;  %v6827_v54 = vunpack.c.h.bf16 %v6472_v49  ;;  %v6856_v6 = vld [vmem:[#allocation2 + $0x20] sm:$0xff]   ;;  %v1722_v17 = vmul.f32 %v6039_v57, %v1629_v59  ;;  %v2515_v30 = vmul.f32 %v6038_v51, %v2420_v0 }
  0x49   : > { %v1492_v56 = vld [vmem:[#allocation2] sm:$0x8]  ;;  %5644 = vmatmul.msk.bf16.gmra.mxu3 %vm1852_vm2, %v5930_v44  ;;  %v6874_v18 = vunpack.c.l.bf16 %v6856_v6  ;;  %v2905_v35 = vunpack.c.l.bf16 %v2872_v25  ;;  %v3802_v37 = vsel %vm1901_vm0, %v5777_v27, 0  ;;  %v4856_v38 = vsel %vm1901_vm0, %v5892_v28, 0 }
  0x4a   : > { %v6838_v61 = vmul.f32 %v6825_v53, %v1627_v58  ;;  %v6841_v62 = vmul.f32 %v6827_v54, %v1629_v59  ;;  %v1525_v2 = vunpack.c.l.bf16 %v1492_v56  ;;  %v6867_v10 = vmul.f32 %v6825_v53, %v2424_v4  ;;  %3811 = vmatpush.bf16.msra.mxu1 %v3802_v37  ;;  %4865 = vmatpush.bf16.msra.mxu0 %v4856_v38  ;;  %v5931_v51 = vld [vmem:[#allocation2 + $0x7c] sm:$0xff] }
  0x4b   : > { %v6877_v19 = vmul.f32 %v6825_v53, %v2420_v0  ;;  %v6885_v16 = vmul.f32 %v6827_v54, %v2422_v3  ;;  %v6889_v26 = vmul.f32 %v6874_v18, %v2424_v4  ;;  %v1753_v33 = vpack.c.bf16 %v1722_v17, %v1721_v13 }
  0x4c   : > { %5632 = vmatmul.msk.bf16.gmra.mxu0 %vm1852_vm2, %v5918_v55  ;;  %v1719_v20 = vmul.f32 %v6823_v52, %v1525_v2  ;;  %v2516_v40 = vmul.f32 %v6039_v57, %v2422_v3  ;;  %v2517_v42 = vmul.f32 %v6834_v60, %v2424_v4  ;;  %v824_v44 = vadd.s32 32, %v6793_v22 }
  0x4d   : > { %v2547_v47 = vpack.c.bf16 %v2515_v30, %v2514_v29  ;;  %v2939_v48 = vmul.f32 %v6834_v60, %v1627_v58  ;;  %v2940_v49 = vmul.f32 %v6845_v1, %v1629_v59  ;;  %v2004_v55 = vshrl.u32 %v1753_v33, 16  ;;  %v5919_v58 = vld [vmem:[#allocation2 + $0x1c] sm:$0xff] }
  0x4e   : > { %v1752_v36 = vpack.c.bf16 %v1720_v21, %v1719_v20  ;;  %v2937_v56 = vmul.f32 %v2904_v34, %v6823_v52  ;;  %v2938_v57 = vmul.f32 %v2905_v35, %v6861_v7  ;;  %v884_v63 = vand.u32 15, %v824_v44 }
  0x4f   : > { %v2007_v3 = vshll.u32 %v1753_v33, 16  ;;  %v891_v4 = vand.u32 15, %v825_v45  ;;  %v6910_v11 = vpack.c.bf16 %v2517_v42, %v2516_v40  ;;  %v2570_v59 = vshll.u32 %v2547_v47, 16 }
  0x50   : > { %v1996_v0 = vshrl.u32 %v1752_v36, 16  ;;  %v1999_v2 = vshll.u32 %v1752_v36, 16  ;;  %vm1240_vm9 = vcmp.gt.s32.totalorder %v884_v63, 0  ;;  %v2971_v12 = vpack.c.bf16 %v2940_v49, %v2939_v48 }
  0x51   : > { %v5535_v13 = vsel %vm1240_vm9, 1.0, %v8643_v14  ;;  %vm1369_vm10 = vcmp.lt.s32.totalorder %v891_v4, 15  ;;  %v2970_v17 = vpack.c.bf16 %v2938_v57, %v2937_v56  ;;  %v826_v21 = vadd.s32 48, %v6793_v22 }
  0x52   : > { %v1630_v9 = vrot.slane %v5535_v13, 1  ;;  %v6915_v20 = vsel %vm1369_vm10, 1.0, %v8643_v14  ;;  %v1998_v23 = vrot.slane %v1996_v0, 3  ;;  %v2001_v24 = vrot.slane %v1999_v2, 4 }
  0x53   : > { %v2006_v25 = vrot.slane %v2004_v55, 3  ;;  %v2009_v27 = vrot.slane %v2007_v3, 4  ;;  %v2575_v28 = vshll.u32 %v6910_v11, 16  ;;  %v2568_v31 = vshrl.u32 %v2547_v47, 16 }
  0x54   : > { %v6921_v29 = vsel %vm1622_vm7, %v6812_v41, %v1630_v9  ;;  %v6925_v30 = vsel %vm1622_vm7, %v1630_v9, %v6812_v41  ;;  %v3220_v33 = vshrl.u32 %v2971_v12, 16  ;;  %v2427_v34 = vrot.slane %v6915_v20, 7 }
  0x55   : > { %5637 = vmatmul.msk.bf16.gmra.mxu1 %vm1852_vm2, %v5923_v32  ;;  %8724 = vst [vmem:[#allocation4_spill] sm:$0xff] %v6921_v29  ;;  %v2572_v32 = vrot.slane %v2570_v59, 1  ;;  %v3212_v35 = vshrl.u32 %v2970_v17, 16  ;;  %v3215_v36 = vshll.u32 %v2970_v17, 16  ;;  %v3223_v37 = vshll.u32 %v2971_v12, 16 }
  0x56   : > { %8725 = vst [vmem:[#allocation5_spill] sm:$0xff] %v6925_v30  ;;  %v898_v38 = vand.u32 15, %v826_v21  ;;  %v6929_v40 = vor.u32 %v2009_v27, %v2006_v25  ;;  %v1723_v42 = vmul.f32 %v6834_v60, %v6921_v29  ;;  %v1724_v44 = vmul.f32 %v6845_v1, %v6925_v30 }
  0x57   : > { %5641 = vmatmul.msk.bf16.gmra.mxu2 %vm1852_vm2, %v5927_v39  ;;  %v2002_v39 = vor.u32 %v2001_v24, %v1998_v23  ;;  %v2577_v45 = vrot.slane %v2575_v28, 1  ;;  %v827_v47 = vadd.s32 56, %v6793_v22  ;;  %v2573_v48 = vor.u32 %v2572_v32, %v2568_v31 }
  0x58   : > { %v3222_v49 = vrot.slane %v3220_v33, 3  ;;  %v6946_v60 = vsel %vm2417_vm8, %v6818_v46, %v2427_v34  ;;  %v3214_v55 = vrot.slane %v3212_v35, 3  ;;  %v3217_v56 = vrot.slane %v3215_v36, 4 }
  0x59   : > { %5645 = vmatmul.msk.bf16.gmra.mxu3 %vm1852_vm2, %v5931_v51  ;;  %v6940_v51 = vsel %vm2417_vm8, %v2423_v50, %v6818_v46  ;;  %v3225_v57 = vrot.slane %v3223_v37, 4  ;;  %vm1242_vm13 = vcmp.gt.s32.totalorder %v898_v38, 0  ;;  %v2011_v63 = vsel %vm1994_vm11, %v2002_v39, %v6929_v40 }
  0x5a   : > { %v1754_v0 = vpack.c.bf16 %v1724_v44, %v1723_v42  ;;  %v2518_v43 = vmul.f32 %v6845_v1, %v6940_v51  ;;  %v2519_v50 = vmul.f32 %v6825_v53, %v6946_v60  ;;  %v905_v2 = vand.u32 15, %v827_v47 }
  0x5b   : > { %v2578_v3 = vsel %vm2566_vm12, %v2573_v48, %v2577_v45  ;;  %v5536_v4 = vsel %vm1242_vm13, 1.0, %v8643_v14  ;;  %v3218_v59 = vor.u32 %v3217_v56, %v3214_v55  ;;  %v3226_v12 = vor.u32 %v3225_v57, %v3222_v49 }
  0x5c   : > { %5633 = vmatmul.msk.bf16.gmra.mxu0 %vm1852_vm2, %v5919_v58  ;;  %v5932_v58 = vld [vmem:[#allocation2 + $0xc] sm:$0xff]  ;;  %v2941_v13 = vmul.f32 %v6825_v53, %v6921_v29  ;;  %v2942_v17 = vmul.f32 %v6827_v54, %v6925_v30  ;;  %v2013_v1 = vshrl.u32 %v1754_v0, 16  ;;  %v2016_v9 = vshll.u32 %v1754_v0, 16 }
  0x5d   : > { %v6962_v21 = vpack.c.bf16 %v2519_v50, %v2518_v43  ;;  %v1634_v23 = vrot.slane %v5536_v4, 1  ;;  %vm1371_vm14 = vcmp.lt.s32.totalorder %v905_v2, 15  ;;  %v3227_v24 = vsel %vm1994_vm11, %v3218_v59, %v3226_v12 }
  0x5e   : > { %v2972_v25 = vpack.c.bf16 %v2942_v17, %v2941_v13  ;;  %v828_v27 = vadd.s32 64, %v6793_v22  ;;  %v2015_v28 = vrot.slane %v2013_v1, 3  ;;  %v2018_v31 = vrot.slane %v2016_v9, 4 }
  0x5f   : > { %v6968_v32 = vsel %vm1371_vm14, 1.0, %v8643_v14  ;;  %v2579_v33 = vshrl.u32 %v6910_v11, 16  ;;  %v2583_v35 = vshll.u32 %v6962_v21, 16  ;;  %v6974_v36 = vsel %vm1622_vm7, %v6812_v41, %v1634_v23 }
  0x60   : > { %8726 = vst [vmem:[#allocation6_spill] sm:$0xff] %v6974_v36  ;;  %v6978_v37 = vsel %vm1622_vm7, %v1634_v23, %v6812_v41  ;;  %v3229_v38 = vshrl.u32 %v2972_v25, 16  ;;  %v3232_v39 = vshll.u32 %v2972_v25, 16  ;;  %v2431_v42 = vrot.slane %v6968_v32, 7 }
  0x61   : > { %8727 = vst [vmem:[#allocation7_spill] sm:$0xff] %v6978_v37  ;;  %v912_v44 = vand.u32 15, %v828_v27  ;;  %v2019_v47 = vor.u32 %v2018_v31, %v2015_v28  ;;  %v1725_v11 = vmul.f32 %v6825_v53, %v6974_v36  ;;  %v1726_v48 = vmul.f32 %v6827_v54, %v6978_v37 }
  0x62   : > { %v2581_v49 = vor.u32 %v2579_v33, %v2577_v45  ;;  %v2585_v55 = vrot.slane %v2583_v35, 1  ;;  %v829_v56 = vadd.s32 72, %v6793_v22  ;;  %v6991_v57 = vsel %vm2417_vm8, %v2427_v34, %v6818_v46 }
  0x63   : > { %8728 = vst [vmem:[#allocation8_spill] sm:$0xff] %v6991_v57  ;;  %v3231_v0 = vrot.slane %v3229_v38, 3  ;;  %v3234_v43 = vrot.slane %v3232_v39, 4  ;;  %v6996_v53 = vsel %vm2417_vm8, %v6818_v46, %v2431_v42  ;;  %vm1244_vm15 = vcmp.gt.s32.totalorder %v912_v44, 0  ;;  %v6431_v39 = vld [vmem:[#allocation2 + $0x28] sm:$0xff]  }
  0x64   : > { %8729 = vst [vmem:[#allocation9_spill] sm:$0xff] %v6996_v53  ;;  %v2020_v45 = vsel %vm1994_vm11, %v6929_v40, %v2019_v47  ;;  %v1755_v50 = vpack.c.bf16 %v1726_v48, %v1725_v11  ;;  %v2586_v2 = vsel %vm2566_vm12, %v2581_v49, %v2585_v55  ;;  %v2520_v20 = vmul.f32 %v6827_v54, %v6991_v57  ;;  %v5933_v40 = vld [vmem:[#allocation2 + $0x14] sm:$0xff] }
  0x65   : > { %5646 = vmatmul.msk.bf16.vlgmr.msrb.gmra.mxu1 %vm1852_vm2, %v2011_v63  ;;  %v6167_v63 = vunpack.c.h.bf16 %v6856_v6  ;;  %v919_v34 = vand.u32 15, %v829_v56  ;;  %v2521_v6 = vmul.f32 %v6874_v18, %v6996_v53  ;;  %v3235_v59 = vor.u32 %v3234_v43, %v3231_v0 }
  0x66   : > { %v2022_v13 = vshrl.u32 %v1755_v50, 16  ;;  %v2025_v17 = vshll.u32 %v1755_v50, 16  ;;  %v2587_v31 = vshrl.u32 %v6962_v21, 16  ;;  %v831_v56 = vadd.s32 88, %v6793_v22 }
  0x67   : > { %5663 = vmatmul.msk.bf16.vlgmr.msrb.gmra.mxu2 %vm1852_vm2, %v2578_v3  ;;  %v2943_v3 = vmul.f32 %v6874_v18, %v6974_v36  ;;  %v2944_v4 = vmul.f32 %v6167_v63, %v6978_v37  ;;  %vm1373_vm0 = vcmp.lt.s32.totalorder %v919_v34, 15  ;;  %v7011_v1 = vpack.c.bf16 %v2521_v6, %v2520_v20 }
  0x68   : > { %v3236_v23 = vsel %vm1994_vm11, %v3226_v12, %v3235_v59  ;;  %v2024_v25 = vrot.slane %v2022_v13, 3  ;;  %v2027_v27 = vrot.slane %v2025_v17, 4  ;;  %v7017_v28 = vsel %vm1373_vm0, 1.0, %v8643_v14 }
  0x69   : > { %5745 = vmatmul.msk.bf16.vlgmr.msrb.gmra.mxu3 %vm1852_vm2, %v5932_v58  ;;  %v5537_v58 = vsel %vm1244_vm15, 1.0, %v8643_v14  ;;  %v2973_v9 = vpack.c.bf16 %v2944_v4, %v2943_v3  ;;  %v2591_v12 = vshll.u32 %v7011_v1, 16  ;;  %v2435_v44 = vrot.slane %v7017_v28, 7 }
  0x6a   : > { %v1638_v54 = vrot.slane %v5537_v58, 1  ;;  %v2028_v48 = vor.u32 %v2027_v27, %v2024_v25  ;;  %v2589_v0 = vor.u32 %v2587_v31, %v2585_v55  ;;  %v7037_v20 = vsel %vm2417_vm8, %v2431_v42, %v6818_v46  ;;  %v5934_v42 = vld [vmem:[#allocation2 + $0x1c] sm:$0xff] }
  0x6b   : > { %v3238_v35 = vshrl.u32 %v2973_v9, 16  ;;  %v3241_v38 = vshll.u32 %v2973_v9, 16  ;;  %v2593_v43 = vrot.slane %v2591_v12, 1  ;;  %8732 = vst [vmem:[#allocation12_spill] sm:$0xff] %v7037_v20  ;;  %v7041_v34 = vsel %vm2417_vm8, %v6818_v46, %v2435_v44 }
  0x6c   : > { %5761 = vmatmul.msk.bf16.vlgmr.msrb.gmra.mxu0 %vm1852_vm2, %v3227_v24  ;;  %v830_v24 = vadd.s32 80, %v6793_v22  ;;  %v7022_v32 = vsel %vm1622_vm7, %v6812_v41, %v1638_v54  ;;  %v7026_v33 = vsel %vm1622_vm7, %v1638_v54, %v6812_v41  ;;  %8733 = vst [vmem:[#allocation13_spill] sm:$0xff] %v7041_v34  ;;  %v6171_v6 = vunpack.c.h.bf16 %v6431_v39 }
  0x6d   : > { %8730 = vst [vmem:[#allocation10_spill] sm:$0xff] %v7022_v32  ;;  %v1727_v21 = vmul.f32 %v6874_v18, %v7022_v32  ;;  %v1728_v49 = vmul.f32 %v6167_v63, %v7026_v33  ;;  %v3243_v50 = vrot.slane %v3241_v38, 4  ;;  %v2029_v18 = vsel %vm1994_vm11, %v2019_v47, %v2028_v48 }
  0x6e   : > { %8731 = vst [vmem:[#allocation11_spill] sm:$0xff] %v7026_v33  ;;  %v926_v11 = vand.u32 15, %v830_v24  ;;  %v933_v4 = vand.u32 15, %v831_v56  ;;  %v2594_v55 = vsel %vm2566_vm12, %v2589_v0, %v2593_v43  ;;  %v2522_v58 = vmul.f32 %v6167_v63, %v7037_v20 }
  0x6f   : > { %v1756_v3 = vpack.c.bf16 %v1728_v49, %v1727_v21  ;;  %v2946_v9 = vmul.f32 %v6171_v6, %v7026_v33  ;;  %v832_v31 = vadd.s32 96, %v6793_v22  ;;  %v6432_v21 = vld [vmem:[#allocation2 + $0x30] sm:$0xff]   ;;  %v837_v15 = vadd.s32 136, %v6793_v22 }
  0x70   : > { %vm1246_vm3 = vcmp.gt.s32.totalorder %v926_v11, 0  ;;  %vm1375_vm4 = vcmp.lt.s32.totalorder %v933_v4, 15  ;;  %v6118_v4 = vunpack.c.l.bf16 %v6432_v21 }
  0x71   : > { %v5538_v13 = vsel %vm1246_vm3, 1.0, %v8643_v14  ;;  %v2034_v47 = vshll.u32 %v1756_v3, 16  ;;  %v7057_v28 = vsel %vm1375_vm4, 1.0, %v8643_v14 }
  0x72   : > { %v1642_v24 = vrot.slane %v5538_v13, 1  ;;  %v2439_v49 = vrot.slane %v7057_v28, 7 }
  0x74   : > { %v7062_v38 = vsel %vm1622_vm7, %v6812_v41, %v1642_v24  ;;  %v7083_v13 = vsel %vm2417_vm8, %v6818_v46, %v2439_v49 }
  0x75   : > { %5647 = vmatmul.msk.bf16.gmra.mxu1 %vm1852_vm2, %v2020_v45  ;;  %v3240_v45 = vrot.slane %v3238_v35, 3  ;;  %v2036_v35 = vrot.slane %v2034_v47, 4  ;;  %8734 = vst [vmem:[#allocation14_spill] sm:$0xff] %v7062_v38 }
  0x76   : > { %8737 = vst [vmem:[#allocation17_spill] sm:$0xff] %v7083_v13 }
  0x77   : > { %5664 = vmatmul.msk.bf16.gmra.mxu2 %vm1852_vm2, %v2586_v2  ;;  %v6114_v2 = vunpack.c.l.bf16 %v6431_v39  ;;  %v3244_v17 = vor.u32 %v3243_v50, %v3240_v45  ;;  %v7066_v39 = vsel %vm1622_vm7, %v1642_v24, %v6812_v41  ;;  %v940_v45 = vand.u32 15, %v832_v31 }
  0x78   : > { %8735 = vst [vmem:[#allocation15_spill] sm:$0xff] %v7066_v39  ;;  %v2947_v31 = vmul.f32 %v6118_v4, %v7062_v38 }
  0x79   : > { %5746 = vmatmul.msk.bf16.gmra.mxu3 %vm1852_vm2, %v5933_v40  ;;  %v2523_v40 = vmul.f32 %v6114_v2, %v7041_v34  ;;  %v2945_v54 = vmul.f32 %v6114_v2, %v7022_v32  ;;  %v3245_v63 = vsel %vm1994_vm11, %v3235_v59, %v3244_v17  ;;  %v2595_v59 = vshrl.u32 %v7011_v1, 16 }
  0x7a   : > { %v7079_v1 = vsel %vm2417_vm8, %v2435_v44, %v6818_v46  ;;  %vm1248_vm5 = vcmp.gt.s32.totalorder %v940_v45, 0 }
  0x7b   : > { %v7052_v25 = vpack.c.bf16 %v2523_v40, %v2522_v58  ;;  %v2974_v27 = vpack.c.bf16 %v2946_v9, %v2945_v54  ;;  %v2597_v58 = vor.u32 %v2595_v59, %v2593_v43  ;;  %8736 = vst [vmem:[#allocation16_spill] sm:$0xff] %v7079_v1  ;;  %v6175_v9 = vunpack.c.h.bf16 %v6432_v21 }
  0x7c   : > { %5762 = vmatmul.msk.bf16.gmra.mxu0 %vm1852_vm2, %v3236_v23  ;;  %v2031_v23 = vshrl.u32 %v1756_v3, 16  ;;  %v1730_v3 = vmul.f32 %v6171_v6, %v7066_v39  ;;  %v2524_v47 = vmul.f32 %v6171_v6, %v7079_v1  ;;  %v2525_v43 = vmul.f32 %v6118_v4, %v7083_v13  ;;  %v5937_v13 = vld [vmem:[#allocation2 + $0x34] sm:$0xff] }
  0x7d   : > { %v2599_v11 = vshll.u32 %v7052_v25, 16  ;;  %v3247_v56 = vshrl.u32 %v2974_v27, 16  ;;  %v3250_v0 = vshll.u32 %v2974_v27, 16  ;;  %v5935_v27 = vld [vmem:[#allocation2 + $0x24] sm:$0xff] }
  0x7e   : > { %v2033_v12 = vrot.slane %v2031_v23, 3  ;;  %v7095_v6 = vpack.c.bf16 %v2525_v43, %v2524_v47 }
  0x7f   : > { %v2601_v40 = vrot.slane %v2599_v11, 1  ;;  %v3252_v54 = vrot.slane %v3250_v0, 4 }
  0x80   : > { %v7072_v50 = vor.u32 %v2036_v35, %v2033_v12  ;;  %v2948_v12 = vmul.f32 %v6175_v9, %v7066_v39 }
  0x81   : > { %v2602_v44 = vsel %vm2566_vm12, %v2597_v58, %v2601_v40 }
  0x82   : > { %v2975_v21 = vpack.c.bf16 %v2948_v12, %v2947_v31  ;;  %v7122_v12 = vsel %vm2417_vm8, %v2439_v49, %v6818_v46 }
  0x83   : > { %8740 = vst [vmem:[#allocation20_spill] sm:$0xff] %v7122_v12 }
  0x85   : > { %5648 = vmatmul.msk.bf16.gmra.mxu1 %vm1852_vm2, %v2029_v18  ;;  %v1729_v18 = vmul.f32 %v6114_v2, %v7062_v38  ;;  %v2038_v2 = vsel %vm1994_vm11, %v2028_v48, %v7072_v50 }
  0x87   : > { %5665 = vmatmul.msk.bf16.gmra.mxu2 %vm1852_vm2, %v2594_v55  ;;  %v833_v55 = vadd.s32 104, %v6793_v22  ;;  %v1757_v23 = vpack.c.bf16 %v1730_v3, %v1729_v18  ;;  %v2603_v3 = vshrl.u32 %v7052_v25, 16 }
  0x89   : > { %5747 = vmatmul.msk.bf16.gmra.mxu3 %vm1852_vm2, %v5934_v42  ;;  %v3249_v42 = vrot.slane %v3247_v56, 3  ;;  %v947_v24 = vand.u32 15, %v833_v55  ;;  %v2040_v35 = vshrl.u32 %v1757_v23, 16  ;;  %v2043_v48 = vshll.u32 %v1757_v23, 16 }
  0x8a   : > { %v834_v56 = vadd.s32 112, %v6793_v22  ;;  %v2607_v55 = vshll.u32 %v7095_v6, 16 }
  0x8b   : > { %v3253_v28 = vor.u32 %v3252_v54, %v3249_v42  ;;  %vm1377_vm6 = vcmp.lt.s32.totalorder %v947_v24, 15  ;;  %v2042_v0 = vrot.slane %v2040_v35, 3  ;;  %v2045_v45 = vrot.slane %v2043_v48, 4 }
  0x8c   : > { %5763 = vmatmul.msk.bf16.gmra.mxu0 %vm1852_vm2, %v3245_v63  ;;  %v5539_v63 = vsel %vm1248_vm5, 1.0, %v8643_v14  ;;  %v7101_v18 = vsel %vm1377_vm6, 1.0, %v8643_v14  ;;  %v3259_v54 = vshll.u32 %v2975_v21, 16  ;;  %v954_v47 = vand.u32 15, %v834_v56 }
  0x8d   : > { %v1646_v59 = vrot.slane %v5539_v63, 1  ;;  %v3254_v11 = vsel %vm1994_vm11, %v3244_v17, %v3253_v28  ;;  %v3256_v17 = vshrl.u32 %v2975_v21, 16  ;;  %v8645_v23 = vrot.slane %v7101_v18, 7 }
  0x8e   : > { %v7115_v43 = vor.u32 %v2045_v45, %v2042_v0  ;;  %v2609_v63 = vrot.slane %v2607_v55, 1  ;;  %vm1250_vm9 = vcmp.gt.s32.totalorder %v954_v47, 0  ;;  %v2526_v56 = vmul.f32 %v6175_v9, %v7122_v12 }
  0x8f   : > { %v7107_v58 = vsel %vm1622_vm7, %v6812_v41, %v1646_v59  ;;  %v7111_v42 = vsel %vm1622_vm7, %v1646_v59, %v6812_v41  ;;  %v3258_v48 = vrot.slane %v3256_v17, 3  ;;  %v3261_v59 = vrot.slane %v3259_v54, 4  ;;  %v5936_v54 = vld [vmem:[#allocation2 + $0x2c] sm:$0xff] }
  0x90   : > { %8738 = vst [vmem:[#allocation18_spill] sm:$0xff] %v7107_v58  ;;  %v1731_v25 = vmul.f32 %v6118_v4, %v7107_v58  ;;  %v1732_v24 = vmul.f32 %v6175_v9, %v7111_v42  ;;  %v7130_v4 = vsel %vm2417_vm8, %v6818_v46, %v8645_v23  ;;  %v5540_v17 = vsel %vm1250_vm9, 1.0, %v8643_v14 }
  0x91   : > { %8739 = vst [vmem:[#allocation19_spill] sm:$0xff] %v7111_v42  ;;  %v1650_v9 = vrot.slane %v5540_v17, 1 }
  0x92   : > { %8741 = vst [vmem:[#allocation21_spill] sm:$0xff] %v7130_v4  ;;  %v1758_v21 = vpack.c.bf16 %v1732_v24, %v1731_v25 }
  0x94   : > { %v2052_v47 = vshll.u32 %v1758_v21, 16 }
  0x95   : > { %5649 = vmatmul.msk.bf16.gmra.mxu1 %vm1852_vm2, %v2038_v2  ;;  %v6433_v2 = vld [vmem:[#allocation2 + $0x38] sm:$0xff]  }
  0x96   : > { %v6122_v31 = vunpack.c.l.bf16 %v6433_v2  ;;  %v7124_v35 = vunpack.c.h.bf16 %v6433_v2  ;;  %v7145_v2 = vor.u32 %v3261_v59, %v3258_v48 }
  0x97   : > { %5666 = vmatmul.msk.bf16.gmra.mxu2 %vm1852_vm2, %v2602_v44  ;;  %v2605_v44 = vor.u32 %v2603_v3, %v2601_v40 }
  0x98   : > { %v2527_v45 = vmul.f32 %v6122_v31, %v7130_v4  ;;  %v2949_v3 = vmul.f32 %v6122_v31, %v7107_v58  ;;  %v2950_v55 = vmul.f32 %v7124_v35, %v7111_v42 }
  0x99   : > { %5748 = vmatmul.msk.bf16.gmra.mxu3 %vm1852_vm2, %v5935_v27  ;;  %v835_v27 = vadd.s32 120, %v6793_v22  ;;  %v2610_v49 = vsel %vm2566_vm12, %v2605_v44, %v2609_v63 }
  0x9a   : > { %v7148_v25 = vpack.c.bf16 %v2527_v45, %v2526_v56  ;;  %v2976_v24 = vpack.c.bf16 %v2950_v55, %v2949_v3  ;;  %v2611_v56 = vshrl.u32 %v7095_v6, 16  ;;  %v7166_v45 = vsel %vm1622_vm7, %v6812_v41, %v1650_v9 }
  0x9b   : > { %v961_v0 = vand.u32 15, %v835_v27  ;;  %v3263_v27 = vsel %vm1994_vm11, %v3253_v28, %v7145_v2  ;;  %8743 = vst [vmem:[#allocation23_spill] sm:$0xff] %v7166_v45  ;;  %v7170_v28 = vsel %vm1622_vm7, %v1650_v9, %v6812_v41  ;;  %v1733_v23 = vmul.f32 %v6122_v31, %v7166_v45 }
  0x9c   : > { %5764 = vmatmul.msk.bf16.gmra.mxu0 %vm1852_vm2, %v3254_v11  ;;  %v2047_v11 = vsel %vm1994_vm11, %v7072_v50, %v7115_v43  ;;  %v2049_v50 = vshrl.u32 %v1758_v21, 16  ;;  %8744 = vst [vmem:[#allocation24_spill] sm:$0xff] %v7170_v28  ;;  %v2615_v55 = vshll.u32 %v7148_v25, 16  ;;  %v3265_v17 = vshrl.u32 %v2976_v24, 16 }
  0x9d   : > { %vm1379_vm10 = vcmp.lt.s32.totalorder %v961_v0, 15  ;;  %v1734_v9 = vmul.f32 %v7124_v35, %v7170_v28 }
  0x9e   : > { %v2051_v21 = vrot.slane %v2049_v50, 3  ;;  %v7161_v0 = vsel %vm1379_vm10, 1.0, %v8643_v14  ;;  %v6434_v50 = vld [vmem:[#allocation2 + $0x40] sm:$0xff]   ;;  %v2617_v42 = vrot.slane %v2615_v55, 1  ;;  %v975_v55 = vand.u32 15, %v837_v15 }
  0x9f   : > { %v6126_v4 = vunpack.c.l.bf16 %v6434_v50 }
  0xa0   : > { %vm1381_vm14 = vcmp.lt.s32.totalorder %v975_v55, 15 }
  0xa2   : > { %v7132_v40 = vpop.f32.mrf.mxu1 }
  0xa5   : > { %5650 = vmatmul.msk.bf16.gmra.mxu1 %vm1852_vm2, %v2047_v11  ;;  %v836_v11 = vadd.s32 128, %v6793_v22 }
  0xa7   : > { %5667 = vmatmul.msk.bf16.gmra.mxu2 %vm1852_vm2, %v2610_v49  ;;  %v2054_v49 = vrot.slane %v2052_v47, 4  ;;  %v8654_v47 = vrot.slane %v7161_v0, 7  ;;  %v968_v6 = vand.u32 15, %v836_v11 }
  0xa9   : > { %5749 = vmatmul.msk.bf16.gmra.mxu3 %vm1852_vm2, %v5936_v54  ;;  %v7151_v44 = vpop.f32.mrf.mxu0  ;;  %v3268_v54 = vshll.u32 %v2976_v24, 16  ;;  %v7177_v14 = vor.u32 %v2054_v49, %v2051_v21  ;;  %v8746_v24 = vrot.slane %v7101_v18, 7  ;;  %v7195_v31 = vsel %vm2417_vm8, %v6818_v46, %v8654_v47 }
  0xaa   : > { %v7156_v48 = vpop.f32.mrf.mxu2  ;;  %v7158_v59 = vpop.f32.mrf.mxu1  ;;  %8748 = vst [vmem:[#allocation27_spill] sm:$0xff] %v7195_v31  ;;  %v6183_v21 = vunpack.c.h.bf16 %v6434_v50  ;;  %vm1252_vm13 = vcmp.gt.s32.totalorder %v968_v6, 0  ;;  %v1759_v18 = vpack.c.bf16 %v1734_v9, %v1733_v23  ;;  %v2529_v50 = vmul.f32 %v6126_v4, %v7195_v31 }
  0xab   : > { %8742 = vst [vmem:[#allocation22_spill] sm:$0xff] %v7156_v48  ;;  %v3270_v58 = vrot.slane %v3268_v54, 4  ;;  %v7189_v11 = vsel %vm2417_vm8, %v8746_v24, %v6818_v46  ;;  %v8751_v6 = vmov 0.0  }
  0xac   : > { %v7172_v3 = vpop.f32.mrf.mxu3  ;;  %5765 = vmatmul.msk.bf16.gmra.mxu0 %vm1852_vm2, %v3263_v27  ;;  %v3267_v27 = vrot.slane %v3265_v17, 3  ;;  %8747 = vst [vmem:[#allocation26_spill] sm:$0xff] %v7189_v11  ;;  %v2528_v24 = vmul.f32 %v7124_v35, %v7189_v11  ;;  %v5541_v47 = vsel %vm1252_vm13, 1.0, %v8751_v6  ;;  %v2952_v15 = vmul.f32 %v6183_v21, %v7170_v28  ;;  %v6435_v11 = vld [vmem:[#allocation2 + $0x48] sm:$0xff]  }
  0xad   : > { %8745 = vst [vmem:[#allocation25_spill] sm:$0xff] %v7172_v3  ;;  %v2613_v3 = vor.u32 %v2611_v56, %v2609_v63  ;;  %v2056_v56 = vsel %vm1994_vm11, %v7115_v43, %v7177_v14  ;;  %v2951_v43 = vmul.f32 %v6126_v4, %v7166_v45  ;;  %v2058_v23 = vshrl.u32 %v1759_v18, 16 }
  0xae   : > { %v7212_v1 = vor.u32 %v3270_v58, %v3267_v27  ;;  %v2061_v9 = vshll.u32 %v1759_v18, 16  ;;  %v7217_v35 = vpack.c.bf16 %v2529_v50, %v2528_v24  ;;  %v838_v18 = vadd.s32 144, %v6793_v22 }
  0xaf   : > { %v2618_v54 = vsel %vm2566_vm12, %v2613_v3, %v2617_v42  ;;  %v1654_v3 = vrot.slane %v5541_v47, 1  ;;  %v2977_v27 = vpack.c.bf16 %v2952_v15, %v2951_v43  ;;  %v2060_v47 = vrot.slane %v2058_v23, 3 }
  0xb0   : > { %v3272_v58 = vsel %vm1994_vm11, %v7145_v2, %v7212_v1  ;;  %v2063_v24 = vrot.slane %v2061_v9, 4  ;;  %v2623_v15 = vshll.u32 %v7217_v35, 16  ;;  %v6130_v38 = vunpack.c.l.bf16 %v6435_v11 }
  0xb1   : > { %v7183_v12 = vpop.f32.mrf.mxu0  ;;  %v7236_v50 = vsel %vm1622_vm7, %v6812_v41, %v1654_v3  ;;  %v7240_v2 = vsel %vm1622_vm7, %v1654_v3, %v6812_v41  ;;  %v3274_v9 = vshrl.u32 %v2977_v27, 16 }
  0xb2   : > { %v7197_v63 = vpop.f32.mrf.mxu2  ;;  %v7199_v49 = vpop.f32.mrf.mxu1  ;;  %8753 = vst [vmem:[#allocation31_spill] sm:$0xff] %v7236_v50  ;;  %v7247_v28 = vor.u32 %v2063_v24, %v2060_v47  ;;  %v1735_v45 = vmul.f32 %v6126_v4, %v7236_v50  ;;  %v1736_v39 = vmul.f32 %v6183_v21, %v7240_v2  ;;  %v2625_v33 = vrot.slane %v2623_v15, 1 }
  0xb3   : > { %8749 = vst [vmem:[#allocation28_spill] sm:$0xff] %v7197_v63  ;;  %v7264_v4 = vunpack.c.h.bf16 %v6435_v11 }
  0xb4   : > { %v7204_v17 = vpop.f32.mrf.mxu3  ;;  %8754 = vst [vmem:[#allocation32_spill] sm:$0xff] %v7240_v2  ;;  %v1760_v15 = vpack.c.bf16 %v1736_v39, %v1735_v45 }
  0xb5   : > { %8750 = vst [vmem:[#allocation29_spill] sm:$0xff] %v7204_v17  ;;  %5651 = vmatmul.msk.bf16.gmra.mxu1 %vm1852_vm2, %v2056_v56  ;;  %v7226_v56 = vsel %vm1381_vm14, 1.0, %v8751_v6  ;;  %v3277_v17 = vshll.u32 %v2977_v27, 16 }
  0xb6   : > { %v8669_v23 = vrot.slane %v7226_v56, 7  ;;  %v2067_v45 = vshrl.u32 %v1760_v15, 16 }
  0xb7   : > { %5668 = vmatmul.msk.bf16.gmra.mxu2 %vm1852_vm2, %v2618_v54  ;;  %v3279_v47 = vrot.slane %v3277_v17, 4  ;;  %v2953_v17 = vmul.f32 %v6130_v38, %v7236_v50  ;;  %v840_v50 = vadd.s32 160, %v6793_v22 }
  0xb8   : > { %v7262_v27 = vsel %vm2417_vm8, %v6818_v46, %v8669_v23 }
  0xb9   : > { %5750 = vmatmul.msk.bf16.gmra.mxu3 %vm1852_vm2, %v5937_v13  ;;  %v7220_v31 = vpop.f32.mrf.mxu0  ;;  %v2619_v13 = vshrl.u32 %v7148_v25, 16  ;;  %v982_v25 = vand.u32 15, %v838_v18  ;;  %8758 = vst [vmem:[#allocation35_spill] sm:$0xff] %v7262_v27  ;;  %v2531_v23 = vmul.f32 %v6130_v38, %v7262_v27 }
  0xba   : > { %v7229_v55 = vpop.f32.mrf.mxu2  ;;  %v7231_v54 = vpop.f32.mrf.mxu1 }
  0xbb   : > { %8752 = vst [vmem:[#allocation30_spill] sm:$0xff] %v7229_v55  ;;  %v2621_v3 = vor.u32 %v2619_v13, %v2617_v42  ;;  %v3276_v42 = vrot.slane %v3274_v9, 3  ;;  %vm1254_vm15 = vcmp.gt.s32.totalorder %v982_v25, 0  ;;  %v2954_v25 = vmul.f32 %v7264_v4, %v7240_v2 }
  0xbc   : > { %v7242_v43 = vpop.f32.mrf.mxu3  ;;  %5766 = vmatmul.msk.bf16.gmra.mxu0 %vm1852_vm2, %v3272_v58  ;;  %v8756_v58 = vrot.slane %v7161_v0, 7  ;;  %v2065_v0 = vsel %vm1994_vm11, %v7177_v14, %v7247_v28  ;;  %v5542_v20 = vsel %vm1254_vm15, 1.0, %v8751_v6  ;;  %v5938_v14 = vld [vmem:[#allocation2 + $0x3c] sm:$0xff] }
  0xbd   : > { %8755 = vst [vmem:[#allocation33_spill] sm:$0xff] %v7242_v43  ;;  %v839_v43 = vadd.s32 152, %v6793_v22  ;;  %v2626_v9 = vsel %vm2566_vm12, %v2621_v3, %v2625_v33  ;;  %v7285_v39 = vor.u32 %v3279_v47, %v3276_v42  ;;  %v1658_v27 = vrot.slane %v5542_v20, 1 }
  0xbe   : > { %v7256_v32 = vsel %vm2417_vm8, %v8756_v58, %v6818_v46  ;;  %v2978_v3 = vpack.c.bf16 %v2954_v25, %v2953_v17 }
  0xbf   : > { %8757 = vst [vmem:[#allocation34_spill] sm:$0xff] %v7256_v32  ;;  %v2530_v58 = vmul.f32 %v6183_v21, %v7256_v32  ;;  %v989_v11 = vand.u32 15, %v839_v43  ;;  %v2070_v21 = vshll.u32 %v1760_v15, 16  ;;  %v3281_v42 = vsel %vm1994_vm11, %v7212_v1, %v7285_v39 }
  0xc0   : > { %v2069_v15 = vrot.slane %v2067_v45, 3  ;;  %v7312_v1 = vsel %vm1622_vm7, %v1658_v27, %v6812_v41  ;;  %v3283_v25 = vshrl.u32 %v2978_v3, 16  ;;  %v996_v45 = vand.u32 15, %v840_v50 }
  0xc1   : > { %v7266_v18 = vpop.f32.mrf.mxu0  ;;  %v7288_v43 = vpack.c.bf16 %v2531_v23, %v2530_v58  ;;  %vm1383_vm0 = vcmp.lt.s32.totalorder %v989_v11, 15  ;;  %v2072_v23 = vrot.slane %v2070_v21, 4  ;;  %v2627_v58 = vshrl.u32 %v7217_v35, 16  ;;  %8763 = vst [vmem:[#allocation40_spill] sm:$0xff] %v7312_v1  ;;  %v6436_v21 = vld [vmem:[#allocation2 + $0x50] sm:$0xff]  }
  0xc2   : > { %v7268_v24 = vpop.f32.mrf.mxu2  ;;  %v7270_v13 = vpop.f32.mrf.mxu1  ;;  %v7302_v20 = vsel %vm1383_vm0, 1.0, %v8751_v6  ;;  %v841_v32 = vadd.s32 168, %v6793_v22  ;;  %vm1256_vm3 = vcmp.gt.s32.totalorder %v996_v45, 0  ;;  %v8765_v50 = vrot.slane %v7226_v56, 7 }
  0xc3   : > { %8759 = vst [vmem:[#allocation36_spill] sm:$0xff] %v7268_v24  ;;  %v2631_v11 = vshll.u32 %v7288_v43, 16  ;;  %v2455_v35 = vrot.slane %v7302_v20, 7  ;;  %v2629_v24 = vor.u32 %v2627_v58, %v2625_v33  ;;  %v5543_v56 = vsel %vm1256_vm3, 1.0, %v8751_v6 }
  0xc4   : > { %v7277_v34 = vpop.f32.mrf.mxu3  ;;  %v7330_v20 = vsel %vm2417_vm8, %v8765_v50, %v6818_v46 }
  0xc5   : > { %8760 = vst [vmem:[#allocation37_spill] sm:$0xff] %v7277_v34  ;;  %5652 = vmatmul.msk.bf16.gmra.mxu1 %vm1852_vm2, %v2065_v0  ;;  %v7319_v34 = vor.u32 %v2072_v23, %v2069_v15  ;;  %v2633_v55 = vrot.slane %v2631_v11, 1  ;;  %v6191_v15 = vunpack.c.h.bf16 %v6436_v21  ;;  %v1003_v23 = vand.u32 15, %v841_v32 }
  0xc6   : > { %8766 = vst [vmem:[#allocation42_spill] sm:$0xff] %v7330_v20  ;;  %v2532_v50 = vmul.f32 %v7264_v4, %v7330_v20 }
  0xc7   : > { %5669 = vmatmul.msk.bf16.gmra.mxu2 %vm1852_vm2, %v2626_v9  ;;  %v7308_v9 = vsel %vm1622_vm7, %v6812_v41, %v1658_v27  ;;  %v1738_v27 = vmul.f32 %v7264_v4, %v7312_v1  ;;  %v2074_v11 = vsel %vm1994_vm11, %v7247_v28, %v7319_v34  ;;  %v2634_v45 = vsel %vm2566_vm12, %v2629_v24, %v2633_v55 }
  0xc8   : > { %8762 = vst [vmem:[#allocation39_spill] sm:$0xff] %v7308_v9  ;;  %v2956_v28 = vmul.f32 %v6191_v15, %v7312_v1  ;;  %vm1385_vm4 = vcmp.lt.s32.totalorder %v1003_v23, 15  ;;  %v842_v24 = vadd.s32 176, %v6793_v22 }
  0xc9   : > { %5751 = vmatmul.msk.bf16.gmra.mxu3 %vm1852_vm2, %v5938_v14  ;;  %v7292_v2 = vpop.f32.mrf.mxu0  ;;  %v3286_v14 = vshll.u32 %v2978_v3, 16 }
  0xca   : > { %v7297_v47 = vpop.f32.mrf.mxu2  ;;  %v7299_v0 = vpop.f32.mrf.mxu1  ;;  %v1010_v1 = vand.u32 15, %v842_v24  ;;  %v7392_v24 = vsel %vm2417_vm8, %v2455_v35, %v6818_v46 }
  0xcb   : > { %8761 = vst [vmem:[#allocation38_spill] sm:$0xff] %v7297_v47  ;;  %v1737_v47 = vmul.f32 %v6130_v38, %v7308_v9  ;;  %v3288_v53 = vrot.slane %v3286_v14, 4  ;;  %v7334_v38 = vsel %vm2417_vm8, %v6818_v46, %v2455_v35 }
  0xcc   : > { %v7314_v17 = vpop.f32.mrf.mxu3  ;;  %5767 = vmatmul.msk.bf16.gmra.mxu0 %vm1852_vm2, %v3281_v42  ;;  %v6134_v42 = vunpack.c.l.bf16 %v6436_v21  ;;  %8767 = vst [vmem:[#allocation43_spill] sm:$0xff] %v7334_v38  ;;  %v5939_v21 = vld [vmem:[#allocation2 + $0x44] sm:$0xff]  ;;  %vm1258_vm5 = vcmp.gt.s32.totalorder %v1010_v1, 0 }
  0xcd   : > { %8764 = vst [vmem:[#allocation41_spill] sm:$0xff] %v7314_v17  ;;  %v3285_v17 = vrot.slane %v3283_v25, 3  ;;  %v1761_v25 = vpack.c.bf16 %v1738_v27, %v1737_v47  ;;  %v5544_v30 = vsel %vm1258_vm5, 1.0, %v8751_v6 }
  0xce   : > { %v2533_v32 = vmul.f32 %v6134_v42, %v7334_v38  ;;  %v2955_v57 = vmul.f32 %v6134_v42, %v7308_v9  ;;  %v7360_v38 = vsel %vm1385_vm4, 1.0, %v8751_v6  ;;  %8774 = vst [vmem:[#allocation50_spill] sm:$0xff] %v7392_v24 }
  0xcf   : > { %v2076_v47 = vshrl.u32 %v1761_v25, 16  ;;  %v2079_v27 = vshll.u32 %v1761_v25, 16  ;;  %v8692_v20 = vrot.slane %v7360_v38, 7 }
  0xd0   : > { %v7357_v4 = vpack.c.bf16 %v2533_v32, %v2532_v50  ;;  %v2979_v23 = vpack.c.bf16 %v2956_v28, %v2955_v57  ;;  %v2635_v57 = vshrl.u32 %v7288_v43, 16 }
  0xd1   : > { %v7324_v3 = vpop.f32.mrf.mxu0  ;;  %v7398_v43 = vsel %vm2417_vm8, %v6818_v46, %v8692_v20 }
  0xd2   : > { %v7336_v33 = vpop.f32.mrf.mxu2  ;;  %v7338_v58 = vpop.f32.mrf.mxu1  ;;  %v2639_v28 = vshll.u32 %v7357_v4, 16  ;;  %8775 = vst [vmem:[#allocation51_spill] sm:$0xff] %v7398_v43 }
  0xd3   : > { %8768 = vst [vmem:[#allocation44_spill] sm:$0xff] %v7336_v33  ;;  %v7351_v33 = vor.u32 %v3288_v53, %v3285_v17 }
  0xd4   : > { %v7344_v14 = vpop.f32.mrf.mxu3 }
  0xd5   : > { %8769 = vst [vmem:[#allocation45_spill] sm:$0xff] %v7344_v14  ;;  %5653 = vmatmul.msk.bf16.gmra.mxu1 %vm1852_vm2, %v2074_v11  ;;  %v1662_v14 = vrot.slane %v5543_v56, 1  ;;  %v3290_v17 = vsel %vm1994_vm11, %v7285_v39, %v7351_v33  ;;  %v2078_v56 = vrot.slane %v2076_v47, 3  ;;  %v3292_v47 = vshrl.u32 %v2979_v23, 16 }
  0xd7   : > { %5670 = vmatmul.msk.bf16.gmra.mxu2 %vm1852_vm2, %v2634_v45  ;;  %v2081_v45 = vrot.slane %v2079_v27, 4  ;;  %v7374_v50 = vsel %vm1622_vm7, %v6812_v41, %v1662_v14  ;;  %v7378_v32 = vsel %vm1622_vm7, %v1662_v14, %v6812_v41  ;;  %v3295_v27 = vshll.u32 %v2979_v23, 16 }
  0xd8   : > { %8771 = vst [vmem:[#allocation47_spill] sm:$0xff] %v7374_v50  ;;  %v1739_v9 = vmul.f32 %v6134_v42, %v7374_v50  ;;  %v843_v42 = vadd.s32 184, %v6793_v22  ;;  %v2637_v23 = vor.u32 %v2635_v57, %v2633_v55 }
  0xd9   : > { %5752 = vmatmul.msk.bf16.gmra.mxu3 %vm1852_vm2, %v5939_v21  ;;  %v7363_v53 = vpop.f32.mrf.mxu0  ;;  %8772 = vst [vmem:[#allocation48_spill] sm:$0xff] %v7378_v32  ;;  %v6437_v21 = vld [vmem:[#allocation2 + $0x58] sm:$0xff]   ;;  %v7388_v14 = vor.u32 %v2081_v45, %v2078_v56  ;;  %v3294_v45 = vrot.slane %v3292_v47, 3  ;;  %v3297_v37 = vrot.slane %v3295_v27, 4 }
  0xda   : > { %v7368_v11 = vpop.f32.mrf.mxu2  ;;  %v7370_v25 = vpop.f32.mrf.mxu1  ;;  %v6138_v63 = vunpack.c.l.bf16 %v6437_v21 }
  0xdb   : > { %8770 = vst [vmem:[#allocation46_spill] sm:$0xff] %v7368_v11  ;;  %v1740_v11 = vmul.f32 %v6191_v15, %v7378_v32  ;;  %v2083_v20 = vsel %vm1994_vm11, %v7319_v34, %v7388_v14  ;;  %v5940_v34 = vld [vmem:[#allocation2 + $0x4c] sm:$0xff] }
  0xdc   : > { %v7381_v39 = vpop.f32.mrf.mxu3  ;;  %5768 = vmatmul.msk.bf16.gmra.mxu0 %vm1852_vm2, %v3290_v17  ;;  %v7400_v17 = vunpack.c.h.bf16 %v6437_v21  ;;  %v2534_v21 = vmul.f32 %v6191_v15, %v7392_v24  ;;  %v2535_v1 = vmul.f32 %v6138_v63, %v7398_v43  ;;  %v2957_v57 = vmul.f32 %v6138_v63, %v7374_v50  ;;  %v6438_v50 = vld [vmem:[#allocation2 + $0x60] sm:$0xff]  }
  0xdd   : > { %8773 = vst [vmem:[#allocation49_spill] sm:$0xff] %v7381_v39  ;;  %v2641_v39 = vrot.slane %v2639_v28, 1  ;;  %v1762_v36 = vpack.c.bf16 %v1740_v11, %v1739_v9  ;;  %v1017_v11 = vand.u32 15, %v843_v42  ;;  %v7421_v15 = vor.u32 %v3297_v37, %v3294_v45 }
  0xde   : > { %v2958_v9 = vmul.f32 %v7400_v17, %v7378_v32  ;;  %v1666_v43 = vrot.slane %v5544_v30, 1 }
  0xdf   : > { %v2642_v47 = vsel %vm2566_vm12, %v2637_v23, %v2641_v39  ;;  %v2085_v27 = vshrl.u32 %v1762_v36, 16  ;;  %v2088_v24 = vshll.u32 %v1762_v36, 16  ;;  %vm1387_vm6 = vcmp.lt.s32.totalorder %v1017_v11, 15 }
  0xe0   : > { %v7433_v30 = vsel %vm1622_vm7, %v6812_v41, %v1666_v43  ;;  %v7437_v36 = vsel %vm1622_vm7, %v1666_v43, %v6812_v41 }
  0xe1   : > { %v7403_v56 = vpop.f32.mrf.mxu0  ;;  %v2087_v37 = vrot.slane %v2085_v27, 3  ;;  %v1741_v43 = vmul.f32 %v6138_v63, %v7433_v30  ;;  %v6142_v63 = vunpack.c.l.bf16 %v6438_v50 }
  0xe2   : > { %v7405_v35 = vpop.f32.mrf.mxu2  ;;  %v2207_v48 = vpop.f32.mrf.mxu1 }
  0xe3   : > { %8776 = vst [vmem:[#allocation52_spill] sm:$0xff] %v7405_v35  ;;  %v2208_v55 = vadd.f32 %v2207_v48, %v7151_v44  ;;  %v7423_v35 = vpack.c.bf16 %v2535_v1, %v2534_v21  ;;  %v2980_v44 = vpack.c.bf16 %v2958_v9, %v2957_v57  ;;  %v844_v48 = vadd.s32 192, %v6793_v22 }
  0xe4   : > { %v7417_v28 = vpop.f32.mrf.mxu3  ;;  %v2090_v21 = vrot.slane %v2088_v24, 4  ;;  %v2643_v1 = vshrl.u32 %v7357_v4, 16  ;;  %v7442_v9 = vsel %vm1387_vm6, 1.0, %v8751_v6  ;;  %v1742_v24 = vmul.f32 %v7400_v17, %v7437_v36 }
  0xe5   : > { %8777 = vst [vmem:[#allocation53_spill] sm:$0xff] %v7417_v28  ;;  %5654 = vmatmul.msk.bf16.gmra.mxu1 %vm1852_vm2, %v2083_v20  ;;  %v3299_v20 = vsel %vm1994_vm11, %v7351_v33, %v7421_v15  ;;  %v2647_v57 = vshll.u32 %v7423_v35, 16  ;;  %v1024_v4 = vand.u32 15, %v844_v48  ;;  %v8701_v28 = vrot.slane %v7442_v9, 7 }
  0xe6   : > { %v8780_v48 = vrot.slane %v7360_v38, 7 }
  0xe7   : > { %5671 = vmatmul.msk.bf16.gmra.mxu2 %vm1852_vm2, %v2642_v47  ;;  %v3301_v47 = vshrl.u32 %v2980_v44, 16  ;;  %vm1260_vm9 = vcmp.gt.s32.totalorder %v1024_v4, 0 }
  0xe9   : > { %5753 = vmatmul.msk.bf16.gmra.mxu3 %vm1852_vm2, %v5940_v34  ;;  %v3423_v42 = vpop.f32.mrf.mxu0  ;;  %v3304_v34 = vshll.u32 %v2980_v44, 16  ;;  %v7457_v44 = vrot.slane %v2647_v57, 1 }
  0xea   : > { %v2759_v23 = vpop.f32.mrf.mxu2  ;;  %v2209_v45 = vpop.f32.mrf.mxu1 }
  0xeb   : > { %v7444_v33 = vadd.f32 %v2759_v23, %v2208_v55  ;;  %v2210_v11 = vadd.f32 %v2209_v45, %v7183_v12  ;;  %v845_v55 = vadd.s32 200, %v6793_v22  ;;  %v7455_v23 = vor.u32 %v2090_v21, %v2087_v37 }
  0xec   : > { %v3131_v27 = vpop.f32.mrf.mxu3  ;;  %5769 = vmatmul.msk.bf16.gmra.mxu0 %vm1852_vm2, %v3299_v20  ;;  %v2645_v12 = vor.u32 %v2643_v1, %v2641_v39  ;;  %v3303_v45 = vrot.slane %v3301_v47, 3  ;;  %v3306_v20 = vrot.slane %v3304_v34, 4  ;;  %v7469_v37 = vsel %vm2417_vm8, %v6818_v46, %v8701_v28 }
  0xed   : > { %8778 = vst [vmem:[#allocation54_spill] sm:$0xff] %v7444_v33  ;;  %v7451_v32 = vadd.f32 %v3423_v42, %v3131_v27  ;;  %v1763_v33 = vpack.c.bf16 %v1742_v24, %v1741_v43  ;;  %v7463_v42 = vsel %vm2417_vm8, %v8780_v48, %v6818_v46  ;;  %v7471_v39 = vunpack.c.h.bf16 %v6438_v50 }
  0xee   : > { %8781 = vst [vmem:[#allocation56_spill] sm:$0xff] %v7463_v42  ;;  %v1031_v21 = vand.u32 15, %v845_v55  ;;  %v2092_v47 = vsel %vm1994_vm11, %v7388_v14, %v7455_v23  ;;  %v2650_v38 = vsel %vm2566_vm12, %v2645_v12, %v7457_v44  ;;  %v7481_v43 = vor.u32 %v3306_v20, %v3303_v45 }
  0xef   : > { %8779 = vst [vmem:[#allocation55_spill] sm:$0xff] %v7451_v32  ;;  %v5545_v24 = vsel %vm1260_vm9, 1.0, %v8751_v6  ;;  %v2094_v4 = vshrl.u32 %v1763_v33, 16  ;;  %v2097_v55 = vshll.u32 %v1763_v33, 16  ;;  %v2536_v48 = vmul.f32 %v7400_v17, %v7463_v42 }
  0xf0   : > { %8782 = vst [vmem:[#allocation57_spill] sm:$0xff] %v7469_v37  ;;  %v2537_v28 = vmul.f32 %v6142_v63, %v7469_v37  ;;  %v2959_v12 = vmul.f32 %v6142_v63, %v7433_v30  ;;  %vm1389_vm10 = vcmp.lt.s32.totalorder %v1031_v21, 15  ;;  %v1670_v45 = vrot.slane %v5545_v24, 1 }
  0xf1   : > { %v3425_v29 = vpop.f32.mrf.mxu0  ;;  %v846_v33 = vadd.s32 208, %v6793_v22  ;;  %v7498_v17 = vsel %vm1389_vm10, 1.0, %v8751_v6 }
  0xf2   : > { %v2761_v1 = vpop.f32.mrf.mxu2  ;;  %v2212_v57 = vpop.f32.mrf.mxu1  ;;  %v7495_v20 = vpack.c.bf16 %v2537_v28, %v2536_v48  ;;  %v7510_v28 = vsel %vm1622_vm7, %v1670_v45, %v6812_v41 }
  0xf3   : > { %v7478_v34 = vadd.f32 %v2761_v1, %v2210_v11  ;;  %v2213_v27 = vadd.f32 %v2212_v57, %v7220_v31  ;;  %v5941_v11 = vld [vmem:[#allocation2 + $0x54] sm:$0xff]  ;;  %v2960_v31 = vmul.f32 %v7471_v39, %v7437_v36  ;;  %v3308_v1 = vsel %vm1994_vm11, %v7421_v15, %v7481_v43  ;;  %8785 = vst [vmem:[#allocation60_spill] sm:$0xff] %v7510_v28 }
  0xf4   : > { %v3133_v50 = vpop.f32.mrf.mxu3  ;;  %v2096_v57 = vrot.slane %v2094_v4, 3  ;;  %v8706_v15 = vrot.slane %v7498_v17, 7  ;;  %v1038_v4 = vand.u32 15, %v846_v33  ;;  %v1744_v33 = vmul.f32 %v7471_v39, %v7510_v28 }
  0xf5   : > { %8783 = vst [vmem:[#allocation58_spill] sm:$0xff] %v7478_v34  ;;  %v7487_v14 = vadd.f32 %v3425_v29, %v3133_v50  ;;  %5655 = vmatmul.msk.bf16.gmra.mxu1 %vm1852_vm2, %v2092_v47  ;;  %v2099_v47 = vrot.slane %v2097_v55, 4  ;;  %v2981_v21 = vpack.c.bf16 %v2960_v31, %v2959_v12  ;;  %v6439_v34 = vld [vmem:[#allocation2 + $0x68] sm:$0xff]   ;;  %v2651_v12 = vshrl.u32 %v7423_v35, 16 }
  0xf6   : > { %v2655_v31 = vshll.u32 %v7495_v20, 16  ;;  %vm1262_vm13 = vcmp.gt.s32.totalorder %v1038_v4, 0 }
  0xf7   : > { %8784 = vst [vmem:[#allocation59_spill] sm:$0xff] %v7487_v14  ;;  %5672 = vmatmul.msk.bf16.gmra.mxu2 %vm1852_vm2, %v2650_v38  ;;  %v7506_v38 = vsel %vm1622_vm7, %v6812_v41, %v1670_v45  ;;  %v847_v14 = vadd.s32 216, %v6793_v22  ;;  %v7522_v45 = vor.u32 %v2099_v47, %v2096_v57  ;;  %v7539_v57 = vunpack.c.h.bf16 %v6439_v34 }
  0xf8   : > { %v2657_v47 = vrot.slane %v2655_v31, 1  ;;  %v5546_v4 = vsel %vm1262_vm13, 1.0, %v8751_v6 }
  0xf9   : > { %5754 = vmatmul.msk.bf16.gmra.mxu3 %vm1852_vm2, %v5941_v11  ;;  %v3428_v29 = vpop.f32.mrf.mxu0 }
  0xfa   : > { %v2764_v24 = vpop.f32.mrf.mxu2  ;;  %v2214_v50 = vpop.f32.mrf.mxu1 }
  0xfb   : > { %v7512_v48 = vadd.f32 %v2764_v24, %v2213_v27  ;;  %v2215_v11 = vadd.f32 %v2214_v50, %v7266_v18  ;;  %v3310_v27 = vshrl.u32 %v2981_v21, 16  ;;  %v3313_v24 = vshll.u32 %v2981_v21, 16 }
  0xfc   : > { %v3136_v55 = vpop.f32.mrf.mxu3  ;;  %5770 = vmatmul.msk.bf16.gmra.mxu0 %vm1852_vm2, %v3308_v1  ;;  %v1743_v18 = vmul.f32 %v6142_v63, %v7506_v38  ;;  %v6146_v50 = vunpack.c.l.bf16 %v6439_v34  ;;  %v8788_v1 = vrot.slane %v7442_v9, 7  ;;  %v2653_v63 = vor.u32 %v2651_v12, %v7457_v44 }
  0xfd   : > { %8786 = vst [vmem:[#allocation61_spill] sm:$0xff] %v7512_v48  ;;  %v7520_v37 = vadd.f32 %v3428_v29, %v3136_v55  ;;  %v7537_v29 = vsel %vm2417_vm8, %v6818_v46, %v8706_v15  ;;  %v1045_v21 = vand.u32 15, %v847_v14  ;;  %v2101_v9 = vsel %vm1994_vm11, %v7455_v23, %v7522_v45 }
  0xfe   : > { %v7531_v35 = vsel %vm2417_vm8, %v8788_v1, %v6818_v46  ;;  %8790 = vst [vmem:[#allocation64_spill] sm:$0xff] %v7537_v29  ;;  %v3312_v1 = vrot.slane %v3310_v27, 3  ;;  %v3315_v48 = vrot.slane %v3313_v24, 4  ;;  %v1764_v32 = vpack.c.bf16 %v1744_v33, %v1743_v18 }
  0xff   : > { %8787 = vst [vmem:[#allocation62_spill] sm:$0xff] %v7520_v37  ;;  %v2538_v15 = vmul.f32 %v7471_v39, %v7531_v35  ;;  %v2539_v34 = vmul.f32 %v6146_v50, %v7537_v29  ;;  %v2961_v12 = vmul.f32 %v6146_v50, %v7506_v38  ;;  %v2962_v23 = vmul.f32 %v7539_v57, %v7510_v28  ;;  %v5942_v39 = vld [vmem:[#allocation2 + $0x5c] sm:$0xff]  ;;  %v5943_v28 = vld [vmem:[#allocation2 + $0x64] sm:$0xff] }
 0x100   : > { %8789 = vst [vmem:[#allocation63_spill] sm:$0xff] %v7531_v35  ;;  %v2658_v27 = vsel %vm2566_vm12, %v2653_v63, %v2657_v47  ;;  %vm1391_vm14 = vcmp.lt.s32.totalorder %v1045_v21, 15  ;;  %v7559_v18 = vor.u32 %v3315_v48, %v3312_v1  ;;  %v2106_v33 = vshll.u32 %v1764_v32, 16 }
 0x101   : > { %v3430_v55 = vpop.f32.mrf.mxu0  ;;  %v848_v63 = vadd.s32 224, %v6793_v22 }
 0x102   : > { %v2766_v37 = vpop.f32.mrf.mxu2  ;;  %v2217_v42 = vpop.f32.mrf.mxu1  ;;  %v3317_v48 = vsel %vm1994_vm11, %v7481_v43, %v7559_v18 }
 0x103   : > { %v7549_v44 = vadd.f32 %v2766_v37, %v2215_v11  ;;  %v2218_v14 = vadd.f32 %v2217_v42, %v7292_v2  ;;  %v1674_v37 = vrot.slane %v5546_v4, 1  ;;  %v2103_v11 = vshrl.u32 %v1764_v32, 16 }
 0x104   : > { %v3138_v31 = vpop.f32.mrf.mxu3  ;;  %v7562_v2 = vpack.c.bf16 %v2539_v34, %v2538_v15  ;;  %v2982_v42 = vpack.c.bf16 %v2962_v23, %v2961_v12  ;;  %v2108_v34 = vrot.slane %v2106_v33, 4  ;;  %v2659_v4 = vshrl.u32 %v7495_v20, 16  ;;  %v6440_v12 = vld [vmem:[#allocation2 + $0x70] sm:$0xff]  }
 0x105   : > { %8791 = vst [vmem:[#allocation65_spill] sm:$0xff] %v7549_v44  ;;  %v7556_v24 = vadd.f32 %v3430_v55, %v3138_v31  ;;  %5656 = vmatmul.msk.bf16.gmra.mxu1 %vm1852_vm2, %v2101_v9  ;;  %v7565_v44 = vsel %vm1391_vm14, 1.0, %v8751_v6  ;;  %v7574_v32 = vsel %vm1622_vm7, %v6812_v41, %v1674_v37  ;;  %v7578_v15 = vsel %vm1622_vm7, %v1674_v37, %v6812_v41 }
 0x106   : > { %8793 = vst [vmem:[#allocation67_spill] sm:$0xff] %v7578_v15  ;;  %v2105_v1 = vrot.slane %v2103_v11, 3  ;;  %v8709_v23 = vrot.slane %v7565_v44, 7  ;;  %v3322_v37 = vshll.u32 %v2982_v42, 16  ;;  %v1745_v11 = vmul.f32 %v6146_v50, %v7574_v32 }
 0x107   : > { %8792 = vst [vmem:[#allocation66_spill] sm:$0xff] %v7556_v24  ;;  %5673 = vmatmul.msk.bf16.gmra.mxu2 %vm1852_vm2, %v2658_v27  ;;  %v2663_v27 = vshll.u32 %v7562_v2, 16  ;;  %v1746_v20 = vmul.f32 %v7539_v57, %v7578_v15  ;;  %v1052_v33 = vand.u32 15, %v848_v63 }
 0x108   : > { %v7606_v50 = vsel %vm2417_vm8, %v6818_v46, %v8709_v23 }
 0x109   : > { %5755 = vmatmul.msk.bf16.gmra.mxu3 %vm1852_vm2, %v5942_v39  ;;  %v3433_v21 = vpop.f32.mrf.mxu0  ;;  %v3319_v39 = vshrl.u32 %v2982_v42, 16  ;;  %8798 = vst [vmem:[#allocation71_spill] sm:$0xff] %v7606_v50  ;;  %v849_v42 = vadd.s32 232, %v6793_v22  ;;  %v7609_v63 = vrot.slane %v2663_v27, 1  ;;  %vm1264_vm15 = vcmp.gt.s32.totalorder %v1052_v33, 0 }
 0x10a   : > { %v2769_v55 = vpop.f32.mrf.mxu2  ;;  %v2219_v9 = vpop.f32.mrf.mxu1 }
 0x10b   : > { %v7582_v31 = vadd.f32 %v2769_v55, %v2218_v14  ;;  %v2220_v43 = vadd.f32 %v2219_v9, %v7324_v3  ;;  %v7592_v14 = vunpack.c.l.bf16 %v6440_v12  ;;  %v7594_v55 = vor.u32 %v2108_v34, %v2105_v1 }
 0x10c   : > { %v3141_v24 = vpop.f32.mrf.mxu3  ;;  %5771 = vmatmul.msk.bf16.gmra.mxu0 %vm1852_vm2, %v3317_v48  ;;  %v8796_v3 = vrot.slane %v7498_v17, 7  ;;  %v7612_v48 = vld [vmem:[%s6658_s22 + $0x78] sm:$0xff]   ;;  %v3324_v1 = vrot.slane %v3322_v37, 4  ;;  %v1765_v34 = vpack.c.bf16 %v1746_v20, %v1745_v11  ;;  %v7627_v37 = vld [vmem:[%s8637_s3] ss:$0 sm:$0xff] }
 0x10d   : > { %8794 = vst [vmem:[#allocation68_spill] sm:$0xff] %v7582_v31  ;;  %v7590_v29 = vadd.f32 %v3433_v21, %v3141_v24  ;;  %v2661_v24 = vor.u32 %v2659_v4, %v2657_v47  ;;  %v3321_v21 = vrot.slane %v3319_v39, 3  ;;  %v6030_v17 = vunpack.c.l.bf16 %v7612_v48 }
 0x10e   : > { %v7600_v9 = vsel %vm2417_vm8, %v8796_v3, %v6818_v46  ;;  %v2541_v23 = vmul.f32 %v7592_v14, %v7606_v50  ;;  %v2110_v27 = vsel %vm1994_vm11, %v7522_v45, %v7594_v55  ;;  %v1059_v39 = vand.u32 15, %v849_v42 }
 0x10f   : > { %8795 = vst [vmem:[#allocation69_spill] sm:$0xff] %v7590_v29  ;;  %v2540_v31 = vmul.f32 %v7539_v57, %v7600_v9  ;;  %v7619_v29 = vunpack.c.h.bf16 %v6440_v12  ;;  %v664_v11 = vmul.f32 %v7627_v37, %v6030_v17  ;;  %v5547_v12 = vsel %vm1264_vm15, 1.0, %v8751_v6 }
 0x110   : > { %8797 = vst [vmem:[#allocation70_spill] sm:$0xff] %v7600_v9  ;;  %v2666_v50 = vsel %vm2566_vm12, %v2661_v24, %v7609_v63  ;;  %v7636_v9 = vor.u32 %v3324_v1, %v3321_v21  ;;  %v2112_v45 = vshrl.u32 %v1765_v34, 16  ;;  %v2115_v42 = vshll.u32 %v1765_v34, 16  ;;  %v7651_v21 = vld [vmem:[%s8638_s4] ss:$0 sm:$0xff] }
 0x111   : > { %v3435_v3 = vpop.f32.mrf.mxu0  ;;  %v7641_v17 = vpack.c.bf16 %v2541_v23, %v2540_v31  ;;  %vm1393_vm0 = vcmp.lt.s32.totalorder %v1059_v39, 15  ;;  %v850_v24 = vadd.s32 240, %v6793_v22  ;;  %v696_v1 = vadd.f32 %v7651_v21, %v664_v11 }
 0x112   : > { %v2771_v47 = vpop.f32.mrf.mxu2  ;;  %v2222_v4 = vpop.f32.mrf.mxu1  ;;  %v3326_v23 = vsel %vm1994_vm11, %v7559_v18, %v7636_v9  ;;  %v7660_v39 = vsel %vm1393_vm0, 1.0, %v8751_v6  ;;  %v2667_v11 = vshrl.u32 %v7562_v2, 16  ;;  %v6441_v2 = vld [vmem:[#allocation2 + $0x78] sm:$0xff]  }
 0x113   : > { %v7630_v57 = vadd.f32 %v2771_v47, %v2220_v43  ;;  %v2223_v20 = vadd.f32 %v2222_v4, %v7363_v53  ;;  %v2963_v53 = vmul.f32 %v7592_v14, %v7574_v32  ;;  %v2964_v43 = vmul.f32 %v7619_v29, %v7578_v15 }
 0x114   : > { %v3143_v33 = vpop.f32.mrf.mxu3  ;;  %v1678_v47 = vrot.slane %v5547_v12, 1  ;;  %v728_v31 = vmax.f32 %v696_v1, 0.0  ;;  %v2117_v4 = vrot.slane %v2115_v42, 4  ;;  %v1066_v18 = vand.u32 15, %v850_v24 }
 0x115   : > { %8799 = vst [vmem:[#allocation72_spill] sm:$0xff] %v7630_v57  ;;  %v7638_v35 = vadd.f32 %v3435_v3, %v3143_v33  ;;  %5657 = vmatmul.msk.bf16.gmra.mxu1 %vm1852_vm2, %v2110_v27  ;;  %v2114_v3 = vrot.slane %v2112_v45, 3  ;;  %v2983_v27 = vpack.c.bf16 %v2964_v43, %v2963_v53  ;;  %v851_v42 = vadd.s32 248, %v6793_v22 }
 0x116   : > { %v7666_v57 = vsel %vm1622_vm7, %v6812_v41, %v1678_v47  ;;  %v7673_v45 = vsel %vm1622_vm7, %v1678_v47, %v6812_v41  ;;  %v8718_v43 = vrot.slane %v7660_v39, 7  ;;  %vm1266_vm3 = vcmp.gt.s32.totalorder %v1066_v18, 0 }
 0x117   : > { %8800 = vst [vmem:[#allocation73_spill] sm:$0xff] %v7638_v35  ;;  %5674 = vmatmul.msk.bf16.gmra.mxu2 %vm1852_vm2, %v2666_v50  ;;  %v2671_v50 = vshll.u32 %v7641_v17, 16  ;;  %v760_v35 = vpack.c.bf16 %v728_v31, %v728_v31  ;;  %v3328_v24 = vshrl.u32 %v2983_v27, 16  ;;  %v1748_v47 = vmul.f32 %v7619_v29, %v7673_v45 }
 0x118   : > { %v2669_v22 = vor.u32 %v2667_v11, %v7609_v63  ;;  %v6154_v31 = vunpack.c.l.bf16 %v6441_v2 }
 0x119   : > { %5756 = vmatmul.msk.bf16.gmra.mxu3 %vm1852_vm2, %v5943_v28  ;;  %v3438_v34 = vpop.f32.mrf.mxu0  ;;  %792 = vst.msk [vmem:[#allocation2 + $0x84] sm:$0xf] %vm510_vm1, %v760_v35  ;;  %v6031_v35 = vunpack.c.h.bf16 %v7612_v48 }
 0x11a   : > { %v2774_v12 = vpop.f32.mrf.mxu2  ;;  %v2224_v33 = vpop.f32.mrf.mxu1 }
 0x11b   : > { %v7668_v1 = vadd.f32 %v2774_v12, %v2223_v20  ;;  %v2225_v28 = vadd.f32 %v2224_v33, %v7403_v56  ;;  %v3331_v20 = vshll.u32 %v2983_v27, 16  ;;  %v7680_v12 = vor.u32 %v2117_v4, %v2114_v3 }
 0x11c   : > { %v3146_v53 = vpop.f32.mrf.mxu3  ;;  %5772 = vmatmul.msk.bf16.gmra.mxu0 %vm1852_vm2, %v3326_v23  ;;  %v1747_v56 = vmul.f32 %v7592_v14, %v7666_v57  ;;  %v7688_v23 = vrot.slane %v2671_v50, 1  ;;  %v8802_v27 = vrot.slane %v7565_v44, 7  ;;  %v7700_v14 = vsel %vm2417_vm8, %v6818_v46, %v8718_v43 }
 0x11d   : > { %8801 = vst [vmem:[#allocation74_spill] sm:$0xff] %v7668_v1  ;;  %v7678_v15 = vadd.f32 %v3438_v34, %v3146_v53  ;;  %v1073_v34 = vand.u32 15, %v851_v42  ;;  %v7702_v4 = vunpack.c.h.bf16 %v6441_v2  ;;  %v3330_v33 = vrot.slane %v3328_v24, 3 }
 0x11e   : > { %v7694_v3 = vsel %vm2417_vm8, %v8802_v27, %v6818_v46  ;;  %8803 = vst [vmem:[#allocation75_spill] sm:$0xff] %v7700_v14  ;;  %v3333_v11 = vrot.slane %v3331_v20, 4  ;;  %v5548_v50 = vsel %vm1266_vm3, 1.0, %v8751_v6  ;;  %v2119_v42 = vsel %vm1994_vm11, %v7594_v55, %v7680_v12 }
 0x11f   : > { %v1766_v53 = vpack.c.bf16 %v1748_v47, %v1747_v56  ;;  %v665_v27 = vmul.f32 %v7627_v37, %v6031_v35  ;;  %v2542_v2 = vmul.f32 %v7619_v29, %v7694_v3  ;;  %v2543_v48 = vmul.f32 %v6154_v31, %v7700_v14  ;;  %v5944_v37 = vld [vmem:[#allocation2 + $0x6c] sm:$0xff] }
 0x120   : > { %vm1395_vm4 = vcmp.lt.s32.totalorder %v1073_v34, 15  ;;  %v2674_v20 = vsel %vm2566_vm12, %v2669_v22, %v7688_v23  ;;  %v2965_v1 = vmul.f32 %v6154_v31, %v7666_v57  ;;  %v2966_v55 = vmul.f32 %v7702_v4, %v7673_v45 }
 0x121   : > { %v3440_v63 = vpop.f32.mrf.mxu0  ;;  %v1682_v56 = vrot.slane %v5548_v50, 1  ;;  %v697_v29 = vadd.f32 %v7651_v21, %v665_v27  ;;  %v2121_v34 = vshrl.u32 %v1766_v53, 16  ;;  %v2124_v35 = vshll.u32 %v1766_v53, 16  ;;  %v2318_v50 = vld [vmem:[#allocation2 + $0x80] sm:$0xf] }
 0x122   : > { %v2776_v18 = vpop.f32.mrf.mxu2  ;;  %v2227_v44 = vpop.f32.mrf.mxu1  ;;  %v7728_v22 = vpack.c.bf16 %v2543_v48, %v2542_v2  ;;  %v2984_v14 = vpack.c.bf16 %v2966_v55, %v2965_v1 }
 0x123   : > { %v7710_v43 = vadd.f32 %v2776_v18, %v2225_v28  ;;  %v7723_v28 = vor.u32 %v3333_v11, %v3330_v33  ;;  %v5564_v18 = vsel %vm1395_vm4, 1.0, %v8751_v6  ;;  %v7736_v33 = vsel %vm1622_vm7, %v1682_v56, %v6812_v41 }
 0x124   : > { %v3148_v24 = vpop.f32.mrf.mxu3  ;;  %v2228_v21 = vadd.f32 %v2227_v44, %v7132_v40  ;;  %v2123_v2 = vrot.slane %v2121_v34, 3  ;;  %v2126_v48 = vrot.slane %v2124_v35, 4  ;;  %v2679_v40 = vshll.u32 %v7728_v22, 16 }
 0x125   : > { %8804 = vst [vmem:[#allocation76_spill] sm:$0xff] %v7710_v43  ;;  %v7720_v47 = vadd.f32 %v3440_v63, %v3148_v24  ;;  %5658 = vmatmul.msk.bf16.gmra.mxu1 %vm1852_vm2, %v2119_v42  ;;  %v729_v43 = vmax.f32 %v697_v29, 0.0  ;;  %v7732_v63 = vsel %vm1622_vm7, %v6812_v41, %v1682_v56  ;;  %v3335_v6 = vsel %vm1994_vm11, %v7636_v9, %v7723_v28 }
 0x126   : > { %v7743_v42 = vrot.slane %v5564_v18, 7  ;;  %v2675_v24 = vshrl.u32 %v7641_v17, 16  ;;  %v1749_v44 = vmul.f32 %v6154_v31, %v7732_v63  ;;  %v1750_v9 = vmul.f32 %v7702_v4, %v7736_v33 }
 0x127   : > { %5675 = vmatmul.msk.bf16.gmra.mxu2 %vm1852_vm2, %v2674_v20  ;;  %v761_v1 = vpack.c.bf16 %v729_v43, %v729_v43  ;;  %v6456_v20 = vld [vmem:[#allocation2 + $0x80] sm:$0xff]   ;;  %v3337_v43 = vshrl.u32 %v2984_v14, 16  ;;  %v2351_v29 = vunpack.c.l.bf16 %v2318_v50  ;;  %v8806_v17 = vrot.slane %v7660_v39, 7 }
 0x128   : > { %v7765_v31 = vsel %vm2417_vm8, %v6818_v46, %v7743_v42  ;;  %v6214_v18 = vunpack.c.l.bf16 %v6456_v20  ;;  %v1767_v50 = vpack.c.bf16 %v1750_v9, %v1749_v44  ;;  %v3926_v9 = vld [vmem:[#allocation2 + $0x14] sm:$0xf] }
 0x129   : > { %5757 = vmatmul.msk.bf16.gmra.mxu3 %vm1852_vm2, %v5944_v37  ;;  %v3443_v11 = vpop.f32.mrf.mxu0  ;;  %793 = vst.msk [vmem:[#allocation2 + $0x88] sm:$0xf] %vm510_vm1, %v761_v1  ;;  %v3340_v37 = vshll.u32 %v2984_v14, 16  ;;  %v7758_v34 = vsel %vm2417_vm8, %v8806_v17, %v6818_v46  ;;  %v7767_v1 = vor.u32 %v2126_v48, %v2123_v2  ;;  %v2677_v14 = vor.u32 %v2675_v24, %v7688_v23  ;;  %v1524_v24 = vld [vmem:[#allocation2 + $0x80] sm:$0xf] }
 0x12a   : > { %v2779_v53 = vpop.f32.mrf.mxu2  ;;  %v2229_v27 = vpop.f32.mrf.mxu1  ;;  %8808 = vst [vmem:[#allocation79_spill] sm:$0xff] %v7765_v31  ;;  %v2544_v17 = vmul.f32 %v7702_v4, %v7758_v34  ;;  %v2130_v44 = vshrl.u32 %v1767_v50, 16  ;;  %v2133_v4 = vshll.u32 %v1767_v50, 16 }
 0x12b   : > { %v7746_v55 = vadd.f32 %v2779_v53, %v2228_v21  ;;  %v6215_v21 = vunpack.c.h.bf16 %v6456_v20  ;;  %v3339_v53 = vrot.slane %v3337_v43, 3  ;;  %v3342_v39 = vrot.slane %v3340_v37, 4 }
 0x12c   : > { %v3151_v56 = vpop.f32.mrf.mxu3  ;;  %5773 = vmatmul.msk.bf16.gmra.mxu0 %vm1852_vm2, %v3335_v6  ;;  %v2681_v6 = vrot.slane %v2679_v40, 1  ;;  %v2128_v23 = vsel %vm1994_vm11, %v7680_v12, %v7767_v1  ;;  %v1557_v12 = vunpack.c.l.bf16 %v1524_v24  ;;  %v2135_v50 = vrot.slane %v2133_v4, 4 }
 0x12d   : > { %8805 = vst [vmem:[#allocation77_spill] sm:$0xff] %v7746_v55  ;;  %v7760_v35 = vadd.f32 %v3443_v11, %v3151_v56  ;;  %v2545_v11 = vmul.f32 %v7765_v31, %v2351_v29  ;;  %v2230_v56 = vadd.f32 %v2229_v27, %v7158_v59  ;;  %v2968_v20 = vmul.f32 %v6215_v21, %v7736_v33 }
 0x12e   : > { %v2682_v59 = vsel %vm2566_vm12, %v2677_v14, %v2681_v6  ;;  %v7782_v27 = vor.u32 %v3342_v39, %v3339_v53  ;;  %v3959_v31 = vunpack.c.l.bf16 %v3926_v9  ;;  %v3503_v9 = vld [vmem:[#allocation2 + $0xc] sm:$0xf] }
 0x12f   : > { %8807 = vst [vmem:[#allocation78_spill] sm:$0xff] %v7760_v35  ;;  %v2967_v35 = vmul.f32 %v6214_v18, %v7732_v63  ;;  %v7784_v37 = vpack.c.bf16 %v2545_v11, %v2544_v17  ;;  %v5945_v18 = vld [vmem:[#allocation2 + $0x74] sm:$0xff]  ;;  %v1751_v11 = vmul.f32 %v6812_v41, %v1557_v12 }
 0x130   : > { %v3344_v14 = vsel %vm1994_vm11, %v7723_v28, %v7782_v27 }
 0x131   : > { %v3445_v55 = vpop.f32.mrf.mxu0  ;;  %v2985_v21 = vpack.c.bf16 %v2968_v20, %v2967_v35  ;;  %v2687_v53 = vshll.u32 %v7784_v37, 16  ;;  %v2319_v20 = vld [vmem:[#allocation2 + $0x84] sm:$0x1] }
 0x132   : > { %v2781_v2 = vpop.f32.mrf.mxu2  ;;  %v2232_v48 = vpop.f32.mrf.mxu1 }
 0x133   : > { %v7779_v40 = vadd.f32 %v2781_v2, %v2230_v56  ;;  %v2132_v56 = vrot.slane %v2130_v44, 3  ;;  %v2683_v2 = vshrl.u32 %v7728_v22, 16  ;;  %v3346_v35 = vshrl.u32 %v2985_v21, 16 }
 0x134   : > { %v3153_v43 = vpop.f32.mrf.mxu3  ;;  %v3349_v17 = vshll.u32 %v2985_v21, 16  ;;  %v3992_v22 = vmul.f32 %v3959_v31, %v6861_v7  ;;  %v3536_v21 = vunpack.c.l.bf16 %v3503_v9  ;;  %v1768_v31 = vpack.c.bf16 %v1751_v11, %v1751_v11 }
 0x135   : > { %8809 = vst [vmem:[#allocation80_spill] sm:$0xff] %v7779_v40  ;;  %v7786_v29 = vadd.f32 %v3445_v55, %v3153_v43  ;;  %5659 = vmatmul.msk.bf16.gmra.mxu1 %vm1852_vm2, %v2128_v23  ;;  %v2233_v55 = vadd.f32 %v2232_v48, %v7199_v49  ;;  %v7801_v4 = vor.u32 %v2135_v50, %v2132_v56  ;;  %v3925_v43 = vld [vmem:[#allocation2 + $0x10] sm:$0x8]  ;;  %v7804_v48 = vrot.slane %v2687_v53, 1 }
 0x136   : > { %v2685_v28 = vor.u32 %v2683_v2, %v2681_v6  ;;  %v3958_v12 = vunpack.c.l.bf16 %v3925_v43  ;;  %v3351_v7 = vrot.slane %v3349_v17, 4  ;;  %v3569_v56 = vmul.f32 %v3536_v21, %v6818_v46 }
 0x137   : > { %8810 = vst [vmem:[#allocation81_spill] sm:$0xff] %v7786_v29  ;;  %5676 = vmatmul.msk.bf16.gmra.mxu2 %vm1852_vm2, %v2682_v59  ;;  %v2352_v59 = vunpack.c.l.bf16 %v2319_v20  ;;  %v3348_v29 = vrot.slane %v3346_v35, 3  ;;  %v2137_v50 = vsel %vm1994_vm11, %v7767_v1, %v7801_v4  ;;  %v7824_v9 = vpack.c.bf16 %v6867_v10, %v6864_v8  ;;  %v5946_v8 = vld [vmem:[#allocation2 + $0x7c] sm:$0xff] }
 0x138   : > { %v3991_v6 = vmul.f32 %v3958_v12, %v6823_v52  ;;  %v3602_v53 = vpack.c.bf16 %v6854_v5, %v3569_v56  ;;  %v2139_v52 = vshrl.u32 %v1768_v31, 16 }
 0x139   : > { %5758 = vmatmul.msk.bf16.gmra.mxu3 %vm1852_vm2, %v5945_v18  ;;  %v3448_v39 = vpop.f32.mrf.mxu0  ;;  %v2903_v18 = vld [vmem:[#allocation2 + $0x88] sm:$0xf]  ;;  %v7819_v11 = vor.u32 %v3351_v7, %v3348_v29  ;;  %v2546_v20 = vmul.f32 %v7743_v42, %v2352_v59  ;;  %v4557_v29 = vld [vmem:[#allocation2 + $0x14] sm:$0xf]  ;;  %v3629_v59 = vshll.u32 %v7824_v9, 16 }
 0x13a   : > { %v2784_v23 = vpop.f32.mrf.mxu2  ;;  %v2234_v24 = vpop.f32.mrf.mxu1  ;;  %v2936_v2 = vunpack.c.l.bf16 %v2903_v18 }
 0x13b   : > { %v7799_v44 = vadd.f32 %v2784_v23, %v2233_v55  ;;  %v4024_v55 = vpack.c.bf16 %v3992_v22, %v3991_v6  ;;  %v2235_v35 = vadd.f32 %v2234_v24, %v7231_v54  ;;  %v2142_v6 = vshll.u32 %v1768_v31, 16 }
 0x13c   : > { %v3156_v49 = vpop.f32.mrf.mxu3  ;;  %5774 = vmatmul.msk.bf16.gmra.mxu0 %vm1852_vm2, %v3344_v14  ;;  %v2690_v14 = vsel %vm2566_vm12, %v2685_v28, %v7804_v48  ;;  %v3624_v28 = vshll.u32 %v3602_v53, 16 }
 0x13d   : > { %v7806_v40 = vadd.f32 %v3448_v39, %v3156_v49  ;;  %v4025_v39 = vpack.c.bf16 %v6841_v62, %v6838_v61  ;;  %v4266_v5 = vshrl.u32 %v4024_v55, 16  ;;  %v4269_v22 = vshll.u32 %v4024_v55, 16 }
 0x13e   : > { %v2969_v61 = vmul.f32 %v2936_v2, %v6812_v41  ;;  %v3622_v49 = vshrl.u32 %v3602_v53, 16  ;;  %v3626_v18 = vrot.slane %v3624_v28, 1  ;;  %v7833_v2 = vrot.slane %v3629_v59, 1 }
 0x13f   : > { %v4274_v62 = vshrl.u32 %v4025_v39, 16  ;;  %v4277_v54 = vshll.u32 %v4025_v39, 16  ;;  %v4268_v21 = vrot.slane %v4266_v5, 3  ;;  %v4271_v10 = vrot.slane %v4269_v22, 4 }
 0x140   : > { %v3627_v55 = vor.u32 %v3626_v18, %v3622_v49  ;;  %v4590_v39 = vunpack.c.l.bf16 %v4557_v29  ;;  %v7845_v28 = vpack.c.bf16 %v6889_v26, %v6885_v16  ;;  %v2144_v29 = vrot.slane %v2142_v6, 4 }
 0x141   : > { %v3450_v17 = vpop.f32.mrf.mxu0  ;;  %v4276_v7 = vrot.slane %v4274_v62, 3  ;;  %v4279_v56 = vrot.slane %v4277_v54, 4  ;;  %v4272_v53 = vor.u32 %v4271_v10, %v4268_v21  ;;  %v2141_v54 = vrot.slane %v2139_v52, 3 }
 0x142   : > { %v2786_v23 = vpop.f32.mrf.mxu2  ;;  %v2237_v1 = vpop.f32.mrf.mxu1  ;;  %v4683_v26 = vshll.u32 %v7845_v28, 16 }
 0x143   : > { %v7826_v43 = vadd.f32 %v2786_v23, %v2235_v35  ;;  %v7836_v35 = vor.u32 %v4279_v56, %v4276_v7  ;;  %v2563_v23 = vpack.c.bf16 %v2546_v20, %v2546_v20  ;;  %v2238_v31 = vadd.f32 %v2237_v1, %v7270_v13 }
 0x144   : > { %v3158_v24 = vpop.f32.mrf.mxu3  ;;  %v2986_v20 = vpack.c.bf16 %v2969_v61, %v2969_v61  ;;  %v2145_v52 = vor.u32 %v2144_v29, %v2141_v54  ;;  %v7864_v10 = vrot.slane %v4683_v26, 1 }
 0x145   : > { %v7830_v12 = vadd.f32 %v3450_v17, %v3158_v24  ;;  %5660 = vmatmul.msk.bf16.gmra.mxu1 %vm1852_vm2, %v2137_v50  ;;  %v7840_v17 = vsel %vm2566_vm12, %v3627_v55, %v7833_v2  ;;  %v4623_v50 = vmul.f32 %v4590_v39, %v6818_v46  ;;  %v7854_v22 = vsel %vm1994_vm11, %v4272_v53, %v7836_v35 }
 0x146   : > { %v2695_v61 = vshll.u32 %v2563_v23, 16  ;;  %v3355_v59 = vshrl.u32 %v2986_v20, 16  ;;  %v3358_v21 = vshll.u32 %v2986_v20, 16 }
 0x147   : > { %5677 = vmatmul.msk.bf16.gmra.mxu2 %vm1852_vm2, %v2690_v14  ;;  %v3353_v14 = vsel %vm1994_vm11, %v7782_v27, %v7819_v11  ;;  %v4656_v16 = vpack.c.bf16 %v6877_v19, %v4623_v50  ;;  %v2691_v27 = vshrl.u32 %v7784_v37, 16  ;;  %v2146_v50 = vsel %vm1994_vm11, %v7801_v4, %v2145_v52 }
 0x148   : > { %v2697_v7 = vrot.slane %v2695_v61, 1  ;;  %v3357_v39 = vrot.slane %v3355_v59, 3  ;;  %v3360_v37 = vrot.slane %v3358_v21, 4 }
 0x149   : > { %5759 = vmatmul.msk.bf16.gmra.mxu3 %vm1852_vm2, %v5946_v8  ;;  %v3453_v5 = vpop.f32.mrf.mxu0  ;;  %v4676_v24 = vshrl.u32 %v4656_v16, 16  ;;  %v4678_v49 = vshll.u32 %v4656_v16, 16  ;;  %v2693_v19 = vor.u32 %v2691_v27, %v7804_v48 }
 0x14a   : > { %v2789_v62 = vpop.f32.mrf.mxu2  ;;  %v2239_v46 = vpop.f32.mrf.mxu1 }
 0x14b   : > { %v7858_v13 = vadd.f32 %v2789_v62, %v2238_v31  ;;  %v4680_v8 = vrot.slane %v4678_v49, 1  ;;  %v2240_v6 = vadd.f32 %v2239_v46, %v7299_v0  ;;  %v2698_v48 = vsel %vm2566_vm12, %v2693_v19, %v2697_v7  ;;  %v5947_v0 = vld [vmem:[#allocation2 + $0x84] sm:$0xff] }
 0x14c   : > { %v3161_v1 = vpop.f32.mrf.mxu3  ;;  %5775 = vmatmul.msk.bf16.gmra.mxu0 %vm1852_vm2, %v3353_v14  ;;  %v3361_v62 = vor.u32 %v3360_v37, %v3357_v39  ;;  %v8812_v39 = vld [vmem:[#allocation5_spill] sm:$0xff] }
 0x14d   : > { %v7862_v18 = vadd.f32 %v3453_v5, %v3161_v1  ;;  %v4681_v56 = vor.u32 %v4680_v8, %v4676_v24  ;;  %v6459_v1 = vld [vmem:[#allocation2 + $0x20] sm:$0xff]   ;;  %v6536_v24 = vld [vmem:[#allocation2 + $0x18] sm:$0xff]   ;;  %v6489_v8 = vld [vmem:[#allocation2 + $0x28] sm:$0xff]  }
 0x14e   : > { %v3362_v54 = vsel %vm1994_vm11, %v7819_v11, %v3361_v62  ;;  %v6223_v49 = vunpack.c.h.bf16 %v6536_v24  ;;  %v6226_v59 = vunpack.c.l.bf16 %v6459_v1 }
 0x14f   : > { %v4686_v31 = vsel %vm2566_vm12, %v4681_v56, %v7864_v10 }
 0x150   : > { %v3573_v7 = vmul.f32 %v6223_v49, %v6940_v51  ;;  %v3574_v56 = vmul.f32 %v6226_v59, %v6946_v60  ;;  %v3633_v49 = vshrl.u32 %v7824_v9, 16  ;;  %v4687_v9 = vshrl.u32 %v7845_v28, 16 }
 0x151   : > { %v3455_v55 = vpop.f32.mrf.mxu0 }
 0x152   : > { %v2791_v53 = vpop.f32.mrf.mxu2  ;;  %v2242_v23 = vpop.f32.mrf.mxu1  ;;  %v7899_v62 = vpack.c.bf16 %v3574_v56, %v3573_v7 }
 0x153   : > { %v7872_v5 = vadd.f32 %v2791_v53, %v2240_v6  ;;  %v2243_v46 = vadd.f32 %v2242_v23, %v7338_v58  ;;  %v6283_v58 = vunpack.c.h.bf16 %v6459_v1  ;;  %v8811_v6 = vld [vmem:[#allocation4_spill] sm:$0xff]  ;;  %v5948_v23 = vld [vmem:[#allocation2 + $0x14] sm:$0xff] }
 0x154   : > { %v3163_v14 = vpop.f32.mrf.mxu3 }
 0x155   : > { %v7875_v20 = vadd.f32 %v3455_v55, %v3163_v14  ;;  %5661 = vmatmul.msk.bf16.gmra.mxu1 %vm1852_vm2, %v2146_v50  ;;  %v3995_v55 = vmul.f32 %v6226_v59, %v8811_v6  ;;  %v3996_v37 = vmul.f32 %v6283_v58, %v8812_v39  ;;  %v6537_v14 = vld [vmem:[#allocation2 + $0x20] sm:$0xff]   ;;  %v8818_v39 = vld [vmem:[#allocation6_spill] sm:$0xff] }
 0x157   : > { %5678 = vmatmul.msk.bf16.gmra.mxu2 %vm1852_vm2, %v2698_v48  ;;  %v6343_v48 = vunpack.c.h.bf16 %v6537_v14  ;;  %v8820_v14 = vld [vmem:[#allocation28_spill] sm:$0xff] }
 0x159   : > { %5760 = vmatmul.msk.bf16.gmra.mxu3 %vm1852_vm2, %v5947_v0  ;;  %v3458_v4 = vpop.f32.mrf.mxu0  ;;  %v6346_v0 = vunpack.c.l.bf16 %v6489_v8 }
 0x15a   : > { %v2794_v29 = vpop.f32.mrf.mxu2  ;;  %v2244_v16 = vpop.f32.mrf.mxu1 }
 0x15b   : > { %v7883_v26 = vadd.f32 %v2794_v29, %v2243_v46  ;;  %v2245_v21 = vadd.f32 %v2244_v16, %v7370_v25  ;;  %v4026_v46 = vpack.c.bf16 %v3996_v37, %v3995_v55  ;;  %v8815_v29 = vld [vmem:[#allocation22_spill] sm:$0xff]  ;;  %v3997_v37 = vmul.f32 %v6346_v0, %v8818_v39 }
 0x15c   : > { %v3166_v27 = vpop.f32.mrf.mxu3  ;;  %5776 = vmatmul.msk.bf16.gmra.mxu0 %vm1852_vm2, %v3362_v54  ;;  %v4628_v54 = vmul.f32 %v6346_v0, %v6946_v60  ;;  %v6287_v60 = vunpack.c.h.bf16 %v6489_v8 }
 0x15d   : > { %v7886_v61 = vadd.f32 %v3458_v4, %v3166_v27  ;;  %v4627_v4 = vmul.f32 %v6343_v48, %v6940_v51  ;;  %v4283_v59 = vshrl.u32 %v4026_v46, 16 }
 0x15f   : > { %v7912_v51 = vpack.c.bf16 %v4628_v54, %v4627_v4  ;;  %v4285_v56 = vrot.slane %v4283_v59, 3  ;;  %v8822_v4 = vld [vmem:[#allocation9_spill] sm:$0xff]  ;;  %v4689_v59 = vor.u32 %v4687_v9, %v7864_v10  ;;  %v8825_v9 = vld [vmem:[#allocation30_spill] sm:$0xff] }
 0x160   : > { %v3576_v54 = vmul.f32 %v6346_v0, %v8822_v4 }
 0x161   : > { %v3460_v52 = vpop.f32.mrf.mxu0  ;;  %v4691_v55 = vshll.u32 %v7912_v51, 16 }
 0x162   : > { %v2796_v19 = vpop.f32.mrf.mxu2  ;;  %v2247_v11 = vpop.f32.mrf.mxu1 }
 0x163   : > { %v7893_v53 = vadd.f32 %v2796_v19, %v2245_v21  ;;  %v2248_v16 = vadd.f32 %v2247_v11, %v8815_v29  ;;  %v4286_v21 = vshll.u32 %v4026_v46, 16  ;;  %v8821_v46 = vld [vmem:[#allocation8_spill] sm:$0xff] }
 0x164   : > { %v3168_v50 = vpop.f32.mrf.mxu3  ;;  %v3575_v8 = vmul.f32 %v6283_v58, %v8821_v46 }
 0x165   : > { %8813 = vst [vmem:[#allocation4_spill] sm:$0xff] %v7893_v53  ;;  %v7895_v25 = vadd.f32 %v3460_v52, %v3168_v50  ;;  %5778 = vmatmul.msk.bf16.vlgmr.msra.gmra.mxu1 %vm1852_vm2, %v7840_v17  ;;  %v3637_v17 = vshll.u32 %v7899_v62, 16  ;;  %v4288_v6 = vrot.slane %v4286_v21, 4  ;;  %v4693_v21 = vrot.slane %v4691_v55, 1  ;;  %v5958_v53 = vld [vmem:[#allocation2 + $0x64] sm:$0xff] }
 0x166   : > { %v7931_v58 = vpack.c.bf16 %v3576_v54, %v3575_v8 }
 0x167   : > { %8814 = vst [vmem:[#allocation5_spill] sm:$0xff] %v7895_v25  ;;  %5860 = vmatmul.msk.bf16.vlgmr.msra.gmra.mxu2 %vm1852_vm2, %v5948_v23  ;;  %v3639_v7 = vrot.slane %v3637_v17, 1  ;;  %v8819_v23 = vld [vmem:[#allocation7_spill] sm:$0xff] }
 0x168   : > { %v3998_v50 = vmul.f32 %v6287_v60, %v8819_v23  ;;  %v3645_v23 = vshll.u32 %v7931_v58, 16 }
 0x169   : > { %5876 = vmatmul.msk.bf16.vlgmr.msra.gmra.mxu3 %vm1852_vm2, %v7854_v22  ;;  %v3463_v1 = vpop.f32.mrf.mxu0  ;;  %v3635_v22 = vor.u32 %v3633_v49, %v7833_v2  ;;  %v5949_v49 = vld [vmem:[#allocation2 + $0x1c] sm:$0xff] }
 0x16a   : > { %v2799_v27 = vpop.f32.mrf.mxu2  ;;  %v2249_v24 = vpop.f32.mrf.mxu1 }
 0x16b   : > { %v7909_v52 = vadd.f32 %v2799_v27, %v2248_v16  ;;  %v3640_v16 = vsel %vm2566_vm12, %v3635_v22, %v3639_v7  ;;  %v6490_v27 = vld [vmem:[#allocation2 + $0x30] sm:$0xff]  }
 0x16c   : > { %v3171_v19 = vpop.f32.mrf.mxu3  ;;  %5893 = vmatmul.msk.bf16.vlgmr.msra.gmra.mxu0 %vm1852_vm2, %v4686_v31  ;;  %v2250_v31 = vadd.f32 %v2249_v24, %v8820_v14  ;;  %v6350_v0 = vunpack.c.l.bf16 %v6490_v27 }
 0x16d   : > { %8816 = vst [vmem:[#allocation22_spill] sm:$0xff] %v7909_v52  ;;  %v7914_v11 = vadd.f32 %v3463_v1, %v3171_v19  ;;  %v4289_v1 = vor.u32 %v4288_v6, %v4285_v56  ;;  %v4027_v19 = vpack.c.bf16 %v3998_v50, %v3997_v37  ;;  %v4694_v56 = vsel %vm2566_vm12, %v4689_v59, %v4693_v21 }
 0x16e   : > { %v3641_v6 = vshrl.u32 %v7899_v62, 16  ;;  %v4629_v50 = vmul.f32 %v6287_v60, %v8821_v46  ;;  %v4630_v14 = vmul.f32 %v6350_v0, %v8822_v4  ;;  %v8828_v46 = vld [vmem:[#allocation36_spill] sm:$0xff] }
 0x16f   : > { %8817 = vst [vmem:[#allocation82_spill] sm:$0xff] %v7914_v11  ;;  %v4290_v22 = vsel %vm1994_vm11, %v7836_v35, %v4289_v1  ;;  %v4292_v39 = vshrl.u32 %v4027_v19, 16  ;;  %v4295_v10 = vshll.u32 %v4027_v19, 16 }
 0x171   : > { %v3465_v48 = vpop.f32.mrf.mxu0  ;;  %v4294_v62 = vrot.slane %v4292_v39, 3  ;;  %v4297_v54 = vrot.slane %v4295_v10, 4  ;;  %v6491_v39 = vld [vmem:[#allocation2 + $0x38] sm:$0xff]  }
 0x172   : > { %v2801_v29 = vpop.f32.mrf.mxu2  ;;  %v2252_v2 = vpop.f32.mrf.mxu1 }
 0x173   : > { %v7925_v28 = vadd.f32 %v2801_v29, %v2250_v31  ;;  %v2253_v55 = vadd.f32 %v2252_v2, %v8825_v9  ;;  %v3643_v2 = vor.u32 %v3641_v6, %v3639_v7  ;;  %v7950_v59 = vor.u32 %v4297_v54, %v4294_v62  ;;  %v8830_v6 = vld [vmem:[#allocation13_spill] sm:$0xff] }
 0x174   : > { %v3173_v17 = vpop.f32.mrf.mxu3  ;;  %v4695_v9 = vshrl.u32 %v7912_v51, 16  ;;  %v6354_v54 = vunpack.c.l.bf16 %v6491_v39 }
 0x175   : > { %8823 = vst [vmem:[#allocation6_spill] sm:$0xff] %v7925_v28  ;;  %v7928_v24 = vadd.f32 %v3465_v48, %v3173_v17  ;;  %5779 = vmatmul.msk.bf16.gmra.mxu1 %vm1852_vm2, %v3640_v16  ;;  %v3647_v16 = vrot.slane %v3645_v23, 1  ;;  %v6291_v17 = vunpack.c.h.bf16 %v6490_v27  ;;  %v3578_v23 = vmul.f32 %v6350_v0, %v8830_v6 }
 0x176   : > { %v4697_v51 = vor.u32 %v4695_v9, %v4693_v21 }
 0x177   : > { %8824 = vst [vmem:[#allocation7_spill] sm:$0xff] %v7928_v24  ;;  %5861 = vmatmul.msk.bf16.gmra.mxu2 %vm1852_vm2, %v5949_v49  ;;  %v7948_v49 = vpack.c.bf16 %v4630_v14, %v4629_v50  ;;  %v8831_v50 = vld [vmem:[#allocation10_spill] sm:$0xff]  ;;  %v8832_v14 = vld [vmem:[#allocation11_spill] sm:$0xff] }
 0x178   : > { %v3999_v27 = vmul.f32 %v6350_v0, %v8831_v50 }
 0x179   : > { %5877 = vmatmul.msk.bf16.gmra.mxu3 %vm1852_vm2, %v4290_v22  ;;  %v3468_v37 = vpop.f32.mrf.mxu0  ;;  %v3648_v22 = vsel %vm2566_vm12, %v3643_v2, %v3647_v16 }
 0x17a   : > { %v2804_v35 = vpop.f32.mrf.mxu2  ;;  %v2254_v31 = vpop.f32.mrf.mxu1 }
 0x17b   : > { %v7943_v48 = vadd.f32 %v2804_v35, %v2253_v55  ;;  %v2255_v4 = vadd.f32 %v2254_v31, %v8828_v46  ;;  %v4000_v35 = vmul.f32 %v6291_v17, %v8832_v14  ;;  %v5950_v31 = vld [vmem:[#allocation2 + $0x24] sm:$0xff] }
 0x17c   : > { %v3176_v8 = vpop.f32.mrf.mxu3  ;;  %5894 = vmatmul.msk.bf16.gmra.mxu0 %vm1852_vm2, %v4694_v56  ;;  %v4699_v56 = vshll.u32 %v7948_v49, 16 }
 0x17d   : > { %8826 = vst [vmem:[#allocation28_spill] sm:$0xff] %v7943_v48  ;;  %v7946_v29 = vadd.f32 %v3468_v37, %v3176_v8  ;;  %v8829_v37 = vld [vmem:[#allocation12_spill] sm:$0xff] }
 0x17e   : > { %v3577_v7 = vmul.f32 %v6287_v60, %v8829_v37  ;;  %v4701_v46 = vrot.slane %v4699_v56, 1  ;;  %v4299_v60 = vsel %vm1994_vm11, %v4289_v1, %v7950_v59  ;;  %v4631_v0 = vmul.f32 %v6291_v17, %v8829_v37 }
 0x17f   : > { %8827 = vst [vmem:[#allocation8_spill] sm:$0xff] %v7946_v29  ;;  %v4028_v29 = vpack.c.bf16 %v4000_v35, %v3999_v27  ;;  %v3649_v1 = vshrl.u32 %v7931_v58, 16  ;;  %v4703_v58 = vshrl.u32 %v7948_v49, 16 }
 0x180   : > { %v7967_v48 = vpack.c.bf16 %v3578_v23, %v3577_v7  ;;  %v4702_v21 = vsel %vm2566_vm12, %v4697_v51, %v4701_v46 }
 0x181   : > { %v3470_v19 = vpop.f32.mrf.mxu0  ;;  %v4301_v7 = vshrl.u32 %v4028_v29, 16  ;;  %v4304_v23 = vshll.u32 %v4028_v29, 16  ;;  %v3651_v35 = vor.u32 %v3649_v1, %v3647_v16 }
 0x182   : > { %v2806_v10 = vpop.f32.mrf.mxu2  ;;  %v2257_v55 = vpop.f32.mrf.mxu1  ;;  %v3653_v56 = vshll.u32 %v7967_v48, 16 }
 0x183   : > { %v7960_v8 = vadd.f32 %v2806_v10, %v2255_v4  ;;  %v4632_v4 = vmul.f32 %v6354_v54, %v8830_v6  ;;  %v8835_v10 = vld [vmem:[#allocation38_spill] sm:$0xff]  ;;  %v4306_v51 = vrot.slane %v4304_v23, 4 }
 0x184   : > { %v3178_v62 = vpop.f32.mrf.mxu3  ;;  %v2258_v50 = vadd.f32 %v2257_v55, %v8835_v10  ;;  %v6295_v55 = vunpack.c.h.bf16 %v6491_v39  ;;  %v8838_v10 = vld [vmem:[#allocation14_spill] sm:$0xff]  ;;  %v8842_v39 = vld [vmem:[#allocation17_spill] sm:$0xff] }
 0x185   : > { %8833 = vst [vmem:[#allocation9_spill] sm:$0xff] %v7960_v8  ;;  %v7962_v2 = vadd.f32 %v3470_v19, %v3178_v62  ;;  %5780 = vmatmul.msk.bf16.gmra.mxu1 %vm1852_vm2, %v3648_v22  ;;  %v7980_v6 = vpack.c.bf16 %v4632_v4, %v4631_v0  ;;  %v4303_v62 = vrot.slane %v4301_v7, 3  ;;  %v4001_v29 = vmul.f32 %v6354_v54, %v8838_v10  ;;  %v8841_v0 = vld [vmem:[#allocation16_spill] sm:$0xff]  ;;  %v5951_v23 = vld [vmem:[#allocation2 + $0x2c] sm:$0xff] }
 0x186   : > { %v3579_v4 = vmul.f32 %v6291_v17, %v8841_v0  ;;  %v6492_v7 = vld [vmem:[#allocation2 + $0x40] sm:$0xff]   ;;  %v4705_v10 = vor.u32 %v4703_v58, %v4701_v46 }
 0x187   : > { %8834 = vst [vmem:[#allocation30_spill] sm:$0xff] %v7962_v2  ;;  %5862 = vmatmul.msk.bf16.gmra.mxu2 %vm1852_vm2, %v5950_v31  ;;  %v3655_v31 = vrot.slane %v3653_v56, 1  ;;  %v4307_v56 = vor.u32 %v4306_v51, %v4303_v62  ;;  %v8845_v62 = vld [vmem:[#allocation46_spill] sm:$0xff] }
 0x189   : > { %5878 = vmatmul.msk.bf16.gmra.mxu3 %vm1852_vm2, %v4299_v60  ;;  %v3473_v19 = vpop.f32.mrf.mxu0  ;;  %v4707_v60 = vshll.u32 %v7980_v6, 16  ;;  %v3656_v1 = vsel %vm2566_vm12, %v3651_v35, %v3655_v31 }
 0x18a   : > { %v2809_v22 = vpop.f32.mrf.mxu2  ;;  %v2259_v9 = vpop.f32.mrf.mxu1 }
 0x18b   : > { %v7977_v27 = vadd.f32 %v2809_v22, %v2258_v50  ;;  %v8839_v50 = vld [vmem:[#allocation15_spill] sm:$0xff]  ;;  %v4709_v2 = vrot.slane %v4707_v60, 1  ;;  %v4633_v60 = vmul.f32 %v6295_v55, %v8841_v0  ;;  %v8848_v0 = vld [vmem:[#allocation52_spill] sm:$0xff] }
 0x18c   : > { %v3181_v37 = vpop.f32.mrf.mxu3  ;;  %5895 = vmatmul.msk.bf16.gmra.mxu0 %vm1852_vm2, %v4702_v21  ;;  %v4002_v22 = vmul.f32 %v6295_v55, %v8839_v50 }
 0x18d   : > { %8836 = vst [vmem:[#allocation36_spill] sm:$0xff] %v7977_v27  ;;  %v7982_v14 = vadd.f32 %v3473_v19, %v3181_v37  ;;  %v8840_v27 = vld [vmem:[#allocation44_spill] sm:$0xff]  ;;  %v3580_v19 = vmul.f32 %v6354_v54, %v8842_v39  ;;  %v6358_v54 = vunpack.c.l.bf16 %v6492_v7 }
 0x18e   : > { %v2260_v8 = vadd.f32 %v2259_v9, %v8840_v27  ;;  %v4029_v50 = vpack.c.bf16 %v4002_v22, %v4001_v29  ;;  %v4308_v9 = vsel %vm1994_vm11, %v7950_v59, %v4307_v56  ;;  %v3657_v27 = vshrl.u32 %v7967_v48, 16 }
 0x18f   : > { %8837 = vst [vmem:[#allocation12_spill] sm:$0xff] %v7982_v14  ;;  %v7997_v17 = vpack.c.bf16 %v3580_v19, %v3579_v4  ;;  %v4634_v29 = vmul.f32 %v6358_v54, %v8842_v39 }
 0x190   : > { %v4310_v35 = vshrl.u32 %v4029_v50, 16  ;;  %v4313_v46 = vshll.u32 %v4029_v50, 16 }
 0x191   : > { %v3475_v21 = vpop.f32.mrf.mxu0  ;;  %v3661_v58 = vshll.u32 %v7997_v17, 16 }
 0x192   : > { %v2811_v37 = vpop.f32.mrf.mxu2  ;;  %v2262_v16 = vpop.f32.mrf.mxu1  ;;  %v4312_v48 = vrot.slane %v4310_v35, 3  ;;  %v4315_v19 = vrot.slane %v4313_v46, 4  ;;  %v6493_v35 = vld [vmem:[#allocation2 + $0x48] sm:$0xff]  }
 0x193   : > { %v7992_v49 = vadd.f32 %v2811_v37, %v2260_v8  ;;  %v4710_v8 = vsel %vm2566_vm12, %v4705_v10, %v4709_v2  ;;  %v2263_v51 = vadd.f32 %v2262_v16, %v8845_v62  ;;  %v3659_v16 = vor.u32 %v3657_v27, %v3655_v31  ;;  %v8850_v27 = vld [vmem:[#allocation21_spill] sm:$0xff] }
 0x194   : > { %v3183_v14 = vpop.f32.mrf.mxu3  ;;  %v6299_v10 = vunpack.c.h.bf16 %v6492_v7  ;;  %v8016_v50 = vor.u32 %v4315_v19, %v4312_v48 }
 0x195   : > { %8843 = vst [vmem:[#allocation13_spill] sm:$0xff] %v7992_v49  ;;  %v7994_v28 = vadd.f32 %v3475_v21, %v3183_v14  ;;  %5781 = vmatmul.msk.bf16.gmra.mxu1 %vm1852_vm2, %v3656_v1  ;;  %v3663_v1 = vrot.slane %v3661_v58, 1  ;;  %v3582_v58 = vmul.f32 %v6358_v54, %v8850_v27 }
 0x197   : > { %8844 = vst [vmem:[#allocation10_spill] sm:$0xff] %v7994_v28  ;;  %5863 = vmatmul.msk.bf16.gmra.mxu2 %vm1852_vm2, %v5951_v23  ;;  %v8014_v23 = vpack.c.bf16 %v4634_v29, %v4633_v60  ;;  %v3664_v62 = vsel %vm2566_vm12, %v3659_v16, %v3663_v1  ;;  %v8851_v60 = vld [vmem:[#allocation18_spill] sm:$0xff]  ;;  %v8852_v29 = vld [vmem:[#allocation19_spill] sm:$0xff]  ;;  %v6362_v16 = vunpack.c.l.bf16 %v6493_v35 }
 0x198   : > { %v4003_v7 = vmul.f32 %v6358_v54, %v8851_v60 }
 0x199   : > { %5879 = vmatmul.msk.bf16.gmra.mxu3 %vm1852_vm2, %v4308_v9  ;;  %v3478_v14 = vpop.f32.mrf.mxu0 }
 0x19a   : > { %v2814_v59 = vpop.f32.mrf.mxu2  ;;  %v2264_v22 = vpop.f32.mrf.mxu1 }
 0x19b   : > { %v8009_v21 = vadd.f32 %v2814_v59, %v2263_v51  ;;  %v2265_v39 = vadd.f32 %v2264_v22, %v8848_v0  ;;  %v4711_v51 = vshrl.u32 %v7980_v6, 16  ;;  %v8849_v59 = vld [vmem:[#allocation20_spill] sm:$0xff]  ;;  %v5952_v22 = vld [vmem:[#allocation2 + $0x34] sm:$0xff] }
 0x19c   : > { %v3186_v4 = vpop.f32.mrf.mxu3  ;;  %5896 = vmatmul.msk.bf16.gmra.mxu0 %vm1852_vm2, %v4710_v8  ;;  %v4715_v8 = vshll.u32 %v8014_v23, 16  ;;  %v3581_v31 = vmul.f32 %v6295_v55, %v8849_v59  ;;  %v4317_v55 = vsel %vm1994_vm11, %v4307_v56, %v8016_v50  ;;  %v4635_v54 = vmul.f32 %v6299_v10, %v8849_v59 }
 0x19d   : > { %8846 = vst [vmem:[#allocation11_spill] sm:$0xff] %v8009_v21  ;;  %v8012_v37 = vadd.f32 %v3478_v14, %v3186_v4  ;;  %v4004_v4 = vmul.f32 %v6299_v10, %v8852_v29  ;;  %v4713_v6 = vor.u32 %v4711_v51, %v4709_v2  ;;  %v3665_v56 = vshrl.u32 %v7997_v17, 16 }
 0x19e   : > { %v4717_v21 = vrot.slane %v4715_v8, 1  ;;  %v4719_v17 = vshrl.u32 %v8014_v23, 16 }
 0x19f   : > { %8847 = vst [vmem:[#allocation38_spill] sm:$0xff] %v8012_v37  ;;  %v8033_v37 = vpack.c.bf16 %v3582_v58, %v3581_v31  ;;  %v4030_v49 = vpack.c.bf16 %v4004_v4, %v4003_v7  ;;  %v3667_v4 = vor.u32 %v3665_v56, %v3663_v1 }
 0x1a0   : > { %v4718_v2 = vsel %vm2566_vm12, %v4713_v6, %v4717_v21 }
 0x1a1   : > { %v3480_v9 = vpop.f32.mrf.mxu0  ;;  %v3669_v8 = vshll.u32 %v8033_v37, 16  ;;  %v4319_v31 = vshrl.u32 %v4030_v49, 16  ;;  %v4322_v58 = vshll.u32 %v4030_v49, 16 }
 0x1a2   : > { %v2816_v46 = vpop.f32.mrf.mxu2  ;;  %v2267_v14 = vpop.f32.mrf.mxu1 }
 0x1a3   : > { %v8026_v48 = vadd.f32 %v2816_v46, %v2265_v39  ;;  %v4636_v39 = vmul.f32 %v6362_v16, %v8850_v27  ;;  %v8855_v46 = vld [vmem:[#allocation25_spill] sm:$0xff]  ;;  %v4324_v6 = vrot.slane %v4322_v58, 4  ;;  %v5953_v58 = vld [vmem:[#allocation2 + $0x3c] sm:$0xff] }
 0x1a4   : > { %v3188_v19 = vpop.f32.mrf.mxu3  ;;  %v2268_v60 = vadd.f32 %v2267_v14, %v8855_v46  ;;  %v6303_v14 = vunpack.c.h.bf16 %v6493_v35  ;;  %v8858_v46 = vld [vmem:[#allocation23_spill] sm:$0xff] }
 0x1a5   : > { %8853 = vst [vmem:[#allocation14_spill] sm:$0xff] %v8026_v48  ;;  %v8028_v0 = vadd.f32 %v3480_v9, %v3188_v19  ;;  %5782 = vmatmul.msk.bf16.gmra.mxu1 %vm1852_vm2, %v3664_v62  ;;  %v8046_v27 = vpack.c.bf16 %v4636_v39, %v4635_v54  ;;  %v4321_v19 = vrot.slane %v4319_v31, 3  ;;  %v4005_v49 = vmul.f32 %v6362_v16, %v8858_v46  ;;  %v8861_v54 = vld [vmem:[#allocation26_spill] sm:$0xff]  ;;  %v8862_v35 = vld [vmem:[#allocation27_spill] sm:$0xff] }
 0x1a6   : > { %v3583_v39 = vmul.f32 %v6299_v10, %v8861_v54  ;;  %v6494_v31 = vld [vmem:[#allocation2 + $0x50] sm:$0xff]   ;;  %v4721_v46 = vor.u32 %v4719_v17, %v4717_v21 }
 0x1a7   : > { %8854 = vst [vmem:[#allocation15_spill] sm:$0xff] %v8028_v0  ;;  %5864 = vmatmul.msk.bf16.gmra.mxu2 %vm1852_vm2, %v5952_v22  ;;  %v3671_v22 = vrot.slane %v3669_v8, 1  ;;  %v4325_v8 = vor.u32 %v4324_v6, %v4321_v19  ;;  %v8865_v19 = vld [vmem:[#allocation33_spill] sm:$0xff] }
 0x1a9   : > { %5880 = vmatmul.msk.bf16.gmra.mxu3 %vm1852_vm2, %v4317_v55  ;;  %v3483_v9 = vpop.f32.mrf.mxu0  ;;  %v4723_v55 = vshll.u32 %v8046_v27, 16  ;;  %v3672_v56 = vsel %vm2566_vm12, %v3667_v4, %v3671_v22 }
 0x1aa   : > { %v2819_v62 = vpop.f32.mrf.mxu2  ;;  %v2269_v51 = vpop.f32.mrf.mxu1 }
 0x1ab   : > { %v8043_v7 = vadd.f32 %v2819_v62, %v2268_v60  ;;  %v8859_v60 = vld [vmem:[#allocation24_spill] sm:$0xff]  ;;  %v4725_v0 = vrot.slane %v4723_v55, 1  ;;  %v4637_v55 = vmul.f32 %v6303_v14, %v8861_v54  ;;  %v8868_v54 = vld [vmem:[#allocation37_spill] sm:$0xff] }
 0x1ac   : > { %v3191_v59 = vpop.f32.mrf.mxu3  ;;  %5897 = vmatmul.msk.bf16.gmra.mxu0 %vm1852_vm2, %v4718_v2  ;;  %v4006_v62 = vmul.f32 %v6303_v14, %v8859_v60 }
 0x1ad   : > { %8856 = vst [vmem:[#allocation44_spill] sm:$0xff] %v8043_v7  ;;  %v8048_v29 = vadd.f32 %v3483_v9, %v3191_v59  ;;  %v8860_v7 = vld [vmem:[#allocation29_spill] sm:$0xff]  ;;  %v3584_v9 = vmul.f32 %v6362_v16, %v8862_v35  ;;  %v6366_v16 = vunpack.c.l.bf16 %v6494_v31 }
 0x1ae   : > { %v2270_v48 = vadd.f32 %v2269_v51, %v8860_v7  ;;  %v4031_v60 = vpack.c.bf16 %v4006_v62, %v4005_v49  ;;  %v4326_v51 = vsel %vm1994_vm11, %v8016_v50, %v4325_v8  ;;  %v3673_v7 = vshrl.u32 %v8033_v37, 16 }
 0x1af   : > { %8857 = vst [vmem:[#allocation16_spill] sm:$0xff] %v8048_v29  ;;  %v8063_v10 = vpack.c.bf16 %v3584_v9, %v3583_v39  ;;  %v4638_v49 = vmul.f32 %v6366_v16, %v8862_v35 }
 0x1b0   : > { %v4328_v4 = vshrl.u32 %v4031_v60, 16  ;;  %v4331_v21 = vshll.u32 %v4031_v60, 16 }
 0x1b1   : > { %v3485_v2 = vpop.f32.mrf.mxu0  ;;  %v3677_v17 = vshll.u32 %v8063_v10, 16 }
 0x1b2   : > { %v2821_v59 = vpop.f32.mrf.mxu2  ;;  %v2272_v1 = vpop.f32.mrf.mxu1  ;;  %v4330_v37 = vrot.slane %v4328_v4, 3  ;;  %v4333_v9 = vrot.slane %v4331_v21, 4  ;;  %v6495_v4 = vld [vmem:[#allocation2 + $0x58] sm:$0xff]  }
 0x1b3   : > { %v8058_v23 = vadd.f32 %v2821_v59, %v2270_v48  ;;  %v4726_v48 = vsel %vm2566_vm12, %v4721_v46, %v4725_v0  ;;  %v2273_v6 = vadd.f32 %v2272_v1, %v8865_v19  ;;  %v3675_v1 = vor.u32 %v3673_v7, %v3671_v22  ;;  %v8870_v7 = vld [vmem:[#allocation35_spill] sm:$0xff] }
 0x1b4   : > { %v3193_v29 = vpop.f32.mrf.mxu3  ;;  %v6307_v46 = vunpack.c.h.bf16 %v6494_v31  ;;  %v8082_v60 = vor.u32 %v4333_v9, %v4330_v37 }
 0x1b5   : > { %8863 = vst [vmem:[#allocation17_spill] sm:$0xff] %v8058_v23  ;;  %v8060_v28 = vadd.f32 %v3485_v2, %v3193_v29  ;;  %5783 = vmatmul.msk.bf16.gmra.mxu1 %vm1852_vm2, %v3672_v56  ;;  %v3679_v56 = vrot.slane %v3677_v17, 1  ;;  %v3586_v17 = vmul.f32 %v6366_v16, %v8870_v7 }
 0x1b7   : > { %8864 = vst [vmem:[#allocation46_spill] sm:$0xff] %v8060_v28  ;;  %5865 = vmatmul.msk.bf16.gmra.mxu2 %vm1852_vm2, %v5953_v58  ;;  %v8080_v58 = vpack.c.bf16 %v4638_v49, %v4637_v55  ;;  %v3680_v19 = vsel %vm2566_vm12, %v3675_v1, %v3679_v56  ;;  %v8871_v55 = vld [vmem:[#allocation31_spill] sm:$0xff]  ;;  %v8872_v49 = vld [vmem:[#allocation32_spill] sm:$0xff]  ;;  %v6370_v1 = vunpack.c.l.bf16 %v6495_v4 }
 0x1b8   : > { %v4007_v31 = vmul.f32 %v6366_v16, %v8871_v55 }
 0x1b9   : > { %5881 = vmatmul.msk.bf16.gmra.mxu3 %vm1852_vm2, %v4326_v51  ;;  %v3488_v29 = vpop.f32.mrf.mxu0 }
 0x1ba   : > { %v2824_v50 = vpop.f32.mrf.mxu2  ;;  %v2274_v62 = vpop.f32.mrf.mxu1 }
 0x1bb   : > { %v8075_v2 = vadd.f32 %v2824_v50, %v2273_v6  ;;  %v2275_v35 = vadd.f32 %v2274_v62, %v8868_v54  ;;  %v4727_v6 = vshrl.u32 %v8046_v27, 16  ;;  %v8869_v50 = vld [vmem:[#allocation34_spill] sm:$0xff]  ;;  %v5954_v62 = vld [vmem:[#allocation2 + $0x44] sm:$0xff] }
 0x1bc   : > { %v3196_v39 = vpop.f32.mrf.mxu3  ;;  %5898 = vmatmul.msk.bf16.gmra.mxu0 %vm1852_vm2, %v4726_v48  ;;  %v4731_v48 = vshll.u32 %v8080_v58, 16  ;;  %v3585_v22 = vmul.f32 %v6303_v14, %v8869_v50  ;;  %v4335_v14 = vsel %vm1994_vm11, %v4325_v8, %v8082_v60  ;;  %v4639_v16 = vmul.f32 %v6307_v46, %v8869_v50 }
 0x1bd   : > { %8866 = vst [vmem:[#allocation52_spill] sm:$0xff] %v8075_v2  ;;  %v8078_v59 = vadd.f32 %v3488_v29, %v3196_v39  ;;  %v4008_v39 = vmul.f32 %v6307_v46, %v8872_v49  ;;  %v4729_v27 = vor.u32 %v4727_v6, %v4725_v0  ;;  %v3681_v8 = vshrl.u32 %v8063_v10, 16 }
 0x1be   : > { %v4733_v2 = vrot.slane %v4731_v48, 1  ;;  %v4735_v10 = vshrl.u32 %v8080_v58, 16 }
 0x1bf   : > { %8867 = vst [vmem:[#allocation20_spill] sm:$0xff] %v8078_v59  ;;  %v8099_v59 = vpack.c.bf16 %v3586_v17, %v3585_v22  ;;  %v4032_v23 = vpack.c.bf16 %v4008_v39, %v4007_v31  ;;  %v3683_v39 = vor.u32 %v3681_v8, %v3679_v56 }
 0x1c0   : > { %v4734_v0 = vsel %vm2566_vm12, %v4729_v27, %v4733_v2 }
 0x1c1   : > { %v3490_v51 = vpop.f32.mrf.mxu0  ;;  %v3685_v48 = vshll.u32 %v8099_v59, 16  ;;  %v4337_v22 = vshrl.u32 %v4032_v23, 16  ;;  %v4340_v17 = vshll.u32 %v4032_v23, 16 }
 0x1c2   : > { %v2826_v21 = vpop.f32.mrf.mxu2  ;;  %v2277_v29 = vpop.f32.mrf.mxu1 }
 0x1c3   : > { %v8092_v37 = vadd.f32 %v2826_v21, %v2275_v35  ;;  %v4640_v35 = vmul.f32 %v6370_v1, %v8870_v7  ;;  %v8875_v21 = vld [vmem:[#allocation41_spill] sm:$0xff]  ;;  %v4342_v27 = vrot.slane %v4340_v17, 4 }
 0x1c4   : > { %v3198_v9 = vpop.f32.mrf.mxu3  ;;  %v2278_v55 = vadd.f32 %v2277_v29, %v8875_v21  ;;  %v6311_v29 = vunpack.c.h.bf16 %v6495_v4  ;;  %v8878_v21 = vld [vmem:[#allocation39_spill] sm:$0xff]  ;;  %v5955_v17 = vld [vmem:[#allocation2 + $0x4c] sm:$0xff] }
 0x1c5   : > { %8873 = vst [vmem:[#allocation21_spill] sm:$0xff] %v8092_v37  ;;  %v8094_v54 = vadd.f32 %v3490_v51, %v3198_v9  ;;  %5784 = vmatmul.msk.bf16.gmra.mxu1 %vm1852_vm2, %v3680_v19  ;;  %v8112_v7 = vpack.c.bf16 %v4640_v35, %v4639_v16  ;;  %v4339_v9 = vrot.slane %v4337_v22, 3  ;;  %v4009_v23 = vmul.f32 %v6370_v1, %v8878_v21  ;;  %v8881_v16 = vld [vmem:[#allocation42_spill] sm:$0xff]  ;;  %v8882_v4 = vld [vmem:[#allocation43_spill] sm:$0xff]  ;;  %v6496_v22 = vld [vmem:[#allocation2 + $0x60] sm:$0xff]  }
 0x1c6   : > { %v3587_v35 = vmul.f32 %v6307_v46, %v8881_v16  ;;  %v4737_v21 = vor.u32 %v4735_v10, %v4733_v2 }
 0x1c7   : > { %8874 = vst [vmem:[#allocation18_spill] sm:$0xff] %v8094_v54  ;;  %5866 = vmatmul.msk.bf16.gmra.mxu2 %vm1852_vm2, %v5954_v62  ;;  %v3687_v62 = vrot.slane %v3685_v48, 1  ;;  %v4343_v48 = vor.u32 %v4342_v27, %v4339_v9  ;;  %v8885_v9 = vld [vmem:[#allocation49_spill] sm:$0xff] }
 0x1c9   : > { %5882 = vmatmul.msk.bf16.gmra.mxu3 %vm1852_vm2, %v4335_v14  ;;  %v3493_v51 = vpop.f32.mrf.mxu0  ;;  %v4739_v14 = vshll.u32 %v8112_v7, 16  ;;  %v3688_v8 = vsel %vm2566_vm12, %v3683_v39, %v3687_v62 }
 0x1ca   : > { %v2829_v19 = vpop.f32.mrf.mxu2  ;;  %v2279_v6 = vpop.f32.mrf.mxu1 }
 0x1cb   : > { %v8109_v31 = vadd.f32 %v2829_v19, %v2278_v55  ;;  %v8879_v55 = vld [vmem:[#allocation40_spill] sm:$0xff]  ;;  %v4741_v54 = vrot.slane %v4739_v14, 1  ;;  %v4641_v14 = vmul.f32 %v6311_v29, %v8881_v16  ;;  %v8888_v16 = vld [vmem:[#allocation53_spill] sm:$0xff] }
 0x1cc   : > { %v3201_v50 = vpop.f32.mrf.mxu3  ;;  %5899 = vmatmul.msk.bf16.gmra.mxu0 %vm1852_vm2, %v4734_v0  ;;  %v4010_v19 = vmul.f32 %v6311_v29, %v8879_v55 }
 0x1cd   : > { %8876 = vst [vmem:[#allocation19_spill] sm:$0xff] %v8109_v31  ;;  %v8114_v49 = vadd.f32 %v3493_v51, %v3201_v50  ;;  %v8880_v31 = vld [vmem:[#allocation45_spill] sm:$0xff]  ;;  %v3588_v51 = vmul.f32 %v6370_v1, %v8882_v4  ;;  %v6374_v1 = vunpack.c.l.bf16 %v6496_v22 }
 0x1ce   : > { %v2280_v37 = vadd.f32 %v2279_v6, %v8880_v31  ;;  %v4033_v55 = vpack.c.bf16 %v4010_v19, %v4009_v23  ;;  %v4344_v6 = vsel %vm1994_vm11, %v8082_v60, %v4343_v48  ;;  %v3689_v31 = vshrl.u32 %v8099_v59, 16 }
 0x1cf   : > { %8877 = vst [vmem:[#allocation25_spill] sm:$0xff] %v8114_v49  ;;  %v8129_v46 = vpack.c.bf16 %v3588_v51, %v3587_v35  ;;  %v4642_v23 = vmul.f32 %v6374_v1, %v8882_v4 }
 0x1d0   : > { %v4346_v39 = vshrl.u32 %v4033_v55, 16  ;;  %v4349_v2 = vshll.u32 %v4033_v55, 16 }
 0x1d1   : > { %v3495_v0 = vpop.f32.mrf.mxu0  ;;  %v3693_v10 = vshll.u32 %v8129_v46, 16 }
 0x1d2   : > { %v2831_v50 = vpop.f32.mrf.mxu2  ;;  %v2282_v56 = vpop.f32.mrf.mxu1  ;;  %v4348_v59 = vrot.slane %v4346_v39, 3  ;;  %v4351_v51 = vrot.slane %v4349_v2, 4  ;;  %v6497_v39 = vld [vmem:[#allocation2 + $0x68] sm:$0xff]  }
 0x1d3   : > { %v8124_v58 = vadd.f32 %v2831_v50, %v2280_v37  ;;  %v4742_v37 = vsel %vm2566_vm12, %v4737_v21, %v4741_v54  ;;  %v2283_v27 = vadd.f32 %v2282_v56, %v8885_v9  ;;  %v3691_v56 = vor.u32 %v3689_v31, %v3687_v62  ;;  %v8890_v31 = vld [vmem:[#allocation51_spill] sm:$0xff] }
 0x1d4   : > { %v3203_v49 = vpop.f32.mrf.mxu3  ;;  %v6315_v21 = vunpack.c.h.bf16 %v6496_v22  ;;  %v8148_v55 = vor.u32 %v4351_v51, %v4348_v59 }
 0x1d5   : > { %8883 = vst [vmem:[#allocation23_spill] sm:$0xff] %v8124_v58  ;;  %v8126_v28 = vadd.f32 %v3495_v0, %v3203_v49  ;;  %5785 = vmatmul.msk.bf16.gmra.mxu1 %vm1852_vm2, %v3688_v8  ;;  %v3695_v8 = vrot.slane %v3693_v10, 1  ;;  %v3590_v10 = vmul.f32 %v6374_v1, %v8890_v31 }
 0x1d7   : > { %8884 = vst [vmem:[#allocation24_spill] sm:$0xff] %v8126_v28  ;;  %5867 = vmatmul.msk.bf16.gmra.mxu2 %vm1852_vm2, %v5955_v17  ;;  %v8146_v17 = vpack.c.bf16 %v4642_v23, %v4641_v14  ;;  %v3696_v9 = vsel %vm2566_vm12, %v3691_v56, %v3695_v8  ;;  %v8891_v14 = vld [vmem:[#allocation47_spill] sm:$0xff]  ;;  %v8892_v23 = vld [vmem:[#allocation48_spill] sm:$0xff]  ;;  %v6378_v56 = vunpack.c.l.bf16 %v6497_v39 }
 0x1d8   : > { %v4011_v22 = vmul.f32 %v6374_v1, %v8891_v14 }
 0x1d9   : > { %5883 = vmatmul.msk.bf16.gmra.mxu3 %vm1852_vm2, %v4344_v6  ;;  %v3498_v49 = vpop.f32.mrf.mxu0 }
 0x1da   : > { %v2834_v60 = vpop.f32.mrf.mxu2  ;;  %v2284_v19 = vpop.f32.mrf.mxu1 }
 0x1db   : > { %v8141_v0 = vadd.f32 %v2834_v60, %v2283_v27  ;;  %v2285_v4 = vadd.f32 %v2284_v19, %v8888_v16  ;;  %v4743_v27 = vshrl.u32 %v8112_v7, 16  ;;  %v8889_v60 = vld [vmem:[#allocation50_spill] sm:$0xff] }
 0x1dc   : > { %v3206_v35 = vpop.f32.mrf.mxu3  ;;  %5900 = vmatmul.msk.bf16.gmra.mxu0 %vm1852_vm2, %v4742_v37  ;;  %v4747_v37 = vshll.u32 %v8146_v17, 16  ;;  %v3589_v62 = vmul.f32 %v6311_v29, %v8889_v60  ;;  %v5956_v19 = vld [vmem:[#allocation2 + $0x54] sm:$0xff]  ;;  %v4353_v29 = vsel %vm1994_vm11, %v4343_v48, %v8148_v55  ;;  %v4643_v1 = vmul.f32 %v6315_v21, %v8889_v60 }
 0x1dd   : > { %8886 = vst [vmem:[#allocation29_spill] sm:$0xff] %v8141_v0  ;;  %v8144_v50 = vadd.f32 %v3498_v49, %v3206_v35  ;;  %v4012_v35 = vmul.f32 %v6315_v21, %v8892_v23  ;;  %v4745_v7 = vor.u32 %v4743_v27, %v4741_v54  ;;  %v3697_v48 = vshrl.u32 %v8129_v46, 16  ;;  %v8895_v46 = vld [vmem:[#allocation55_spill] sm:$0xff] }
 0x1de   : > { %v4749_v0 = vrot.slane %v4747_v37, 1 }
 0x1df   : > { %8887 = vst [vmem:[#allocation26_spill] sm:$0xff] %v8144_v50  ;;  %v8165_v50 = vpack.c.bf16 %v3590_v10, %v3589_v62  ;;  %v4034_v58 = vpack.c.bf16 %v4012_v35, %v4011_v22  ;;  %v4013_v22 = vmul.f32 %v6378_v56, %v7433_v30  ;;  %v3699_v23 = vor.u32 %v3697_v48, %v3695_v8 }
 0x1e1   : > { %v3500_v6 = vpop.f32.mrf.mxu0  ;;  %v3701_v37 = vshll.u32 %v8165_v50, 16  ;;  %v4355_v62 = vshrl.u32 %v4034_v58, 16  ;;  %v4358_v10 = vshll.u32 %v4034_v58, 16  ;;  %v6498_v58 = vld [vmem:[#allocation2 + $0x70] sm:$0xff]  }
 0x1e2   : > { %v2836_v2 = vpop.f32.mrf.mxu2  ;;  %v3813_v49 = vpop.f32.mrf.mxu1 }
 0x1e3   : > { %v8158_v59 = vadd.f32 %v2836_v2, %v2285_v4  ;;  %v4644_v4 = vmul.f32 %v6378_v56, %v8890_v31  ;;  %v4750_v2 = vsel %vm2566_vm12, %v4745_v7, %v4749_v0  ;;  %v3703_v35 = vrot.slane %v3701_v37, 1 }
 0x1e4   : > { %v3208_v51 = vpop.f32.mrf.mxu3  ;;  %v3893_v7 = vadd.f32 %v3813_v49, %v8895_v46 }
 0x1e5   : > { %8893 = vst [vmem:[#allocation27_spill] sm:$0xff] %v8158_v59  ;;  %v8160_v16 = vadd.f32 %v3500_v6, %v3208_v51  ;;  %5786 = vmatmul.msk.bf16.gmra.mxu1 %vm1852_vm2, %v3696_v9  ;;  %v8172_v9 = vunpack.c.h.bf16 %v6497_v39  ;;  %v8177_v60 = vpack.c.bf16 %v4644_v4, %v4643_v1  ;;  %v4360_v51 = vrot.slane %v4358_v10, 4  ;;  %v8896_v4 = vld [vmem:[#allocation56_spill] sm:$0xff] }
 0x1e6   : > { %v4751_v59 = vshrl.u32 %v8146_v17, 16  ;;  %v3704_v37 = vsel %vm2566_vm12, %v3699_v23, %v3703_v35  ;;  %v5957_v17 = vld [vmem:[#allocation2 + $0x5c] sm:$0xff] }
 0x1e7   : > { %8894 = vst [vmem:[#allocation33_spill] sm:$0xff] %v8160_v16  ;;  %5868 = vmatmul.msk.bf16.gmra.mxu2 %vm1852_vm2, %v5956_v19  ;;  %v4014_v39 = vmul.f32 %v8172_v9, %v7437_v36  ;;  %v4357_v19 = vrot.slane %v4355_v62, 3  ;;  %v4755_v1 = vshll.u32 %v8177_v60, 16  ;;  %v8898_v62 = vld [vmem:[#allocation54_spill] sm:$0xff] }
 0x1e9   : > { %5884 = vmatmul.msk.bf16.gmra.mxu3 %vm1852_vm2, %v4353_v29  ;;  %v4867_v6 = vpop.f32.mrf.mxu0  ;;  %v4035_v36 = vpack.c.bf16 %v4014_v39, %v4013_v22  ;;  %v8188_v49 = vor.u32 %v4360_v51, %v4357_v19 }
 0x1ea   : > { %v4185_v54 = vpop.f32.mrf.mxu2  ;;  %v3815_v27 = vpop.f32.mrf.mxu1 }
 0x1eb   : > { %v4364_v19 = vshrl.u32 %v4035_v36, 16  ;;  %v4367_v51 = vshll.u32 %v4035_v36, 16  ;;  %v4362_v46 = vsel %vm1994_vm11, %v8148_v55, %v8188_v49 }
 0x1ec   : > { %v4477_v14 = vpop.f32.mrf.mxu3  ;;  %5901 = vmatmul.msk.bf16.gmra.mxu0 %vm1852_vm2, %v4750_v2  ;;  %v3591_v2 = vmul.f32 %v6315_v21, %v8896_v4 }
 0x1ed   : > { %v4478_v31 = vadd.f32 %v4477_v14, %v4185_v54  ;;  %v8897_v54 = vld [vmem:[#allocation57_spill] sm:$0xff] }
 0x1ee   : > { %v3592_v30 = vmul.f32 %v6378_v56, %v8897_v54  ;;  %v4753_v56 = vor.u32 %v4751_v59, %v4749_v0  ;;  %v8899_v59 = vld [vmem:[#allocation59_spill] sm:$0xff] }
 0x1ef   : > { %v4947_v29 = vadd.f32 %v4867_v6, %v4478_v31  ;;  %v6382_v6 = vunpack.c.l.bf16 %v6498_v58  ;;  %v8197_v31 = vrot.slane %v4755_v1, 1 }
 0x1f0   : > { %v8199_v22 = vpack.c.bf16 %v3592_v30, %v3591_v2  ;;  %v3705_v2 = vshrl.u32 %v8165_v50, 16  ;;  %v8223_v50 = vunpack.c.h.bf16 %v6498_v58  ;;  %v4759_v58 = vshrl.u32 %v8177_v60, 16 }
 0x1f1   : > { %v4979_v14 = vadd.f32 %v4947_v29, %v3893_v7  ;;  %v4869_v16 = vpop.f32.mrf.mxu0  ;;  %v4645_v7 = vmul.f32 %v8172_v9, %v8896_v4  ;;  %v4646_v0 = vmul.f32 %v6382_v6, %v8897_v54  ;;  %v3894_v29 = vadd.f32 %v3815_v27, %v8899_v59  ;;  %v8901_v59 = vld [vmem:[#allocation60_spill] sm:$0xff] }
 0x1f2   : > { %v4187_v8 = vpop.f32.mrf.mxu2  ;;  %v3818_v48 = vpop.f32.mrf.mxu1  ;;  %v3709_v30 = vshll.u32 %v8199_v22, 16  ;;  %v4758_v54 = vsel %vm2566_vm12, %v4753_v56, %v8197_v31  ;;  %v4369_v27 = vrot.slane %v4367_v51, 4 }
 0x1f3   : > { %v5011_v10 = vadd.f32 %v4979_v14, %v8898_v62  ;;  %v4366_v14 = vrot.slane %v4364_v19, 3  ;;  %v8900_v62 = vld [vmem:[#allocation58_spill] sm:$0xff] }
 0x1f4   : > { %v4479_v21 = vpop.f32.mrf.mxu3 }
 0x1f5   : > { %v5043_v39 = vpack.c.bf16 %v5011_v10, %v5011_v10  ;;  %v4480_v23 = vadd.f32 %v4479_v21, %v4187_v8  ;;  %5787 = vmatmul.msk.bf16.gmra.mxu1 %vm1852_vm2, %v3704_v37  ;;  %v8221_v8 = vpack.c.bf16 %v4646_v0, %v4645_v7  ;;  %v8232_v7 = vor.u32 %v4369_v27, %v4366_v14  ;;  %v8903_v14 = vld [vmem:[#allocation63_spill] sm:$0xff] }
 0x1f6   : > { %v4015_v0 = vmul.f32 %v6382_v6, %v7506_v38  ;;  %v3593_v27 = vmul.f32 %v8172_v9, %v8903_v14 }
 0x1f7   : > { %5075 = vst.msk [vmem:[%s8195_s9] sm:$0xf] %vm510_vm1, %v5043_v39  ;;  %v4948_v1 = vadd.f32 %v4869_v16, %v4480_v23  ;;  %5869 = vmatmul.msk.bf16.gmra.mxu2 %vm1852_vm2, %v5957_v17  ;;  %v5107_v37 = vunpack.c.l.bf16 %v5043_v39  ;;  %v8226_v17 = vld [vmem:[%s479_s12] sm:$0xff]   ;;  %v3707_v23 = vor.u32 %v3705_v2, %v3703_v35  ;;  %v4763_v39 = vshll.u32 %v8221_v8, 16 }
 0x1f8   : > { %v6034_v56 = vunpack.c.l.bf16 %v8226_v17  ;;  %v8242_v35 = vld [vmem:[%s8637_s3] ss:$0 sm:$0xff] }
 0x1f9   : > { %v4980_v55 = vadd.f32 %v4948_v1, %v3894_v29  ;;  %5885 = vmatmul.msk.bf16.gmra.mxu3 %vm1852_vm2, %v4362_v46  ;;  %v4872_v4 = vpop.f32.mrf.mxu0  ;;  %v8229_v46 = vrot.slane %v3709_v30, 1  ;;  %v4016_v29 = vmul.f32 %v8223_v50, %v8901_v59  ;;  %v5210_v2 = vmul.f32 %v5107_v37, %v5107_v37 }
 0x1fa   : > { %v4190_v16 = vpop.f32.mrf.mxu2  ;;  %v3820_v36 = vpop.f32.mrf.mxu1  ;;  %v798_v1 = vmul.f32 %v8242_v35, %v6034_v56  ;;  %v5139_v56 = vsel %vm1852_vm2, %v5107_v37, 0.0  ;;  %v8262_v28 = vrot.slane %v4763_v39, 1  ;;  %v8905_v37 = vld [vmem:[#allocation61_spill] sm:$0xff] }
 0x1fb   : > { %v5012_v10 = vadd.f32 %v4980_v55, %v8900_v62  ;;  %v8902_v55 = vld [vmem:[#allocation62_spill] sm:$0xff]  ;;  %v3712_v38 = vsel %vm2566_vm12, %v3707_v23, %v8229_v46  ;;  %v6499_v23 = vld [vmem:[#allocation2 + $0x78] sm:$0xff]   ;;  %v4036_v24 = vpack.c.bf16 %v4016_v29, %v4015_v0  ;;  %v5242_v52 = vsel %vm1852_vm2, %v5210_v2, 0.0 }
 0x1fc   : > { %v4482_v21 = vpop.f32.mrf.mxu3  ;;  %5902 = vmatmul.msk.bf16.gmra.mxu0 %vm1852_vm2, %v4758_v54  ;;  %v3895_v60 = vadd.f32 %v3818_v48, %v8902_v55  ;;  %v8267_v25 = vunpack.c.l.bf16 %v6499_v23 }
 0x1fd   : > { %v5044_v19 = vpack.c.bf16 %v5012_v10, %v5012_v10  ;;  %v4483_v51 = vadd.f32 %v4482_v21, %v4190_v16  ;;  %v8904_v16 = vld [vmem:[#allocation64_spill] sm:$0xff]  ;;  %v4373_v39 = vshrl.u32 %v4036_v24, 16  ;;  %v4376_v0 = vshll.u32 %v4036_v24, 16 }
 0x1fe   : > { %v3594_v62 = vmul.f32 %v6382_v6, %v8904_v16  ;;  %v8256_v10 = vld [vmem:[%s8638_s4] ss:$0 sm:$0xff]  ;;  %v4761_v6 = vor.u32 %v4759_v58, %v8197_v31  ;;  %v4371_v58 = vsel %vm1994_vm11, %v8188_v49, %v8232_v7  ;;  %v4648_v24 = vmul.f32 %v8267_v25, %v8904_v16 }
 0x1ff   : > { %5076 = vst.msk [vmem:[%s8195_s9 + $0x4] sm:$0xf] %vm510_vm1, %v5044_v19  ;;  %v5108_v30 = vunpack.c.l.bf16 %v5044_v19  ;;  %v4949_v54 = vadd.f32 %v4872_v4, %v4483_v51  ;;  %v800_v21 = vadd.f32 %v8256_v10, %v798_v1 }
 0x200   : > { %v8270_v31 = vpack.c.bf16 %v3594_v62, %v3593_v27  ;;  %v4647_v27 = vmul.f32 %v8223_v50, %v8903_v14 }
 0x201   : > { %v5140_v48 = vsel %vm1852_vm2, %v5108_v30, 0.0  ;;  %v5211_v4 = vmul.f32 %v5108_v30, %v5108_v30  ;;  %v4981_v19 = vadd.f32 %v4949_v54, %v3895_v60  ;;  %v4874_v51 = vpop.f32.mrf.mxu0  ;;  %v802_v30 = vmax.f32 %v800_v21, 0.0 }
 0x202   : > { %v5141_v59 = vadd.f32 %v5140_v48, %v5139_v56  ;;  %v4192_v55 = vpop.f32.mrf.mxu2  ;;  %v3823_v9 = vpop.f32.mrf.mxu1 }
 0x203   : > { %v5243_v1 = vsel %vm1852_vm2, %v5211_v4, 0.0  ;;  %v5013_v11 = vadd.f32 %v4981_v19, %v8905_v37  ;;  %v804_v29 = vpack.c.bf16 %v802_v30, %v802_v30  ;;  %v4378_v37 = vrot.slane %v4376_v0, 4  ;;  %v8907_v30 = vld [vmem:[#allocation3_spill] sm:$0xff] }
 0x204   : > { %v5244_v60 = vadd.f32 %v5243_v1, %v5242_v52  ;;  %v4484_v54 = vpop.f32.mrf.mxu3  ;;  %v8906_v52 = vld [vmem:[#allocation66_spill] sm:$0xff] }
 0x205   : > { %v5045_v56 = vpack.c.bf16 %v5013_v11, %v5013_v11  ;;  %v4485_v48 = vadd.f32 %v4484_v54, %v4192_v55  ;;  %5788 = vmatmul.msk.bf16.gmra.mxu1 %vm1852_vm2, %v3712_v38  ;;  %v3896_v21 = vadd.f32 %v3820_v36, %v8906_v52  ;;  %v4766_v11 = vsel %vm2566_vm12, %v4761_v6, %v8262_v28  ;;  %v8908_v54 = vld [vmem:[#allocation65_spill] sm:$0xff] }
 0x206   : > { %v3713_v38 = vshrl.u32 %v8199_v22, 16  ;;  %v810_v49 = vunpack.c.l.bf16 %v804_v29  ;;  %v4375_v22 = vrot.slane %v4373_v39, 3  ;;  %v6035_v39 = vunpack.c.h.bf16 %v8226_v17 }
 0x207   : > { %5077 = vst.msk [vmem:[%s8195_s9 + $0x8] sm:$0xf] %vm510_vm1, %v5045_v56  ;;  %v5109_v2 = vunpack.c.l.bf16 %v5045_v56  ;;  %v4950_v4 = vadd.f32 %v4874_v51, %v4485_v48  ;;  %5870 = vmatmul.msk.bf16.gmra.mxu2 %vm1852_vm2, %v5958_v53  ;;  %v3717_v53 = vshll.u32 %v8270_v31, 16  ;;  %v4017_v17 = vmul.f32 %v8267_v25, %v7574_v32 }
 0x208   : > { %v813_v14 = vmul.f32 %v810_v49, %v8907_v30  ;;  %v3715_v0 = vor.u32 %v3713_v38, %v8229_v46  ;;  %v8301_v49 = vor.u32 %v4378_v37, %v4375_v22  ;;  %v8910_v46 = vld [vmem:[#allocation67_spill] sm:$0xff] }
 0x209   : > { %v5142_v62 = vsel %vm1852_vm2, %v5109_v2, 0.0  ;;  %v5212_v19 = vmul.f32 %v5109_v2, %v5109_v2  ;;  %v4982_v55 = vadd.f32 %v4950_v4, %v3896_v21  ;;  %5886 = vmatmul.msk.bf16.gmra.mxu3 %vm1852_vm2, %v4371_v58  ;;  %v4877_v36 = vpop.f32.mrf.mxu0  ;;  %v8293_v58 = vpack.c.bf16 %v4648_v24, %v4647_v27 }
 0x20a   : > { %v5143_v51 = vadd.f32 %v5142_v62, %v5141_v59  ;;  %v4195_v6 = vpop.f32.mrf.mxu2  ;;  %v3825_v1 = vpop.f32.mrf.mxu1  ;;  %v8295_v2 = vunpack.c.h.bf16 %v6499_v23  ;;  %v815_v21 = vpack.c.bf16 %v813_v14, %v813_v14  ;;  %v8299_v4 = vrot.slane %v3717_v53, 1  ;;  %v8909_v62 = vld [vmem:[#allocation69_spill] sm:$0xff]  ;;  %v8911_v14 = vld [vmem:[#allocation70_spill] sm:$0xff] }
 0x20b   : > { %v5245_v16 = vsel %vm1852_vm2, %v5212_v19, 0.0  ;;  %v5014_v56 = vadd.f32 %v4982_v55, %v8908_v54  ;;  %v799_v23 = vmul.f32 %v8242_v35, %v6035_v39  ;;  %v4767_v24 = vshrl.u32 %v8221_v8, 16 }
 0x20c   : > { %v5246_v48 = vadd.f32 %v5245_v16, %v5244_v60  ;;  %v4487_v29 = vpop.f32.mrf.mxu3  ;;  %5903 = vmatmul.msk.bf16.gmra.mxu0 %vm1852_vm2, %v4766_v11  ;;  %v3897_v11 = vadd.f32 %v3823_v9, %v8909_v62  ;;  %v4771_v19 = vshll.u32 %v8293_v58, 16  ;;  %v4018_v38 = vmul.f32 %v8295_v2, %v8910_v46  ;;  %817 = vst.msk [vmem:[#allocation2 + $0x8c] sm:$0xf] %vm510_vm1, %v815_v21  ;;  %v8912_v16 = vld [vmem:[#allocation71_spill] sm:$0xff]  ;;  %v5959_v21 = vld [vmem:[#allocation2 + $0x6c] sm:$0xff] }
 0x20d   : > { %v5046_v59 = vpack.c.bf16 %v5014_v56, %v5014_v56  ;;  %v4488_v52 = vadd.f32 %v4487_v29, %v4195_v6  ;;  %v3720_v37 = vsel %vm2566_vm12, %v3715_v0, %v8299_v4  ;;  %v3595_v32 = vmul.f32 %v8223_v50, %v8911_v14  ;;  %v6500_v56 = vld [vmem:[#allocation2 + $0x80] sm:$0xff]  }
 0x20e   : > { %v3596_v54 = vmul.f32 %v8267_v25, %v8912_v16  ;;  %v8325_v62 = vrot.slane %v4771_v19, 1  ;;  %v4037_v0 = vpack.c.bf16 %v4018_v38, %v4017_v17  ;;  %v6390_v25 = vunpack.c.l.bf16 %v6500_v56 }
 0x20f   : > { %5078 = vst.msk [vmem:[%s8195_s9 + $0xc] sm:$0xf] %vm510_vm1, %v5046_v59  ;;  %v5110_v60 = vunpack.c.l.bf16 %v5046_v59  ;;  %v4951_v27 = vadd.f32 %v4877_v36, %v4488_v52  ;;  %v801_v36 = vadd.f32 %v8256_v10, %v799_v23  ;;  %v8913_v59 = vld [vmem:[#allocation68_spill] sm:$0xff]  ;;  %v4380_v23 = vsel %vm1994_vm11, %v8232_v7, %v8301_v49 }
 0x210   : > { %v8331_v46 = vpack.c.bf16 %v3596_v54, %v3595_v32  ;;  %v4382_v38 = vshrl.u32 %v4037_v0, 16 }
 0x211   : > { %v5144_v55 = vsel %vm1852_vm2, %v5110_v60, 0.0  ;;  %v5213_v53 = vmul.f32 %v5110_v60, %v5110_v60  ;;  %v4983_v6 = vadd.f32 %v4951_v27, %v3897_v11  ;;  %v4879_v9 = vpop.f32.mrf.mxu0  ;;  %v803_v10 = vmax.f32 %v801_v36, 0.0 }
 0x212   : > { %v5145_v35 = vadd.f32 %v5144_v55, %v5143_v51  ;;  %v4197_v22 = vpop.f32.mrf.mxu2  ;;  %v3828_v8 = vpop.f32.mrf.mxu1  ;;  %v4769_v60 = vor.u32 %v4767_v24, %v8262_v28  ;;  %v8914_v55 = vld [vmem:[#allocation73_spill] sm:$0xff] }
 0x213   : > { %v5247_v29 = vsel %vm1852_vm2, %v5213_v53, 0.0  ;;  %v5015_v52 = vadd.f32 %v4983_v6, %v8913_v59  ;;  %v805_v27 = vpack.c.bf16 %v803_v10, %v803_v10  ;;  %v3898_v28 = vadd.f32 %v3825_v1, %v8914_v55 }
 0x214   : > { %v5248_v51 = vadd.f32 %v5247_v29, %v5246_v48  ;;  %v4489_v39 = vpop.f32.mrf.mxu3  ;;  %v4774_v17 = vsel %vm2566_vm12, %v4769_v60, %v8325_v62  ;;  %v4385_v53 = vshll.u32 %v4037_v0, 16  ;;  %v4649_v6 = vmul.f32 %v8295_v2, %v8911_v14 }
 0x215   : > { %v5047_v11 = vpack.c.bf16 %v5015_v52, %v5015_v52  ;;  %v4490_v50 = vadd.f32 %v4489_v39, %v4197_v22  ;;  %5789 = vmatmul.msk.bf16.gmra.mxu1 %vm1852_vm2, %v3720_v37  ;;  %v811_v19 = vunpack.c.l.bf16 %v805_v27  ;;  %v4650_v1 = vmul.f32 %v6390_v25, %v8912_v16 }
 0x216   : > { %v3721_v29 = vshrl.u32 %v8270_v31, 16  ;;  %v3725_v59 = vshll.u32 %v8331_v46, 16  ;;  %v4384_v0 = vrot.slane %v4382_v38, 3  ;;  %v4387_v16 = vrot.slane %v4385_v53, 4 }
 0x217   : > { %5079 = vst.msk [vmem:[%s8195_s9 + $0x10] sm:$0xf] %vm510_vm1, %v5047_v11  ;;  %v5111_v48 = vunpack.c.l.bf16 %v5047_v11  ;;  %v4952_v24 = vadd.f32 %v4879_v9, %v4490_v50  ;;  %5871 = vmatmul.msk.bf16.gmra.mxu2 %vm1852_vm2, %v5959_v21  ;;  %v814_v52 = vmul.f32 %v811_v19, %v8907_v30  ;;  %v8915_v21 = vld [vmem:[#allocation72_spill] sm:$0xff]  ;;  %v8352_v31 = vpack.c.bf16 %v4650_v1, %v4649_v6  ;;  %v8917_v1 = vld [vmem:[#allocation74_spill] sm:$0xff] }
 0x218   : > { %v8355_v30 = vrot.slane %v3725_v59, 1 }
 0x219   : > { %v5146_v7 = vsel %vm1852_vm2, %v5111_v48, 0.0  ;;  %v5214_v36 = vmul.f32 %v5111_v48, %v5111_v48  ;;  %v4984_v22 = vadd.f32 %v4952_v24, %v3898_v28  ;;  %5887 = vmatmul.msk.bf16.gmra.mxu3 %vm1852_vm2, %v4380_v23  ;;  %v4882_v37 = vpop.f32.mrf.mxu0  ;;  %v816_v27 = vpack.c.bf16 %v814_v52, %v814_v52 }
 0x21a   : > { %v5147_v9 = vadd.f32 %v5146_v7, %v5145_v35  ;;  %v4200_v32 = vpop.f32.mrf.mxu2  ;;  %v3830_v54 = vpop.f32.mrf.mxu1  ;;  %v8350_v35 = vunpack.c.h.bf16 %v6500_v56  ;;  %v3723_v23 = vor.u32 %v3721_v29, %v8299_v4  ;;  %v8360_v28 = vor.u32 %v4387_v16, %v4384_v0  ;;  %v5960_v29 = vld [vmem:[#allocation2 + $0x74] sm:$0xff] }
 0x21b   : > { %v5249_v14 = vsel %vm1852_vm2, %v5214_v36, 0.0  ;;  %v5016_v10 = vadd.f32 %v4984_v22, %v8915_v21  ;;  %v4775_v56 = vshrl.u32 %v8293_v58, 16  ;;  %v4019_v24 = vmul.f32 %v6390_v25, %v7666_v57  ;;  %818 = vst.msk [vmem:[#allocation2 + $0x90] sm:$0xf] %vm510_vm1, %v816_v27  ;;  %v8916_v58 = vld [vmem:[#allocation75_spill] sm:$0xff] }
 0x21c   : > { %v5250_v39 = vadd.f32 %v5249_v14, %v5248_v51  ;;  %v4492_v60 = vpop.f32.mrf.mxu3  ;;  %5904 = vmatmul.msk.bf16.gmra.mxu0 %vm1852_vm2, %v4774_v17  ;;  %v3899_v51 = vadd.f32 %v3828_v8, %v7678_v15  ;;  %v4020_v19 = vmul.f32 %v8350_v35, %v7673_v45  ;;  %v4779_v6 = vshll.u32 %v8352_v31, 16  ;;  %v8369_v15 = vld [vmem:[#allocation2 + $0x88] sm:$0xff]  }
 0x21d   : > { %v5048_v11 = vpack.c.bf16 %v5016_v10, %v5016_v10  ;;  %v4493_v50 = vadd.f32 %v4492_v60, %v4200_v32  ;;  %v3728_v57 = vsel %vm2566_vm12, %v3723_v23, %v8355_v30  ;;  %v3597_v45 = vmul.f32 %v8295_v2, %v7694_v3 }
 0x21e   : > { %v3598_v22 = vmul.f32 %v6390_v25, %v8916_v58  ;;  %v4038_v14 = vpack.c.bf16 %v4020_v19, %v4019_v24  ;;  %v4777_v60 = vor.u32 %v4775_v56, %v8325_v62  ;;  %v8381_v2 = vrot.slane %v4779_v6, 1 }
 0x21f   : > { %5080 = vst.msk [vmem:[%s8195_s9 + $0x14] sm:$0xf] %vm510_vm1, %v5048_v11  ;;  %v5112_v48 = vunpack.c.l.bf16 %v5048_v11  ;;  %v4953_v55 = vadd.f32 %v4882_v37, %v4493_v50  ;;  %v4389_v25 = vsel %vm1994_vm11, %v8301_v49, %v8360_v28  ;;  %v3900_v16 = vadd.f32 %v3830_v54, %v7720_v47 }
 0x220   : > { %v8386_v0 = vpack.c.bf16 %v3598_v22, %v3597_v45  ;;  %v4391_v50 = vshrl.u32 %v4038_v14, 16  ;;  %v4394_v27 = vshll.u32 %v4038_v14, 16  ;;  %v4651_v62 = vmul.f32 %v8350_v35, %v7694_v3 }
 0x221   : > { %v5148_v4 = vsel %vm1852_vm2, %v5112_v48, 0.0  ;;  %v5215_v17 = vmul.f32 %v5112_v48, %v5112_v48  ;;  %v4985_v38 = vadd.f32 %v4953_v55, %v3899_v51  ;;  %v4884_v53 = vpop.f32.mrf.mxu0  ;;  %v4782_v47 = vsel %vm2566_vm12, %v4777_v60, %v8381_v2 }
 0x222   : > { %v5149_v8 = vadd.f32 %v5148_v4, %v5147_v9  ;;  %v4202_v7 = vpop.f32.mrf.mxu2  ;;  %v3833_v36 = vpop.f32.mrf.mxu1  ;;  %v6394_v9 = vunpack.c.l.bf16 %v8369_v15  ;;  %v3729_v19 = vshrl.u32 %v8331_v46, 16  ;;  %v3733_v4 = vshll.u32 %v8386_v0, 16 }
 0x223   : > { %v5251_v37 = vsel %vm1852_vm2, %v5215_v17, 0.0  ;;  %v5017_v32 = vadd.f32 %v4985_v38, %v8917_v1  ;;  %v8918_v17 = vld [vmem:[#allocation76_spill] sm:$0xff]  ;;  %v4396_v45 = vrot.slane %v4394_v27, 4  ;;  %v6335_v46 = vunpack.c.h.bf16 %v8369_v15 }
 0x224   : > { %v5252_v59 = vadd.f32 %v5251_v37, %v5250_v39  ;;  %v4494_v52 = vpop.f32.mrf.mxu3  ;;  %v4652_v23 = vmul.f32 %v6394_v9, %v8916_v58  ;;  %v3731_v37 = vor.u32 %v3729_v19, %v8355_v30  ;;  %v8408_v1 = vrot.slane %v3733_v4, 1 }
 0x225   : > { %v5049_v21 = vpack.c.bf16 %v5017_v32, %v5017_v32  ;;  %v4495_v10 = vadd.f32 %v4494_v52, %v4202_v7  ;;  %5790 = vmatmul.msk.bf16.gmra.mxu1 %vm1852_vm2, %v3728_v57  ;;  %v4393_v57 = vrot.slane %v4391_v50, 3  ;;  %v4588_v50 = vld [vmem:[#allocation2 + $0x90] sm:$0xf] }
 0x226   : > { %v8404_v58 = vpack.c.bf16 %v4652_v23, %v4651_v62  ;;  %v3736_v23 = vsel %vm2566_vm12, %v3731_v37, %v8408_v1  ;;  %v4621_v19 = vunpack.c.l.bf16 %v4588_v50 }
 0x227   : > { %5081 = vst.msk [vmem:[%s8195_s9 + $0x18] sm:$0xf] %vm510_vm1, %v5049_v21  ;;  %v5113_v39 = vunpack.c.l.bf16 %v5049_v21  ;;  %v4954_v11 = vadd.f32 %v4884_v53, %v4495_v10  ;;  %5872 = vmatmul.msk.bf16.gmra.mxu2 %vm1852_vm2, %v5960_v29  ;;  %v3534_v53 = vld [vmem:[#allocation2 + $0x88] sm:$0xf]  ;;  %v8413_v21 = vor.u32 %v4396_v45, %v4393_v57  ;;  %v4783_v10 = vshrl.u32 %v8352_v31, 16 }
 0x228   : > { %v3567_v32 = vunpack.c.l.bf16 %v3534_v53  ;;  %v4787_v60 = vshll.u32 %v8404_v58, 16  ;;  %v3599_v31 = vmul.f32 %v8350_v35, %v7758_v34  ;;  %v4653_v45 = vmul.f32 %v6335_v46, %v7758_v34 }
 0x229   : > { %v5150_v48 = vsel %vm1852_vm2, %v5113_v39, 0.0  ;;  %v5216_v49 = vmul.f32 %v5113_v39, %v5113_v39  ;;  %v4986_v51 = vadd.f32 %v4954_v11, %v3900_v16  ;;  %5888 = vmatmul.msk.bf16.gmra.mxu3 %vm1852_vm2, %v4389_v25  ;;  %v4887_v55 = vpop.f32.mrf.mxu0  ;;  %v4021_v25 = vmul.f32 %v6394_v9, %v7732_v63 }
 0x22a   : > { %v5151_v54 = vadd.f32 %v5150_v48, %v5149_v8  ;;  %v4205_v56 = vpop.f32.mrf.mxu2  ;;  %v3835_v24 = vpop.f32.mrf.mxu1  ;;  %v4022_v11 = vmul.f32 %v6335_v46, %v7736_v33  ;;  %v8920_v48 = vld [vmem:[#allocation79_spill] sm:$0xff]  ;;  %v8923_v46 = vld [vmem:[#allocation80_spill] sm:$0xff] }
 0x22b   : > { %v5253_v3 = vsel %vm1852_vm2, %v5216_v49, 0.0  ;;  %v5018_v38 = vadd.f32 %v4986_v51, %v8918_v17  ;;  %v3600_v63 = vmul.f32 %v3567_v32, %v8920_v48  ;;  %v8921_v49 = vld [vmem:[#allocation77_spill] sm:$0xff]  ;;  %v4398_v17 = vsel %vm1994_vm11, %v8360_v28, %v8413_v21 }
 0x22c   : > { %v5254_v6 = vadd.f32 %v5253_v3, %v5252_v59  ;;  %v4497_v7 = vpop.f32.mrf.mxu3  ;;  %5905 = vmatmul.msk.bf16.gmra.mxu0 %vm1852_vm2, %v4782_v47  ;;  %v8919_v59 = vld [vmem:[#allocation78_spill] sm:$0xff]  ;;  %v4039_v35 = vpack.c.bf16 %v4022_v11, %v4021_v25 }
 0x22d   : > { %v5050_v8 = vpack.c.bf16 %v5018_v38, %v5018_v38  ;;  %v4498_v22 = vadd.f32 %v4497_v7, %v4205_v56  ;;  %v3901_v52 = vadd.f32 %v3833_v36, %v8919_v59  ;;  %v8428_v56 = vrot.slane %v4787_v60, 1  ;;  %v3957_v59 = vld [vmem:[#allocation2 + $0x90] sm:$0xf] }
 0x22e   : > { %v8434_v38 = vpack.c.bf16 %v3600_v63, %v3599_v31  ;;  %v4403_v25 = vshll.u32 %v4039_v35, 16  ;;  %v3990_v50 = vunpack.c.l.bf16 %v3957_v59 }
 0x22f   : > { %5082 = vst.msk [vmem:[%s8195_s9 + $0x1c] sm:$0xf] %vm510_vm1, %v5050_v8  ;;  %v5114_v29 = vunpack.c.l.bf16 %v5050_v8  ;;  %v4955_v14 = vadd.f32 %v4887_v55, %v4498_v22  ;;  %v5961_v55 = vld [vmem:[#allocation2 + $0x7c] sm:$0xff]  ;;  %v4654_v8 = vmul.f32 %v4621_v19, %v8920_v48 }
 0x230   : > { %v3741_v60 = vshll.u32 %v8434_v38, 16  ;;  %v4405_v48 = vrot.slane %v4403_v25, 4 }
 0x231   : > { %v5152_v15 = vsel %vm1852_vm2, %v5114_v29, 0.0  ;;  %v5217_v30 = vmul.f32 %v5114_v29, %v5114_v29  ;;  %v4987_v39 = vadd.f32 %v4955_v14, %v3901_v52  ;;  %v4889_v16 = vpop.f32.mrf.mxu0  ;;  %v4400_v29 = vshrl.u32 %v4039_v35, 16 }
 0x232   : > { %v5153_v27 = vadd.f32 %v5152_v15, %v5151_v54  ;;  %v4207_v62 = vpop.f32.mrf.mxu2  ;;  %v3838_v36 = vpop.f32.mrf.mxu1  ;;  %v4785_v54 = vor.u32 %v4783_v10, %v8381_v2  ;;  %v3737_v10 = vshrl.u32 %v8386_v0, 16  ;;  %v8451_v11 = vpack.c.bf16 %v4654_v8, %v4653_v45 }
 0x233   : > { %v5255_v9 = vsel %vm1852_vm2, %v5217_v30, 0.0  ;;  %v5019_v51 = vadd.f32 %v4987_v39, %v8921_v49  ;;  %v3535_v30 = vld [vmem:[#allocation2 + $0x8c] sm:$0x1]  ;;  %v3743_v31 = vrot.slane %v3741_v60, 1  ;;  %v3903_v49 = vadd.f32 %v3838_v36, %v7806_v40 }
 0x234   : > { %v5256_v47 = vadd.f32 %v5255_v9, %v5254_v6  ;;  %v4499_v33 = vpop.f32.mrf.mxu3  ;;  %v8922_v6 = vld [vmem:[#allocation81_spill] sm:$0xff]  ;;  %v4790_v57 = vsel %vm2566_vm12, %v4785_v54, %v8428_v56  ;;  %v3739_v0 = vor.u32 %v3737_v10, %v8408_v1  ;;  %v3568_v63 = vunpack.c.l.bf16 %v3535_v30 }
 0x235   : > { %v5051_v4 = vpack.c.bf16 %v5019_v51, %v5019_v51  ;;  %v4500_v3 = vadd.f32 %v4499_v33, %v4207_v62  ;;  %5791 = vmatmul.msk.bf16.gmra.mxu1 %vm1852_vm2, %v3736_v23  ;;  %v3902_v7 = vadd.f32 %v3835_v24, %v8922_v6  ;;  %v4402_v23 = vrot.slane %v4400_v29, 3 }
 0x236   : > { %v4023_v33 = vmul.f32 %v3990_v50, %v6812_v41  ;;  %v3601_v40 = vmul.f32 %v3568_v63, %v7743_v42 }
 0x237   : > { %5083 = vst.msk [vmem:[%s8195_s9 + $0x20] sm:$0xf] %vm510_vm1, %v5051_v4  ;;  %v5115_v53 = vunpack.c.l.bf16 %v5051_v4  ;;  %v4956_v2 = vadd.f32 %v4889_v16, %v4500_v3  ;;  %5873 = vmatmul.msk.bf16.gmra.mxu2 %vm1852_vm2, %v5961_v55  ;;  %v4791_v55 = vshrl.u32 %v8404_v58, 16  ;;  %v8462_v6 = vor.u32 %v4405_v48, %v4402_v23  ;;  %v4589_v58 = vld [vmem:[#allocation2 + $0x94] sm:$0x1] }
 0x238   : > { %v3618_v59 = vpack.c.bf16 %v3601_v40, %v3601_v40 }
 0x239   : > { %v5154_v22 = vsel %vm1852_vm2, %v5115_v53, 0.0  ;;  %v5218_v28 = vmul.f32 %v5115_v53, %v5115_v53  ;;  %v4988_v37 = vadd.f32 %v4956_v2, %v3902_v7  ;;  %5889 = vmatmul.msk.bf16.gmra.mxu3 %vm1852_vm2, %v4398_v17  ;;  %v4892_v32 = vpop.f32.mrf.mxu0  ;;  %v3744_v53 = vsel %vm2566_vm12, %v3739_v0, %v3743_v31  ;;  %v5962_v7 = vld [vmem:[#allocation2 + $0x84] sm:$0xff] }
 0x23a   : > { %v5155_v24 = vadd.f32 %v5154_v22, %v5153_v27  ;;  %v4210_v52 = vpop.f32.mrf.mxu2  ;;  %v3840_v14 = vpop.f32.mrf.mxu1  ;;  %v4793_v45 = vor.u32 %v4791_v55, %v8428_v56  ;;  %v4040_v22 = vpack.c.bf16 %v4023_v33, %v4023_v33  ;;  %v4407_v29 = vsel %vm1994_vm11, %v8413_v21, %v8462_v6 }
 0x23b   : > { %v5257_v34 = vsel %vm1852_vm2, %v5218_v28, 0.0  ;;  %v5020_v15 = vadd.f32 %v4988_v37, %v8923_v46  ;;  %v4799_v33 = vshrl.u32 %v8451_v11, 16 }
 0x23c   : > { %v5258_v39 = vadd.f32 %v5257_v34, %v5256_v47  ;;  %v4502_v16 = vpop.f32.mrf.mxu3  ;;  %5906 = vmatmul.msk.bf16.gmra.mxu0 %vm1852_vm2, %v4790_v57  ;;  %v4795_v47 = vshll.u32 %v8451_v11, 16  ;;  %v4409_v10 = vshrl.u32 %v4040_v22, 16 }
 0x23d   : > { %v5052_v27 = vpack.c.bf16 %v5020_v15, %v5020_v15  ;;  %v4503_v62 = vadd.f32 %v4502_v16, %v4210_v52  ;;  %v4412_v16 = vshll.u32 %v4040_v22, 16 }
 0x23e   : > { %v4797_v8 = vrot.slane %v4795_v47, 1 }
 0x23f   : > { %5084 = vst.msk [vmem:[%s8195_s9 + $0x24] sm:$0xf] %vm510_vm1, %v5052_v27  ;;  %v5116_v9 = vunpack.c.l.bf16 %v5052_v27  ;;  %v4957_v51 = vadd.f32 %v4892_v32, %v4503_v62  ;;  %v4622_v32 = vunpack.c.l.bf16 %v4589_v58 }
 0x240   : > { %v4798_v56 = vsel %vm2566_vm12, %v4793_v45, %v4797_v8 }
 0x241   : > { %v5156_v54 = vsel %vm1852_vm2, %v5116_v9, 0.0  ;;  %v5219_v19 = vmul.f32 %v5116_v9, %v5116_v9  ;;  %v4989_v4 = vadd.f32 %v4957_v51, %v3903_v49  ;;  %v4894_v1 = vpop.f32.mrf.mxu0  ;;  %v4655_v21 = vmul.f32 %v4622_v32, %v7743_v42 }
 0x242   : > { %v5157_v3 = vadd.f32 %v5156_v54, %v5155_v24  ;;  %v4212_v35 = vpop.f32.mrf.mxu2  ;;  %v3843_v17 = vpop.f32.mrf.mxu1  ;;  %v3904_v24 = vadd.f32 %v3840_v14, %v7830_v12  ;;  %v3745_v12 = vshrl.u32 %v8434_v38, 16  ;;  %v3749_v14 = vshll.u32 %v3618_v59, 16 }
 0x243   : > { %v5259_v36 = vsel %vm1852_vm2, %v5219_v19, 0.0  ;;  %v5021_v41 = vadd.f32 %v4989_v4, %v7799_v44  ;;  %v4672_v63 = vpack.c.bf16 %v4655_v21, %v4655_v21  ;;  %v4411_v49 = vrot.slane %v4409_v10, 3 }
 0x244   : > { %v5260_v2 = vadd.f32 %v5259_v36, %v5258_v39  ;;  %v4504_v57 = vpop.f32.mrf.mxu3  ;;  %v3747_v42 = vor.u32 %v3745_v12, %v3743_v31  ;;  %v3751_v9 = vrot.slane %v3749_v14, 1  ;;  %v4414_v51 = vrot.slane %v4412_v16, 4 }
 0x245   : > { %v5053_v28 = vpack.c.bf16 %v5021_v41, %v5021_v41  ;;  %v4505_v37 = vadd.f32 %v4504_v57, %v4212_v35  ;;  %5792 = vmatmul.msk.bf16.gmra.mxu1 %vm1852_vm2, %v3744_v53  ;;  %v3905_v55 = vadd.f32 %v3843_v17, %v7862_v18  ;;  %v5963_v17 = vld [vmem:[#allocation2 + $0x8c] sm:$0xff] }
 0x246   : > { %v3752_v53 = vsel %vm2566_vm12, %v3747_v42, %v3751_v9  ;;  %v4415_v40 = vor.u32 %v4414_v51, %v4411_v49 }
 0x247   : > { %5085 = vst.msk [vmem:[%s8195_s9 + $0x28] sm:$0xf] %vm510_vm1, %v5053_v28  ;;  %v5117_v44 = vunpack.c.l.bf16 %v5053_v28  ;;  %v4958_v52 = vadd.f32 %v4894_v1, %v4505_v37  ;;  %5874 = vmatmul.msk.bf16.gmra.mxu2 %vm1852_vm2, %v5962_v7  ;;  %v4803_v1 = vshll.u32 %v4672_v63, 16  ;;  %v8924_v63 = vld [vmem:[#allocation5_spill] sm:$0xff] }
 0x248   : > { %v4416_v45 = vsel %vm1994_vm11, %v8462_v6, %v4415_v40 }
 0x249   : > { %v5158_v60 = vsel %vm1852_vm2, %v5117_v44, 0.0  ;;  %v5220_v25 = vmul.f32 %v5117_v44, %v5117_v44  ;;  %v4990_v34 = vadd.f32 %v4958_v52, %v3904_v24  ;;  %5890 = vmatmul.msk.bf16.gmra.mxu3 %vm1852_vm2, %v4407_v29  ;;  %v4897_v46 = vpop.f32.mrf.mxu0  ;;  %v4805_v57 = vrot.slane %v4803_v1, 1 }
 0x24a   : > { %v5159_v15 = vadd.f32 %v5158_v60, %v5157_v3  ;;  %v4215_v30 = vpop.f32.mrf.mxu2  ;;  %v3845_v39 = vpop.f32.mrf.mxu1 }
 0x24b   : > { %v5261_v50 = vsel %vm1852_vm2, %v5220_v25, 0.0  ;;  %v5022_v27 = vadd.f32 %v4990_v34, %v7826_v43  ;;  %v3906_v28 = vadd.f32 %v3845_v39, %v7875_v20 }
 0x24c   : > { %v5262_v62 = vadd.f32 %v5261_v50, %v5260_v2  ;;  %v4507_v23 = vpop.f32.mrf.mxu3  ;;  %5907 = vmatmul.msk.bf16.gmra.mxu0 %vm1852_vm2, %v4798_v56  ;;  %v4801_v2 = vor.u32 %v4799_v33, %v4797_v8 }
 0x24d   : > { %v5054_v0 = vpack.c.bf16 %v5022_v27, %v5022_v27  ;;  %v4508_v48 = vadd.f32 %v4507_v23, %v4215_v30 }
 0x24e   : > { %v4806_v59 = vsel %vm2566_vm12, %v4801_v2, %v4805_v57 }
 0x24f   : > { %5086 = vst.msk [vmem:[%s8195_s9 + $0x2c] sm:$0xf] %vm510_vm1, %v5054_v0  ;;  %v5118_v38 = vunpack.c.l.bf16 %v5054_v0  ;;  %v4959_v47 = vadd.f32 %v4897_v46, %v4508_v48 }
 0x251   : > { %v5160_v43 = vsel %vm1852_vm2, %v5118_v38, 0.0  ;;  %v5221_v54 = vmul.f32 %v5118_v38, %v5118_v38  ;;  %v4991_v19 = vadd.f32 %v4959_v47, %v3905_v55  ;;  %v4899_v4 = vpop.f32.mrf.mxu0 }
 0x252   : > { %v5161_v3 = vadd.f32 %v5160_v43, %v5159_v15  ;;  %v4217_v31 = vpop.f32.mrf.mxu2  ;;  %v3848_v35 = vpop.f32.mrf.mxu1 }
 0x253   : > { %v5263_v58 = vsel %vm1852_vm2, %v5221_v54, 0.0  ;;  %v5023_v18 = vadd.f32 %v4991_v19, %v7858_v13  ;;  %v3907_v46 = vadd.f32 %v3848_v35, %v7886_v61  ;;  %v8925_v54 = vld [vmem:[#allocation4_spill] sm:$0xff] }
 0x254   : > { %v5264_v36 = vadd.f32 %v5263_v58, %v5262_v62  ;;  %v4509_v11 = vpop.f32.mrf.mxu3 }
 0x255   : > { %v5055_v41 = vpack.c.bf16 %v5023_v18, %v5023_v18  ;;  %v4510_v7 = vadd.f32 %v4509_v11, %v4217_v31  ;;  %5793 = vmatmul.msk.bf16.gmra.mxu1 %vm1852_vm2, %v3752_v53  ;;  %v8926_v53 = vld [vmem:[#allocation82_spill] sm:$0xff] }
 0x257   : > { %5087 = vst.msk [vmem:[%s8195_s9 + $0x30] sm:$0xf] %vm510_vm1, %v5055_v41  ;;  %v5119_v22 = vunpack.c.l.bf16 %v5055_v41  ;;  %v4960_v37 = vadd.f32 %v4899_v4, %v4510_v7  ;;  %5875 = vmatmul.msk.bf16.gmra.mxu2 %vm1852_vm2, %v5963_v17 }
 0x259   : > { %v5162_v13 = vsel %vm1852_vm2, %v5119_v22, 0.0  ;;  %v5222_v32 = vmul.f32 %v5119_v22, %v5119_v22  ;;  %v4992_v29 = vadd.f32 %v4960_v37, %v3906_v28  ;;  %5891 = vmatmul.msk.bf16.gmra.mxu3 %vm1852_vm2, %v4416_v45  ;;  %v4902_v8 = vpop.f32.mrf.mxu0  ;;  %v8927_v45 = vld [vmem:[#allocation22_spill] sm:$0xff] }
 0x25a   : > { %v5163_v44 = vadd.f32 %v5162_v13, %v5161_v3  ;;  %v4220_v6 = vpop.f32.mrf.mxu2  ;;  %v3850_v24 = vpop.f32.mrf.mxu1 }
 0x25b   : > { %v5265_v52 = vsel %vm1852_vm2, %v5222_v32, 0.0  ;;  %v5024_v20 = vadd.f32 %v4992_v29, %v7872_v5  ;;  %v3908_v42 = vadd.f32 %v3850_v24, %v8924_v63 }
 0x25c   : > { %v5266_v56 = vadd.f32 %v5265_v52, %v5264_v36  ;;  %v4512_v10 = vpop.f32.mrf.mxu3  ;;  %5908 = vmatmul.msk.bf16.gmra.mxu0 %vm1852_vm2, %v4806_v59 }
 0x25d   : > { %v5056_v60 = vpack.c.bf16 %v5024_v20, %v5024_v20  ;;  %v4513_v25 = vadd.f32 %v4512_v10, %v4220_v6 }
 0x25f   : > { %5088 = vst.msk [vmem:[%s8195_s9 + $0x34] sm:$0xf] %vm510_vm1, %v5056_v60  ;;  %v5120_v34 = vunpack.c.l.bf16 %v5056_v60  ;;  %v4961_v21 = vadd.f32 %v4902_v8, %v4513_v25  ;;  %v8928_v8 = vld [vmem:[#allocation7_spill] sm:$0xff] }
 0x261   : > { %v5164_v15 = vsel %vm1852_vm2, %v5120_v34, 0.0  ;;  %v5223_v30 = vmul.f32 %v5120_v34, %v5120_v34  ;;  %v4993_v39 = vadd.f32 %v4961_v21, %v3907_v46  ;;  %v4904_v12 = vpop.f32.mrf.mxu0  ;;  %v8929_v34 = vld [vmem:[#allocation6_spill] sm:$0xff] }
 0x262   : > { %v5165_v14 = vadd.f32 %v5164_v15, %v5163_v44  ;;  %v4222_v5 = vpop.f32.mrf.mxu2  ;;  %v3853_v16 = vpop.f32.mrf.mxu1 }
 0x263   : > { %v5267_v50 = vsel %vm1852_vm2, %v5223_v30, 0.0  ;;  %v5025_v27 = vadd.f32 %v4993_v39, %v7883_v26  ;;  %v3909_v40 = vadd.f32 %v3853_v16, %v8926_v53 }
 0x264   : > { %v5268_v62 = vadd.f32 %v5267_v50, %v5266_v56  ;;  %v4514_v23 = vpop.f32.mrf.mxu3 }
 0x265   : > { %v5057_v0 = vpack.c.bf16 %v5025_v27, %v5025_v27  ;;  %v4515_v48 = vadd.f32 %v4514_v23, %v4222_v5 }
 0x267   : > { %5089 = vst.msk [vmem:[%s8195_s9 + $0x38] sm:$0xf] %vm510_vm1, %v5057_v0  ;;  %v5121_v61 = vunpack.c.l.bf16 %v5057_v0  ;;  %v4962_v9 = vadd.f32 %v4904_v12, %v4515_v48 }
 0x269   : > { %v5166_v49 = vsel %vm1852_vm2, %v5121_v61, 0.0  ;;  %v5224_v51 = vmul.f32 %v5121_v61, %v5121_v61  ;;  %v4994_v38 = vadd.f32 %v4962_v9, %v3908_v42  ;;  %v4907_v55 = vpop.f32.mrf.mxu0  ;;  %v8931_v42 = vld [vmem:[#allocation28_spill] sm:$0xff] }
 0x26a   : > { %v5167_v47 = vadd.f32 %v5166_v49, %v5165_v14  ;;  %v4225_v33 = vpop.f32.mrf.mxu2  ;;  %v3855_v43 = vpop.f32.mrf.mxu1  ;;  %v8930_v14 = vld [vmem:[#allocation8_spill] sm:$0xff] }
 0x26b   : > { %v5269_v26 = vsel %vm1852_vm2, %v5224_v51, 0.0  ;;  %v5026_v19 = vadd.f32 %v4994_v38, %v8925_v54  ;;  %v3910_v59 = vadd.f32 %v3855_v43, %v8928_v8 }
 0x26c   : > { %v5270_v4 = vadd.f32 %v5269_v26, %v5268_v62  ;;  %v4517_v1 = vpop.f32.mrf.mxu3 }
 0x26d   : > { %v5058_v3 = vpack.c.bf16 %v5026_v19, %v5026_v19  ;;  %v4518_v31 = vadd.f32 %v4517_v1, %v4225_v33  ;;  %v8932_v33 = vld [vmem:[#allocation30_spill] sm:$0xff] }
 0x26f   : > { %5090 = vst.msk [vmem:[%s8195_s9 + $0x3c] sm:$0xf] %vm510_vm1, %v5058_v3  ;;  %v5122_v35 = vunpack.c.l.bf16 %v5058_v3  ;;  %v4963_v58 = vadd.f32 %v4907_v55, %v4518_v31 }
 0x271   : > { %v5168_v18 = vsel %vm1852_vm2, %v5122_v35, 0.0  ;;  %v5225_v17 = vmul.f32 %v5122_v35, %v5122_v35  ;;  %v4995_v36 = vadd.f32 %v4963_v58, %v3909_v40  ;;  %v4909_v11 = vpop.f32.mrf.mxu0  ;;  %v8933_v40 = vld [vmem:[#allocation9_spill] sm:$0xff] }
 0x272   : > { %v5169_v41 = vadd.f32 %v5168_v18, %v5167_v47  ;;  %v4227_v7 = vpop.f32.mrf.mxu2  ;;  %v3858_v2 = vpop.f32.mrf.mxu1 }
 0x273   : > { %v5271_v57 = vsel %vm1852_vm2, %v5225_v17, 0.0  ;;  %v5027_v22 = vadd.f32 %v4995_v36, %v8927_v45  ;;  %v3911_v5 = vadd.f32 %v3858_v2, %v8930_v14 }
 0x274   : > { %v5272_v28 = vadd.f32 %v5271_v57, %v5270_v4  ;;  %v4519_v37 = vpop.f32.mrf.mxu3 }
 0x275   : > { %v5059_v13 = vpack.c.bf16 %v5027_v22, %v5027_v22  ;;  %v4520_v32 = vadd.f32 %v4519_v37, %v4227_v7  ;;  %v8934_v7 = vld [vmem:[#allocation12_spill] sm:$0xff] }
 0x277   : > { %5091 = vst.msk [vmem:[%s8195_s9 + $0x40] sm:$0xf] %vm510_vm1, %v5059_v13  ;;  %v5123_v29 = vunpack.c.l.bf16 %v5059_v13  ;;  %v4964_v44 = vadd.f32 %v4909_v11, %v4520_v32 }
 0x279   : > { %v5170_v6 = vsel %vm1852_vm2, %v5123_v29, 0.0  ;;  %v5226_v24 = vmul.f32 %v5123_v29, %v5123_v29  ;;  %v4996_v52 = vadd.f32 %v4964_v44, %v3910_v59  ;;  %v4912_v20 = vpop.f32.mrf.mxu0  ;;  %v8935_v59 = vld [vmem:[#allocation36_spill] sm:$0xff] }
 0x27a   : > { %v5171_v56 = vadd.f32 %v5170_v6, %v5169_v41  ;;  %v4230_v10 = vpop.f32.mrf.mxu2  ;;  %v3860_v60 = vpop.f32.mrf.mxu1 }
 0x27b   : > { %v5273_v25 = vsel %vm1852_vm2, %v5226_v24, 0.0  ;;  %v5028_v46 = vadd.f32 %v4996_v52, %v8929_v34  ;;  %v3912_v43 = vadd.f32 %v3860_v60, %v8932_v33 }
 0x27c   : > { %v5274_v21 = vadd.f32 %v5273_v25, %v5272_v28  ;;  %v4522_v15 = vpop.f32.mrf.mxu3 }
 0x27d   : > { %v5060_v30 = vpack.c.bf16 %v5028_v46, %v5028_v46  ;;  %v4523_v39 = vadd.f32 %v4522_v15, %v4230_v10  ;;  %v8936_v10 = vld [vmem:[#allocation10_spill] sm:$0xff] }
 0x27f   : > { %5092 = vst.msk [vmem:[%s8195_s9 + $0x44] sm:$0xf] %vm510_vm1, %v5060_v30  ;;  %v5124_v12 = vunpack.c.l.bf16 %v5060_v30  ;;  %v4965_v16 = vadd.f32 %v4912_v20, %v4523_v39 }
 0x281   : > { %v5172_v50 = vsel %vm1852_vm2, %v5124_v12, 0.0  ;;  %v5227_v27 = vmul.f32 %v5124_v12, %v5124_v12  ;;  %v4997_v62 = vadd.f32 %v4965_v16, %v3911_v5  ;;  %v4914_v23 = vpop.f32.mrf.mxu0  ;;  %v8937_v5 = vld [vmem:[#allocation13_spill] sm:$0xff] }
 0x282   : > { %v5173_v0 = vadd.f32 %v5172_v50, %v5171_v56  ;;  %v4232_v48 = vpop.f32.mrf.mxu2  ;;  %v3863_v61 = vpop.f32.mrf.mxu1 }
 0x283   : > { %v5275_v63 = vsel %vm1852_vm2, %v5227_v27, 0.0  ;;  %v5029_v9 = vadd.f32 %v4997_v62, %v8931_v42  ;;  %v3913_v2 = vadd.f32 %v3863_v61, %v8934_v7 }
 0x284   : > { %v5276_v49 = vadd.f32 %v5275_v63, %v5274_v21  ;;  %v4524_v51 = vpop.f32.mrf.mxu3 }
 0x285   : > { %v5061_v38 = vpack.c.bf16 %v5029_v9, %v5029_v9  ;;  %v4525_v55 = vadd.f32 %v4524_v51, %v4232_v48  ;;  %v8938_v48 = vld [vmem:[#allocation38_spill] sm:$0xff] }
 0x287   : > { %5093 = vst.msk [vmem:[%s8195_s9 + $0x48] sm:$0xf] %vm510_vm1, %v5061_v38  ;;  %v5125_v47 = vunpack.c.l.bf16 %v5061_v38  ;;  %v4966_v26 = vadd.f32 %v4914_v23, %v4525_v55 }
 0x289   : > { %v5174_v54 = vsel %vm1852_vm2, %v5125_v47, 0.0  ;;  %v5228_v19 = vmul.f32 %v5125_v47, %v5125_v47  ;;  %v4998_v4 = vadd.f32 %v4966_v26, %v3912_v43  ;;  %v4917_v1 = vpop.f32.mrf.mxu0  ;;  %v8939_v43 = vld [vmem:[#allocation11_spill] sm:$0xff] }
 0x28a   : > { %v5175_v3 = vadd.f32 %v5174_v54, %v5173_v0  ;;  %v4235_v31 = vpop.f32.mrf.mxu2  ;;  %v3865_v35 = vpop.f32.mrf.mxu1 }
 0x28b   : > { %v5277_v53 = vsel %vm1852_vm2, %v5228_v19, 0.0  ;;  %v5030_v58 = vadd.f32 %v4998_v4, %v8933_v40  ;;  %v3914_v60 = vadd.f32 %v3865_v35, %v8936_v10 }
 0x28c   : > { %v5278_v18 = vadd.f32 %v5277_v53, %v5276_v49  ;;  %v4527_v17 = vpop.f32.mrf.mxu3 }
 0x28d   : > { %v5062_v36 = vpack.c.bf16 %v5030_v58, %v5030_v58  ;;  %v4528_v11 = vadd.f32 %v4527_v17, %v4235_v31  ;;  %v8940_v31 = vld [vmem:[#allocation15_spill] sm:$0xff] }
 0x28f   : > { %5094 = vst.msk [vmem:[%s8195_s9 + $0x4c] sm:$0xf] %vm510_vm1, %v5062_v36  ;;  %v5126_v41 = vunpack.c.l.bf16 %v5062_v36  ;;  %v4967_v57 = vadd.f32 %v4917_v1, %v4528_v11 }
 0x291   : > { %v5176_v45 = vsel %vm1852_vm2, %v5126_v41, 0.0  ;;  %v5229_v22 = vmul.f32 %v5126_v41, %v5126_v41  ;;  %v4999_v28 = vadd.f32 %v4967_v57, %v3913_v2  ;;  %v4919_v37 = vpop.f32.mrf.mxu0  ;;  %v8941_v2 = vld [vmem:[#allocation14_spill] sm:$0xff] }
 0x292   : > { %v5177_v13 = vadd.f32 %v5176_v45, %v5175_v3  ;;  %v4237_v32 = vpop.f32.mrf.mxu2  ;;  %v3868_v29 = vpop.f32.mrf.mxu1 }
 0x293   : > { %v5279_v8 = vsel %vm1852_vm2, %v5229_v22, 0.0  ;;  %v5031_v44 = vadd.f32 %v4999_v28, %v8935_v59  ;;  %v3915_v61 = vadd.f32 %v3868_v29, %v8938_v48  ;;  %v8945_v48 = vld [vmem:[#allocation17_spill] sm:$0xff] }
 0x294   : > { %v5280_v6 = vadd.f32 %v5279_v8, %v5278_v18  ;;  %v4529_v24 = vpop.f32.mrf.mxu3 }
 0x295   : > { %v5063_v52 = vpack.c.bf16 %v5031_v44, %v5031_v44  ;;  %v4530_v20 = vadd.f32 %v4529_v24, %v4237_v32  ;;  %v8942_v32 = vld [vmem:[#allocation16_spill] sm:$0xff] }
 0x297   : > { %5095 = vst.msk [vmem:[%s8195_s9 + $0x50] sm:$0xf] %vm510_vm1, %v5063_v52  ;;  %v5127_v56 = vunpack.c.l.bf16 %v5063_v52  ;;  %v4968_v25 = vadd.f32 %v4919_v37, %v4530_v20 }
 0x299   : > { %v5178_v34 = vsel %vm1852_vm2, %v5127_v56, 0.0  ;;  %v5230_v46 = vmul.f32 %v5127_v56, %v5127_v56  ;;  %v5000_v21 = vadd.f32 %v4968_v25, %v3914_v60  ;;  %v4922_v15 = vpop.f32.mrf.mxu0  ;;  %v8943_v60 = vld [vmem:[#allocation44_spill] sm:$0xff] }
 0x29a   : > { %v5179_v30 = vadd.f32 %v5178_v34, %v5177_v13  ;;  %v4240_v39 = vpop.f32.mrf.mxu2  ;;  %v3870_v12 = vpop.f32.mrf.mxu1 }
 0x29b   : > { %v5281_v14 = vsel %vm1852_vm2, %v5230_v46, 0.0  ;;  %v5032_v16 = vadd.f32 %v5000_v21, %v8937_v5  ;;  %v3916_v35 = vadd.f32 %v3870_v12, %v8940_v31  ;;  %v8947_v31 = vld [vmem:[#allocation52_spill] sm:$0xff] }
 0x29c   : > { %v5282_v50 = vadd.f32 %v5281_v14, %v5280_v6  ;;  %v4532_v27 = vpop.f32.mrf.mxu3 }
 0x29d   : > { %v5064_v62 = vpack.c.bf16 %v5032_v16, %v5032_v16  ;;  %v4533_v23 = vadd.f32 %v4532_v27, %v4240_v39  ;;  %v8944_v39 = vld [vmem:[#allocation46_spill] sm:$0xff] }
 0x29f   : > { %5096 = vst.msk [vmem:[%s8195_s9 + $0x54] sm:$0xf] %vm510_vm1, %v5064_v62  ;;  %v5128_v0 = vunpack.c.l.bf16 %v5064_v62  ;;  %v4969_v63 = vadd.f32 %v4922_v15, %v4533_v23 }
 0x2a1   : > { %v5180_v42 = vsel %vm1852_vm2, %v5128_v0, 0.0  ;;  %v5231_v9 = vmul.f32 %v5128_v0, %v5128_v0  ;;  %v5001_v49 = vadd.f32 %v4969_v63, %v3915_v61  ;;  %v4924_v51 = vpop.f32.mrf.mxu0 }
 0x2a2   : > { %v5181_v38 = vadd.f32 %v5180_v42, %v5179_v30  ;;  %v4242_v55 = vpop.f32.mrf.mxu2  ;;  %v3873_v47 = vpop.f32.mrf.mxu1 }
 0x2a3   : > { %v5283_v33 = vsel %vm1852_vm2, %v5231_v9, 0.0  ;;  %v5033_v26 = vadd.f32 %v5001_v49, %v8939_v43  ;;  %v3917_v29 = vadd.f32 %v3873_v47, %v8942_v32  ;;  %v8949_v32 = vld [vmem:[#allocation21_spill] sm:$0xff] }
 0x2a4   : > { %v5284_v54 = vadd.f32 %v5283_v33, %v5282_v50  ;;  %v4534_v19 = vpop.f32.mrf.mxu3 }
 0x2a5   : > { %v5065_v4 = vpack.c.bf16 %v5033_v26, %v5033_v26  ;;  %v4535_v1 = vadd.f32 %v4534_v19, %v4242_v55  ;;  %v8946_v55 = vld [vmem:[#allocation20_spill] sm:$0xff] }
 0x2a7   : > { %5097 = vst.msk [vmem:[%s8195_s9 + $0x58] sm:$0xf] %vm510_vm1, %v5065_v4  ;;  %v5129_v3 = vunpack.c.l.bf16 %v5065_v4  ;;  %v4970_v53 = vadd.f32 %v4924_v51, %v4535_v1 }
 0x2a9   : > { %v5182_v40 = vsel %vm1852_vm2, %v5129_v3, 0.0  ;;  %v5232_v58 = vmul.f32 %v5129_v3, %v5129_v3  ;;  %v5002_v18 = vadd.f32 %v4970_v53, %v3916_v35  ;;  %v4927_v17 = vpop.f32.mrf.mxu0 }
 0x2aa   : > { %v5183_v36 = vadd.f32 %v5182_v40, %v5181_v38  ;;  %v4245_v11 = vpop.f32.mrf.mxu2  ;;  %v3875_v41 = vpop.f32.mrf.mxu1 }
 0x2ab   : > { %v5285_v7 = vsel %vm1852_vm2, %v5232_v58, 0.0  ;;  %v5034_v57 = vadd.f32 %v5002_v18, %v8941_v2  ;;  %v3918_v12 = vadd.f32 %v3875_v41, %v8944_v39  ;;  %v8951_v39 = vld [vmem:[#allocation19_spill] sm:$0xff] }
 0x2ac   : > { %v5286_v45 = vadd.f32 %v5285_v7, %v5284_v54  ;;  %v4537_v22 = vpop.f32.mrf.mxu3 }
 0x2ad   : > { %v5066_v28 = vpack.c.bf16 %v5034_v57, %v5034_v57  ;;  %v4538_v37 = vadd.f32 %v4537_v22, %v4245_v11  ;;  %v8948_v11 = vld [vmem:[#allocation18_spill] sm:$0xff] }
 0x2af   : > { %5098 = vst.msk [vmem:[%s8195_s9 + $0x5c] sm:$0xf] %vm510_vm1, %v5066_v28  ;;  %v5130_v13 = vunpack.c.l.bf16 %v5066_v28  ;;  %v4971_v8 = vadd.f32 %v4927_v17, %v4538_v37 }
 0x2b1   : > { %v5184_v59 = vsel %vm1852_vm2, %v5130_v13, 0.0  ;;  %v5233_v44 = vmul.f32 %v5130_v13, %v5130_v13  ;;  %v5003_v6 = vadd.f32 %v4971_v8, %v3917_v29  ;;  %v4929_v24 = vpop.f32.mrf.mxu0 }
 0x2b2   : > { %v5185_v52 = vadd.f32 %v5184_v59, %v5183_v36  ;;  %v4247_v20 = vpop.f32.mrf.mxu2  ;;  %v3878_v56 = vpop.f32.mrf.mxu1 }
 0x2b3   : > { %v5287_v10 = vsel %vm1852_vm2, %v5233_v44, 0.0  ;;  %v5035_v25 = vadd.f32 %v5003_v6, %v8943_v60  ;;  %v3919_v47 = vadd.f32 %v3878_v56, %v8946_v55 }
 0x2b4   : > { %v5288_v34 = vadd.f32 %v5287_v10, %v5286_v45  ;;  %v4539_v46 = vpop.f32.mrf.mxu3 }
 0x2b5   : > { %v5067_v21 = vpack.c.bf16 %v5035_v25, %v5035_v25  ;;  %v4540_v15 = vadd.f32 %v4539_v46, %v4247_v20 }
 0x2b7   : > { %5099 = vst.msk [vmem:[%s8195_s9 + $0x60] sm:$0xf] %vm510_vm1, %v5067_v21  ;;  %v5131_v30 = vunpack.c.l.bf16 %v5067_v21  ;;  %v4972_v14 = vadd.f32 %v4929_v24, %v4540_v15 }
 0x2b9   : > { %v5186_v5 = vsel %vm1852_vm2, %v5131_v30, 0.0  ;;  %v5234_v16 = vmul.f32 %v5131_v30, %v5131_v30  ;;  %v5004_v50 = vadd.f32 %v4972_v14, %v3918_v12  ;;  %v4932_v27 = vpop.f32.mrf.mxu0 }
 0x2ba   : > { %v5187_v62 = vadd.f32 %v5186_v5, %v5185_v52  ;;  %v4250_v23 = vpop.f32.mrf.mxu2  ;;  %v3880_v9 = vpop.f32.mrf.mxu1  ;;  %v8950_v52 = vld [vmem:[#allocation25_spill] sm:$0xff] }
 0x2bb   : > { %v5289_v0 = vsel %vm1852_vm2, %v5234_v16, 0.0  ;;  %v5036_v61 = vadd.f32 %v5004_v50, %v8945_v48  ;;  %v3920_v41 = vadd.f32 %v3880_v9, %v8948_v11 }
 0x2bc   : > { %v5290_v63 = vadd.f32 %v5289_v0, %v5288_v34  ;;  %v4542_v42 = vpop.f32.mrf.mxu3 }
 0x2bd   : > { %v5068_v49 = vpack.c.bf16 %v5036_v61, %v5036_v61  ;;  %v4543_v51 = vadd.f32 %v4542_v42, %v4250_v23 }
 0x2bf   : > { %5100 = vst.msk [vmem:[%s8195_s9 + $0x64] sm:$0xf] %vm510_vm1, %v5068_v49  ;;  %v5132_v38 = vunpack.c.l.bf16 %v5068_v49  ;;  %v4973_v33 = vadd.f32 %v4932_v27, %v4543_v51 }
 0x2c1   : > { %v5188_v43 = vsel %vm1852_vm2, %v5132_v38, 0.0  ;;  %v5235_v26 = vmul.f32 %v5132_v38, %v5132_v38  ;;  %v5005_v54 = vadd.f32 %v4973_v33, %v3919_v47  ;;  %v4934_v19 = vpop.f32.mrf.mxu0  ;;  %v8953_v38 = vld [vmem:[#allocation23_spill] sm:$0xff] }
 0x2c2   : > { %v5189_v4 = vadd.f32 %v5188_v43, %v5187_v62  ;;  %v4252_v1 = vpop.f32.mrf.mxu2  ;;  %v3883_v17 = vpop.f32.mrf.mxu1  ;;  %v8952_v62 = vld [vmem:[#allocation24_spill] sm:$0xff] }
 0x2c3   : > { %v5291_v3 = vsel %vm1852_vm2, %v5235_v26, 0.0  ;;  %v5037_v35 = vadd.f32 %v5005_v54, %v8947_v31  ;;  %v3921_v20 = vadd.f32 %v3883_v17, %v8950_v52  ;;  %v8955_v17 = vld [vmem:[#allocation29_spill] sm:$0xff] }
 0x2c4   : > { %v5292_v53 = vadd.f32 %v5291_v3, %v5290_v63  ;;  %v4544_v40 = vpop.f32.mrf.mxu3 }
 0x2c5   : > { %v5069_v58 = vpack.c.bf16 %v5037_v35, %v5037_v35  ;;  %v4545_v18 = vadd.f32 %v4544_v40, %v4252_v1 }
 0x2c7   : > { %5101 = vst.msk [vmem:[%s8195_s9 + $0x68] sm:$0xf] %vm510_vm1, %v5069_v58  ;;  %v5133_v36 = vunpack.c.l.bf16 %v5069_v58  ;;  %v4974_v7 = vadd.f32 %v4934_v19, %v4545_v18 }
 0x2c9   : > { %v5190_v2 = vsel %vm1852_vm2, %v5133_v36, 0.0  ;;  %v5236_v57 = vmul.f32 %v5133_v36, %v5133_v36  ;;  %v5006_v45 = vadd.f32 %v4974_v7, %v3920_v41  ;;  %v4937_v22 = vpop.f32.mrf.mxu0 }
 0x2ca   : > { %v5191_v28 = vadd.f32 %v5190_v2, %v5189_v4  ;;  %v4255_v37 = vpop.f32.mrf.mxu2  ;;  %v3885_v10 = vpop.f32.mrf.mxu1  ;;  %v8954_v4 = vld [vmem:[#allocation26_spill] sm:$0xff] }
 0x2cb   : > { %v5293_v13 = vsel %vm1852_vm2, %v5236_v57, 0.0  ;;  %v5038_v29 = vadd.f32 %v5006_v45, %v8949_v32  ;;  %v3922_v23 = vadd.f32 %v3885_v10, %v8952_v62 }
 0x2cc   : > { %v5294_v8 = vadd.f32 %v5293_v13, %v5292_v53  ;;  %v4547_v59 = vpop.f32.mrf.mxu3 }
 0x2cd   : > { %v5070_v44 = vpack.c.bf16 %v5038_v29, %v5038_v29  ;;  %v4548_v6 = vadd.f32 %v4547_v59, %v4255_v37 }
 0x2cf   : > { %5102 = vst.msk [vmem:[%s8195_s9 + $0x6c] sm:$0xf] %vm510_vm1, %v5070_v44  ;;  %v5134_v24 = vunpack.c.l.bf16 %v5070_v44  ;;  %v4975_v56 = vadd.f32 %v4937_v22, %v4548_v6  ;;  %v8957_v6 = vld [vmem:[#allocation27_spill] sm:$0xff] }
 0x2d1   : > { %v5192_v60 = vsel %vm1852_vm2, %v5134_v24, 0.0  ;;  %v5237_v25 = vmul.f32 %v5134_v24, %v5134_v24  ;;  %v5007_v34 = vadd.f32 %v4975_v56, %v3921_v20  ;;  %v4939_v15 = vpop.f32.mrf.mxu0 }
 0x2d2   : > { %v5193_v46 = vadd.f32 %v5192_v60, %v5191_v28  ;;  %v4257_v21 = vpop.f32.mrf.mxu2  ;;  %v3888_v9 = vpop.f32.mrf.mxu1  ;;  %v8956_v28 = vld [vmem:[#allocation33_spill] sm:$0xff] }
 0x2d3   : > { %v5295_v30 = vsel %vm1852_vm2, %v5237_v25, 0.0  ;;  %v5039_v12 = vadd.f32 %v5007_v34, %v8951_v39  ;;  %v3923_v1 = vadd.f32 %v3888_v9, %v8954_v4 }
 0x2d4   : > { %v5296_v14 = vadd.f32 %v5295_v30, %v5294_v8  ;;  %v4549_v5 = vpop.f32.mrf.mxu3 }
 0x2d5   : > { %v5071_v16 = vpack.c.bf16 %v5039_v12, %v5039_v12  ;;  %v4550_v50 = vadd.f32 %v4549_v5, %v4257_v21 }
 0x2d7   : > { %5103 = vst.msk [vmem:[%s8195_s9 + $0x70] sm:$0xf] %vm510_vm1, %v5071_v16  ;;  %v5135_v27 = vunpack.c.l.bf16 %v5071_v16  ;;  %v4976_v0 = vadd.f32 %v4939_v15, %v4550_v50 }
 0x2d9   : > { %v5194_v48 = vsel %vm1852_vm2, %v5135_v27, 0.0  ;;  %v5238_v61 = vmul.f32 %v5135_v27, %v5135_v27  ;;  %v5008_v63 = vadd.f32 %v4976_v0, %v3922_v23  ;;  %v4942_v43 = vpop.f32.mrf.mxu0 }
 0x2da   : > { %v5195_v42 = vadd.f32 %v5194_v48, %v5193_v46  ;;  %v4260_v49 = vpop.f32.mrf.mxu2  ;;  %v3890_v41 = vpop.f32.mrf.mxu1 }
 0x2db   : > { %v5297_v51 = vsel %vm1852_vm2, %v5238_v61, 0.0  ;;  %v5040_v55 = vadd.f32 %v5008_v63, %v8953_v38  ;;  %v3924_v37 = vadd.f32 %v3890_v41, %v8956_v28 }
 0x2dc   : > { %v5298_v47 = vadd.f32 %v5297_v51, %v5296_v14  ;;  %v4552_v33 = vpop.f32.mrf.mxu3 }
 0x2dd   : > { %v5072_v26 = vpack.c.bf16 %v5040_v55, %v5040_v55  ;;  %v4553_v54 = vadd.f32 %v4552_v33, %v4260_v49 }
 0x2df   : > { %5104 = vst.msk [vmem:[%s8195_s9 + $0x74] sm:$0xf] %vm510_vm1, %v5072_v26  ;;  %v5136_v19 = vunpack.c.l.bf16 %v5072_v26  ;;  %v4977_v3 = vadd.f32 %v4942_v43, %v4553_v54 }
 0x2e1   : > { %v5196_v31 = vsel %vm1852_vm2, %v5136_v19, 0.0  ;;  %v5239_v35 = vmul.f32 %v5136_v19, %v5136_v19  ;;  %v5009_v53 = vadd.f32 %v4977_v3, %v3923_v1  ;;  %v4944_v45 = vpop.f32.mrf.mxu0 }
 0x2e2   : > { %v5197_v40 = vadd.f32 %v5196_v31, %v5195_v42  ;;  %v4262_v58 = vpop.f32.mrf.mxu2 }
 0x2e3   : > { %v5299_v18 = vsel %vm1852_vm2, %v5239_v35, 0.0  ;;  %v5041_v36 = vadd.f32 %v5009_v53, %v8955_v17 }
 0x2e4   : > { %v5300_v11 = vadd.f32 %v5299_v18, %v5298_v47  ;;  %v4554_v7 = vpop.f32.mrf.mxu3 }
 0x2e5   : > { %v5073_v2 = vpack.c.bf16 %v5041_v36, %v5041_v36  ;;  %v4555_v57 = vadd.f32 %v4554_v7, %v4262_v58 }
 0x2e7   : > { %5105 = vst.msk [vmem:[%s8195_s9 + $0x78] sm:$0xf] %vm510_vm1, %v5073_v2  ;;  %v5137_v22 = vunpack.c.l.bf16 %v5073_v2  ;;  %v4978_v13 = vadd.f32 %v4944_v45, %v4555_v57 }
 0x2e9   : > { %v5198_v32 = vsel %vm1852_vm2, %v5137_v22, 0.0  ;;  %v5240_v29 = vmul.f32 %v5137_v22, %v5137_v22  ;;  %v5010_v8 = vadd.f32 %v4978_v13, %v3924_v37 }
 0x2ea   : > { %v5199_v59 = vadd.f32 %v5198_v32, %v5197_v40 }
 0x2eb   : > { %v5301_v44 = vsel %vm1852_vm2, %v5240_v29, 0.0  ;;  %v5042_v24 = vadd.f32 %v5010_v8, %v8957_v6 }
 0x2ec   : > { %v5302_v52 = vadd.f32 %v5301_v44, %v5300_v11 }
 0x2ed   : > { %v5074_v20 = vpack.c.bf16 %v5042_v24, %v5042_v24 }
 0x2ef   : > { %5106 = vst.msk [vmem:[%s8195_s9 + $0x7c] sm:$0xf] %vm510_vm1, %v5074_v20  ;;  %v5138_v56 = vunpack.c.l.bf16 %v5074_v20  ;;  %vm5208_vm1 = vcmask 24576  }
 0x2f1   : > { %v5200_v10 = vsel %vm1852_vm2, %v5138_v56, 0.0  ;;  %v5241_v60 = vmul.f32 %v5138_v56, %v5138_v56 }
 0x2f2   : > { %v5201_v25 = vadd.f32 %v5200_v10, %v5199_v59 }
 0x2f3   : > { %v5303_v34 = vsel %vm1852_vm2, %v5241_v60, 0.0 }
 0x2f4   : > { %v5202_v46 = vrot.slane %v5201_v25, 4  ;;  %v5304_v21 = vadd.f32 %v5303_v34, %v5302_v52 }
 0x2f6   : > { %v5203_v15 = vadd.f32 %v5202_v46, %v5201_v25  ;;  %v5305_v30 = vrot.slane %v5304_v21, 4 }
 0x2f8   : > { %v5204_v39 = vrot.slane %v5203_v15, 2  ;;  %v5306_v12 = vadd.f32 %v5305_v30, %v5304_v21 }
 0x2fa   : > { %v5205_v14 = vadd.f32 %v5204_v39, %v5203_v15  ;;  %v5307_v5 = vrot.slane %v5306_v12, 2 }
 0x2fc   : > { %v5206_v16 = vrot.slane %v5205_v14, 1  ;;  %v5308_v50 = vadd.f32 %v5307_v5, %v5306_v12 }
 0x2fe   : > { %v5207_v27 = vadd.f32 %v5206_v16, %v5205_v14  ;;  %v5309_v62 = vrot.slane %v5308_v50, 1 }
 0x300   : > { %5209 = vst.msk [vmem:[%s500_s20] sm:$0x1] %vm5208_vm1, %v5207_v27  ;;  %v5310_v23 = vadd.f32 %v5309_v62, %v5308_v50 }
 0x302   : > { %5311 = vst.msk [vmem:[%s506_s23] sm:$0x1] %vm5208_vm1, %v5310_v23 }
 0x303 PF: > { %s19_s29 = sadd.s32 1, %s6562_s29   ;;  %s8958_s27 = smov %s6558_s28 }
 0x304   : > { %p16_p5 = scmp.ge.s32.totalorder %s19_s29, 4   ;;  %s8959_s28 = smov %s8961_s30 }
 0x306   :  { %18 = sbr.rel (!%p16_p5) target bundleno = 2 (0x2), region = 112 }

</bundles_post_ra>
